<compile_context>
chip_gen: v7x
topology: tpu7x:2x2x1
jax: 0.10.0
libtpu: 0.0.40
codegen_flags: <defaults>
</compile_context>

<pallas_src>
import math

import jax
import jax.numpy as jnp
from jax.experimental import pallas as pl
from jax.experimental.pallas import tpu as pltpu

PARAMS = {
    "encoder": {
        "in_size": 32,          # must equal hidden_size (ip_emb feeds d_model)
        "hidden_size": 32,
        "nhead": 4,
        "dim_feedforward": 64,
        "dropout": 0.0,
        "num_layers": 2,
    },
    "mixer_linear_stack": {"hidden_sizes": [32], "out_size": 4},
    "init_vel_linear_stack": {"hidden_sizes": [16], "out_size": 1, "max_vel": 60.0},
    "acc_decoder": {"in_size": 16, "hidden_size": 16, "num_acc_sections": 5,
                    "max_acc": 10.0},
    "use_cuda": False,
}

VMEM = pltpu.MemorySpace.VMEM
HEAD_OUT_WIDTH = 128            # lane-dense packed output slab of the heads kernel


def _vmem_spec():
    return pl.BlockSpec(memory_space=VMEM)


def _layer_norm(x, g, b, eps=1e-5):
    mu = jnp.mean(x, axis=-1, keepdims=True)
    var = jnp.mean((x - mu) ** 2, axis=-1, keepdims=True)
    return (x - mu) * jax.lax.rsqrt(var + eps) * g + b


# --------------------------------------------------------------------------
# Kernel 1: fused embed + 2 encoder layers + masked mean pool (one stream per
# grid step, grid=(3,) parallel).
# --------------------------------------------------------------------------
def _make_encoder_kernel(D, H, L):
    Dh = D // H
    scale = 1.0 / math.sqrt(Dh)

    def kernel(x_ref, pe_ref, kmask_ref, pmask_ref, ipw_ref, ipb_ref,
               wqkv_ref, bqkv_ref, wo_ref, bo_ref, ln1g_ref, ln1b_ref,
               w1_ref, b1_ref, w2_ref, b2_ref, ln2g_ref, ln2b_ref, o_ref):
        x = x_ref[0]                       # (B, S, 2)
        B, S, _ = x.shape
        pe = pe_ref[...]                   # (S, D)
        kmask = kmask_ref[0]               # (1, S) additive key mask (0 / -1e9)
        pmask = pmask_ref[0]               # (S, 1) pooling weights (1/len or 0)

        # ---- input embedding + positional encoding ----
        emb = (jnp.dot(x.reshape(B * S, 2), ipw_ref[...],
                       preferred_element_type=jnp.float32) + ipb_ref[...])
        h2 = (emb.reshape(B, S, D) + pe[None]).reshape(B * S, D)

        # ---- transformer encoder layers ----
        for l in range(L):
            xl = h2                                            # (B*S, D)

            # single fused QKV projection: (B*S, D) @ (D, 3D)
            qkv = (jnp.dot(xl, wqkv_ref[0, l],
                           preferred_element_type=jnp.float32)
                   + bqkv_ref[0, l])                           # (B*S, 3D)
            q = qkv[:, 0:D].reshape(B, S, D)
            k = qkv[:, D:2 * D].reshape(B, S, D)
            v = qkv[:, 2 * D:3 * D].reshape(B, S, D)

            wo_t = wo_ref[0, l]                                # (D, D)
            attn2 = jnp.zeros((B * S, D), jnp.float32)
            for hh in range(H):
                sl = slice(hh * Dh, (hh + 1) * Dh)
                qh, kh, vh = q[:, :, sl], k[:, :, sl], v[:, :, sl]
                s = jnp.einsum("bqd,bkd->bqk", qh, kh,
                               preferred_element_type=jnp.float32) * scale
                s = s + kmask                                  # mask padded keys
                s = s - jnp.max(s, axis=-1, keepdims=True)
                p = jnp.exp(s)
                p = p / jnp.sum(p, axis=-1, keepdims=True)
                ctx = jnp.einsum("bqk,bkd->bqd", p, vh,
                                 preferred_element_type=jnp.float32)
                # fold output projection per head (avoids lane concatenate)
                attn2 = attn2 + jnp.dot(ctx.reshape(B * S, Dh), wo_t[sl, :],
                                        preferred_element_type=jnp.float32)
            attn2 = attn2 + bo_ref[0, l]

            y2 = _layer_norm(xl + attn2, ln1g_ref[0, l], ln1b_ref[0, l])
            hid = jnp.maximum(
                jnp.dot(y2, w1_ref[0, l], preferred_element_type=jnp.float32)
                + b1_ref[0, l], 0.0)
            ff2 = (jnp.dot(hid, w2_ref[0, l],
                           preferred_element_type=jnp.float32) + b2_ref[0, l])
            h2 = _layer_norm(y2 + ff2, ln2g_ref[0, l], ln2b_ref[0, l])

        # ---- masked mean pool over the sequence ----
        z = h2.reshape(B, S, D)
        o_ref[0] = jnp.sum(z * pmask[None, :, :], axis=1)      # (B, D)

    return kernel


# --------------------------------------------------------------------------
# Kernel 2: all heads (mix softmax, vel sigmoid, dyn-embed + LSTM acc decoder)
# writing a single lane-dense (B, 128) slab.
# --------------------------------------------------------------------------
def _make_heads_kernel(n_mix, n_vel, Ha, T, max_vel, max_acc, out_width):
    def kernel(*refs):
        o_ref = refs[-1]
        idx = 0
        pooled = refs[idx][...]                  # (3, B, D)
        idx += 1
        B = pooled.shape[1]
        hist_h = pooled[0]                                        # (B, D)
        enc = jnp.concatenate([pooled[0], pooled[1], pooled[2]], axis=-1)

        def stack(x, n):
            nonlocal idx
            for i in range(n):
                w_t = refs[idx][...]
                b = refs[idx + 1][...]
                idx += 2
                x = jnp.dot(x, w_t, preferred_element_type=jnp.float32) + b
                if i < n - 1:
                    x = jnp.where(x > 0.0, x, 0.01 * x)           # LeakyReLU
            return x

        # ---- mix head (softmax) ----
        mix = stack(enc, n_mix)
        mix = mix - jnp.max(mix, axis=-1, keepdims=True)
        mix = jnp.exp(mix)
        mix = mix / jnp.sum(mix, axis=-1, keepdims=True)

        # ---- initial velocity head (sigmoid * max_vel) ----
        vel = jax.nn.sigmoid(stack(hist_h, n_vel)) * max_vel

        # ---- acc decoder: dyn embedder + single-layer LSTM + out layer ----
        dyn_w = refs[idx][...]
        dyn_b = refs[idx + 1][...]
        wih_t = refs[idx + 2][...]
        bb = refs[idx + 3][...]
        whh_t = refs[idx + 4][...]
        acc_w = refs[idx + 5][...]
        acc_b = refs[idx + 6][...]

        d = jnp.maximum(
            jnp.dot(enc, dyn_w, preferred_element_type=jnp.float32) + dyn_b, 0.0)
        # LSTM input is the repeated dyn embedding -> input gates are constant
        xg = jnp.dot(d, wih_t, preferred_element_type=jnp.float32) + bb   # (B,4Ha)
        # split gate blocks ONCE, outside the recurrence
        xg_g = [xg[:, g * Ha:(g + 1) * Ha] for g in range(4)]
        whh_g = [whh_t[:, g * Ha:(g + 1) * Ha] for g in range(4)]

        h = jnp.zeros((B, Ha), jnp.float32)
        c = jnp.zeros((B, Ha), jnp.float32)
        ys = []
        for _ in range(T):
            i_g = jax.nn.sigmoid(
                xg_g[0] + jnp.dot(h, whh_g[0], preferred_element_type=jnp.float32))
            f_g = jax.nn.sigmoid(
                xg_g[1] + jnp.dot(h, whh_g[1], preferred_element_type=jnp.float32))
            c_g = jnp.tanh(
                xg_g[2] + jnp.dot(h, whh_g[2], preferred_element_type=jnp.float32))
            o_g = jax.nn.sigmoid(
                xg_g[3] + jnp.dot(h, whh_g[3], preferred_element_type=jnp.float32))
            c = f_g * c + i_g * c_g
            h = o_g * jnp.tanh(c)
            y = (jnp.dot(jnp.maximum(h, 0.0), acc_w,
                         preferred_element_type=jnp.float32) + acc_b)
            ys.append(jnp.tanh(y) * max_acc)
        acc = jnp.concatenate(ys, axis=-1)                         # (B, T)

        used = mix.shape[-1] + vel.shape[-1] + acc.shape[-1]
        pad = jnp.zeros((B, out_width - used), jnp.float32)
        o_ref[...] = jnp.concatenate([mix, vel, acc, pad], axis=-1)

    return kernel


# --------------------------------------------------------------------------
# Glue (plain JAX)
# --------------------------------------------------------------------------
def positional_encoding(S, D):
    pos = jnp.arange(S, dtype=jnp.float32)[:, None]
    div = jnp.exp(jnp.arange(0, D, 2, dtype=jnp.float32)
                  * (-math.log(10000.0) / D))
    pe = jnp.zeros((S, D), jnp.float32)
    pe = pe.at[:, 0::2].set(jnp.sin(pos * div))
    pe = pe.at[:, 1::2].set(jnp.cos(pos * div))
    return pe


def prepare_weights(w):
    """One-time layout prep: transpose to (in,out), reshape biases to (1,N),
    stack the three per-stream encoder stacks on a leading axis."""
    streams = [w["enc_hist"], w["enc_left"], w["enc_right"]]

    def stack(fn):
        return jnp.stack([jnp.stack([fn(layer) for layer in s]) for s in streams])

    return {
        "ipw": w["ip_emb_w"].T,                              # (2, D)
        "ipb": w["ip_emb_b"].reshape(1, -1),                 # (1, D)
        "wqkv": stack(lambda l: l["wqkv"].T),                # (3, L, D, 3D)
        "bqkv": stack(lambda l: l["bqkv"].reshape(1, -1)),   # (3, L, 1, 3D)
        "wo": stack(lambda l: l["wo"].T),
        "bo": stack(lambda l: l["bo"].reshape(1, -1)),
        "ln1g": stack(lambda l: l["ln1g"].reshape(1, -1)),
        "ln1b": stack(lambda l: l["ln1b"].reshape(1, -1)),
        "w1": stack(lambda l: l["w1"].T),
        "b1": stack(lambda l: l["b1"].reshape(1, -1)),
        "w2": stack(lambda l: l["w2"].T),
        "b2": stack(lambda l: l["b2"].reshape(1, -1)),
        "ln2g": stack(lambda l: l["ln2g"].reshape(1, -1)),
        "ln2b": stack(lambda l: l["ln2b"].reshape(1, -1)),
        "mix": [(wl.T, bl.reshape(1, -1)) for wl, bl in w["mix_layers"]],
        "vel": [(wl.T, bl.reshape(1, -1)) for wl, bl in w["vel_layers"]],
        "dyn_w": w["dyn_w"].T, "dyn_b": w["dyn_b"].reshape(1, -1),
        "wih": w["lstm_wih"].T,                              # (A, 4Ha)
        "bb": (w["lstm_bih"] + w["lstm_bhh"]).reshape(1, -1),
        "whh": w["lstm_whh"].T,                              # (Ha, 4Ha)
        "acc_w": w["acc_w"].T, "acc_b": w["acc_b"].reshape(1, -1),
    }


def mixnet_forward(prep, hist, left_bound, right_bound):
    p = PARAMS
    D = p["encoder"]["hidden_size"]
    H = p["encoder"]["nhead"]
    L = p["encoder"]["num_layers"]
    B = hist.shape[0]
    lens = (hist.shape[1], left_bound.shape[1], right_bound.shape[1])
    S = max(lens)

    def pad_seq(x):
        return jnp.pad(x, ((0, 0), (0, S - x.shape[1]), (0, 0)))

    xs = jnp.stack([pad_seq(hist), pad_seq(left_bound), pad_seq(right_bound)])

    pe = positional_encoding(S, D)
    pos = jnp.arange(S, dtype=jnp.float32)
    valid = jnp.stack([(pos < ln).astype(jnp.float32) for ln in lens])   # (3, S)
    kmask = ((valid - 1.0) * 1e9).reshape(3, 1, S)          # 0 valid / -1e9 pad
    pmask = jnp.stack([(pos < ln).astype(jnp.float32) / float(ln)
                       for ln in lens]).reshape(3, S, 1)    # 1/len valid / 0 pad

    def stream_spec(a):
        n = a.ndim
        return pl.BlockSpec((1,) + a.shape[1:],
                            lambda s, n=n: (s,) + (0,) * (n - 1))

    def shared_spec(a):
        n = a.ndim
        return pl.BlockSpec(a.shape, lambda s, n=n: (0,) * n)

    shared_names = ("ipw", "ipb")
    stacked_names = ("wqkv", "bqkv", "wo", "bo", "ln1g", "ln1b",
                     "w1", "b1", "w2", "b2", "ln2g", "ln2b")
    enc_args = ([xs, pe, kmask, pmask]
                + [prep[n] for n in shared_names]
                + [prep[n] for n in stacked_names])
    enc_specs = ([stream_spec(xs), shared_spec(pe),
                  stream_spec(kmask), stream_spec(pmask)]
                 + [shared_spec(prep[n]) for n in shared_names]
                 + [stream_spec(prep[n]) for n in stacked_names])

    pooled = pl.pallas_call(
        _make_encoder_kernel(D, H, L),
        out_shape=jax.ShapeDtypeStruct((3, B, D), jnp.float32),
        grid=(3,),
        in_specs=enc_specs,
        out_specs=pl.BlockSpec((1, B, D), lambda s: (s, 0, 0)),
        compiler_params=pltpu.CompilerParams(
            dimension_semantics=("parallel",)),    # v7x: streams across both TCs
    )(*enc_args)

    Ha = p["acc_decoder"]["hidden_size"]
    T = p["acc_decoder"]["num_acc_sections"]
    n_mix_out = p["mixer_linear_stack"]["out_size"]
    n_vel_out = p["init_vel_linear_stack"]["out_size"]

    head_args = [pooled]
    for w_t, b in prep["mix"]:
        head_args += [w_t, b]
    for w_t, b in prep["vel"]:
        head_args += [w_t, b]
    head_args += [prep["dyn_w"], prep["dyn_b"], prep["wih"], prep["bb"],
                  prep["whh"], prep["acc_w"], prep["acc_b"]]

    packed = pl.pallas_call(
        _make_heads_kernel(len(prep["mix"]), len(prep["vel"]), Ha, T,
                           p["init_vel_linear_stack"]["max_vel"],
                           p["acc_decoder"]["max_acc"], HEAD_OUT_WIDTH),
        out_shape=jax.ShapeDtypeStruct((B, HEAD_OUT_WIDTH), jnp.float32),
        in_specs=[_vmem_spec()] * len(head_args),
        out_specs=_vmem_spec(),
    )(*head_args)

    mix_out = packed[:, :n_mix_out]
    vel_out = packed[:, n_mix_out:n_mix_out + n_vel_out]
    acc_out = packed[:, n_mix_out + n_vel_out:n_mix_out + n_vel_out + T]
    return mix_out, vel_out, acc_out


# --------------------------------------------------------------------------
# Deterministic parameter init (PyTorch shapes, (out, in) convention)
# --------------------------------------------------------------------------
def init_weights(key, p):
    D = p["encoder"]["hidden_size"]
    F = p["encoder"]["dim_feedforward"]
    L = p["encoder"]["num_layers"]
    keys = iter(jax.random.split(key, 256))

    def rnd(shape, scale=0.1):
        return jax.random.normal(next(keys), shape, jnp.float32) * scale

    def enc_layer():
        return {
            "wqkv": rnd((3 * D, D)), "bqkv": rnd((3 * D,), 0.01),
            "wo": rnd((D, D)), "bo": rnd((D,), 0.01),
            "ln1g": jnp.ones((D,), jnp.float32),
            "ln1b": jnp.zeros((D,), jnp.float32),
            "w1": rnd((F, D)), "b1": rnd((F,), 0.01),
            "w2": rnd((D, F)), "b2": rnd((D,), 0.01),
            "ln2g": jnp.ones((D,), jnp.float32),
            "ln2b": jnp.zeros((D,), jnp.float32),
        }

    w = {
        "ip_emb_w": rnd((p["encoder"]["in_size"], 2)),
        "ip_emb_b": rnd((p["encoder"]["in_size"],), 0.01),
        "enc_hist": [enc_layer() for _ in range(L)],
        "enc_left": [enc_layer() for _ in range(L)],
        "enc_right": [enc_layer() for _ in range(L)],
    }

    mix_sizes = ([3 * D] + p["mixer_linear_stack"]["hidden_sizes"]
                 + [p["mixer_linear_stack"]["out_size"]])
    w["mix_layers"] = [(rnd((mix_sizes[i + 1], mix_sizes[i])),
                        rnd((mix_sizes[i + 1],), 0.01))
                       for i in range(len(mix_sizes) - 1)]

    vel_sizes = ([D] + p["init_vel_linear_stack"]["hidden_sizes"]
                 + [p["init_vel_linear_stack"]["out_size"]])
    w["vel_layers"] = [(rnd((vel_sizes[i + 1], vel_sizes[i])),
                        rnd((vel_sizes[i + 1],), 0.01))
                       for i in range(len(vel_sizes) - 1)]

    A = p["acc_decoder"]["in_size"]
    Ha = p["acc_decoder"]["hidden_size"]
    w["dyn_w"] = rnd((A, 3 * D))
    w["dyn_b"] = rnd((A,), 0.01)
    w["lstm_wih"] = rnd((4 * Ha, A))
    w["lstm_whh"] = rnd((4 * Ha, Ha))
    w["lstm_bih"] = rnd((4 * Ha,), 0.01)
    w["lstm_bhh"] = rnd((4 * Ha,), 0.01)
    w["acc_w"] = rnd((1, Ha))
    w["acc_b"] = rnd((1,), 0.01)
    return w


# --------------------------------------------------------------------------
# Pure-JAX reference (mirrors the PyTorch forward math) for validation
# --------------------------------------------------------------------------
def _ref_ln(x, g, b, eps=1e-5):
    mu = x.mean(-1, keepdims=True)
    var = ((x - mu) ** 2).mean(-1, keepdims=True)
    return (x - mu) / jnp.sqrt(var + eps) * g + b


def _ref_encoder_layer(x, lw, D, H):
    Dh = D // H
    B, S, _ = x.shape
    q = x @ lw["wqkv"][0:D].T + lw["bqkv"][0:D]
    k = x @ lw["wqkv"][D:2 * D].T + lw["bqkv"][D:2 * D]
    v = x @ lw["wqkv"][2 * D:].T + lw["bqkv"][2 * D:]

    def split(t):
        return t.reshape(B, S, H, Dh).transpose(0, 2, 1, 3)

    s = jnp.einsum("bhqd,bhkd->bhqk", split(q), split(k)) / math.sqrt(Dh)
    p_ = jax.nn.softmax(s, axis=-1)
    ctx = jnp.einsum("bhqk,bhkd->bhqd", p_, split(v)) \
        .transpose(0, 2, 1, 3).reshape(B, S, D)
    attn = ctx @ lw["wo"].T + lw["bo"]
    x = _ref_ln(x + attn, lw["ln1g"], lw["ln1b"])
    ff = jnp.maximum(x @ lw["w1"].T + lw["b1"], 0.0) @ lw["w2"].T + lw["b2"]
    return _ref_ln(x + ff, lw["ln2g"], lw["ln2b"])


def ref_forward(w, p, hist, left_bound, right_bound):
    D = p["encoder"]["hidden_size"]
    H = p["encoder"]["nhead"]

    def embed(x):
        S = x.shape[1]
        return x @ w["ip_emb_w"].T + w["ip_emb_b"] + positional_encoding(S, D)[None]

    def encode(x, layers):
        for lw in layers:
            x = _ref_encoder_layer(x, lw, D, H)
        return x

    hist_h = encode(embed(hist), w["enc_hist"]).mean(axis=1)
    left_h = encode(embed(left_bound), w["enc_left"]).mean(axis=1)
    right_h = encode(embed(right_bound), w["enc_right"]).mean(axis=1)
    enc = jnp.concatenate([hist_h, left_h, right_h], axis=1)

    def stack(x, layers):
        for i, (wl, bl) in enumerate(layers):
            x = x @ wl.T + bl
            if i < len(layers) - 1:
                x = jnp.where(x > 0, x, 0.01 * x)
        return x

    mix_out = jax.nn.softmax(stack(enc, w["mix_layers"]), axis=1)
    vel_out = jax.nn.sigmoid(stack(hist_h, w["vel_layers"])) \
        * p["init_vel_linear_stack"]["max_vel"]

    Ha = p["acc_decoder"]["hidden_size"]
    T = p["acc_decoder"]["num_acc_sections"]
    d = jnp.maximum(enc @ w["dyn_w"].T + w["dyn_b"], 0.0)
    xg = d @ w["lstm_wih"].T + w["lstm_bih"] + w["lstm_bhh"]
    B = enc.shape[0]
    h = jnp.zeros((B, Ha), jnp.float32)
    c = jnp.zeros((B, Ha), jnp.float32)
    ys = []
    for _ in range(T):
        g = xg + h @ w["lstm_whh"].T
        i_g = jax.nn.sigmoid(g[:, :Ha])
        f_g = jax.nn.sigmoid(g[:, Ha:2 * Ha])
        c_g = jnp.tanh(g[:, 2 * Ha:3 * Ha])
        o_g = jax.nn.sigmoid(g[:, 3 * Ha:4 * Ha])
        c = f_g * c + i_g * c_g
        h = o_g * jnp.tanh(c)
        y = jnp.tanh(jnp.maximum(h, 0.0) @ w["acc_w"].T + w["acc_b"])
        ys.append(y * p["acc_decoder"]["max_acc"])
    acc_out = jnp.concatenate(ys, axis=-1)
    return mix_out, vel_out, acc_out


# --------------------------------------------------------------------------
if __name__ == "__main__":
    key = jax.random.PRNGKey(0)
    k1, k2, k3, kw = jax.random.split(key, 4)

    B, S_hist, S_bound = 2, 8, 16
    hist = jax.random.normal(k1, (B, S_hist, 2), jnp.float32)
    left_bound = jax.random.normal(k2, (B, S_bound, 2), jnp.float32)
    right_bound = jax.random.normal(k3, (B, S_bound, 2), jnp.float32)

    weights = init_weights(kw, PARAMS)
    prep = prepare_weights(weights)          # one-time layout prep (no per-call .T)

    fwd = jax.jit(mixnet_forward)
    mix_out, vel_out, acc_out = fwd(prep, hist, left_bound, right_bound)
    jax.block_until_ready((mix_out, vel_out, acc_out))

    r_mix, r_vel, r_acc = ref_forward(
        weights, PARAMS, hist, left_bound, right_bound)

    for name, a, b in [("mix", mix_out, r_mix),
                       ("vel", vel_out, r_vel),
                       ("acc", acc_out, r_acc)]:
        assert a.shape == b.shape, f"{name} shape {a.shape} vs {b.shape}"
        err = float(jnp.max(jnp.abs(a - b)))
        tol = 5e-3 * (1.0 + float(jnp.max(jnp.abs(b))))   # scale-aware (bf16 MXU)
        assert err < tol, f"{name} max abs err {err} (tol {tol})"

    assert mix_out.shape == (B, PARAMS["mixer_linear_stack"]["out_size"])
    assert vel_out.shape == (B, PARAMS["init_vel_linear_stack"]["out_size"])
    assert acc_out.shape == (B, PARAMS["acc_decoder"]["num_acc_sections"])

    print("KERNEL_OK")
</pallas_src>

<mosaic_0001>
module attributes {stable_mosaic.version = 11 : i64} {
  func.func @kernel(%arg0: i32, %arg1: memref<1x2x16x2xf32, #tpu.memory_space<vmem>>, %arg2: memref<16x32xf32, #tpu.memory_space<vmem>>, %arg3: memref<1x1x16xf32, #tpu.memory_space<vmem>>, %arg4: memref<1x16x1xf32, #tpu.memory_space<vmem>>, %arg5: memref<2x32xf32, #tpu.memory_space<vmem>>, %arg6: memref<1x32xf32, #tpu.memory_space<vmem>>, %arg7: memref<1x2x32x96xf32, #tpu.memory_space<vmem>>, %arg8: memref<1x2x1x96xf32, #tpu.memory_space<vmem>>, %arg9: memref<1x2x32x32xf32, #tpu.memory_space<vmem>>, %arg10: memref<1x2x1x32xf32, #tpu.memory_space<vmem>>, %arg11: memref<1x2x1x32xf32, #tpu.memory_space<vmem>>, %arg12: memref<1x2x1x32xf32, #tpu.memory_space<vmem>>, %arg13: memref<1x2x32x64xf32, #tpu.memory_space<vmem>>, %arg14: memref<1x2x1x64xf32, #tpu.memory_space<vmem>>, %arg15: memref<1x2x64x32xf32, #tpu.memory_space<vmem>>, %arg16: memref<1x2x1x32xf32, #tpu.memory_space<vmem>>, %arg17: memref<1x2x1x32xf32, #tpu.memory_space<vmem>>, %arg18: memref<1x2x1x32xf32, #tpu.memory_space<vmem>>, %arg19: memref<1x2x32xf32, #tpu.memory_space<vmem>>) attributes {dimension_semantics = [#tpu.dimension_semantics<parallel>], iteration_bounds = array<i64: 3>, scalar_prefetch = 0 : i64, scratch_operands = 0 : i64, tpu.core_type = #tpu.core_type<tc>, window_params = [{transform_indices = @transform_0, window_bounds = array<i64: 1, 2, 16, 2>}, {pipeline_mode = #tpu.pipeline_mode<synchronous>, transform_indices = @transform_1, window_bounds = array<i64: 16, 32>}, {transform_indices = @transform_2, window_bounds = array<i64: 1, 1, 16>}, {transform_indices = @transform_3, window_bounds = array<i64: 1, 16, 1>}, {pipeline_mode = #tpu.pipeline_mode<synchronous>, transform_indices = @transform_4, window_bounds = array<i64: 2, 32>}, {pipeline_mode = #tpu.pipeline_mode<synchronous>, transform_indices = @transform_5, window_bounds = array<i64: 1, 32>}, {transform_indices = @transform_6, window_bounds = array<i64: 1, 2, 32, 96>}, {transform_indices = @transform_7, window_bounds = array<i64: 1, 2, 1, 96>}, {transform_indices = @transform_8, window_bounds = array<i64: 1, 2, 32, 32>}, {transform_indices = @transform_9, window_bounds = array<i64: 1, 2, 1, 32>}, {transform_indices = @transform_10, window_bounds = array<i64: 1, 2, 1, 32>}, {transform_indices = @transform_11, window_bounds = array<i64: 1, 2, 1, 32>}, {transform_indices = @transform_12, window_bounds = array<i64: 1, 2, 32, 64>}, {transform_indices = @transform_13, window_bounds = array<i64: 1, 2, 1, 64>}, {transform_indices = @transform_14, window_bounds = array<i64: 1, 2, 64, 32>}, {transform_indices = @transform_15, window_bounds = array<i64: 1, 2, 1, 32>}, {transform_indices = @transform_16, window_bounds = array<i64: 1, 2, 1, 32>}, {transform_indices = @transform_17, window_bounds = array<i64: 1, 2, 1, 32>}, {transform_indices = @transform_18, window_bounds = array<i64: 1, 2, 32>}]} {
    %c0 = arith.constant 0 : index
    %c0_0 = arith.constant 0 : index
    %c0_1 = arith.constant 0 : index
    %c0_2 = arith.constant 0 : index
    %0 = vector.load %arg1[%c0, %c0_0, %c0_1, %c0_2] : memref<1x2x16x2xf32, #tpu.memory_space<vmem>>, vector<1x2x16x2xf32>
    %1 = vector.shape_cast %0 : vector<1x2x16x2xf32> to vector<2x16x2xf32>
    %c0_3 = arith.constant 0 : index
    %c0_4 = arith.constant 0 : index
    %2 = vector.load %arg2[%c0_3, %c0_4] : memref<16x32xf32, #tpu.memory_space<vmem>>, vector<16x32xf32>
    %c0_5 = arith.constant 0 : index
    %c0_6 = arith.constant 0 : index
    %c0_7 = arith.constant 0 : index
    %3 = vector.load %arg3[%c0_5, %c0_6, %c0_7] : memref<1x1x16xf32, #tpu.memory_space<vmem>>, vector<1x1x16xf32>
    %4 = vector.shape_cast %3 : vector<1x1x16xf32> to vector<1x16xf32>
    %c0_8 = arith.constant 0 : index
    %c0_9 = arith.constant 0 : index
    %c0_10 = arith.constant 0 : index
    %5 = vector.load %arg4[%c0_8, %c0_9, %c0_10] : memref<1x16x1xf32, #tpu.memory_space<vmem>>, vector<1x16x1xf32>
    %6 = vector.shape_cast %5 : vector<1x16x1xf32> to vector<16x1xf32>
    %7 = vector.shape_cast %1 : vector<2x16x2xf32> to vector<32x2xf32>
    %c0_11 = arith.constant 0 : index
    %c0_12 = arith.constant 0 : index
    %8 = vector.load %arg5[%c0_11, %c0_12] : memref<2x32xf32, #tpu.memory_space<vmem>>, vector<2x32xf32>
    %cst = arith.constant dense<0.000000e+00> : vector<32x32xf32>
    %9 = tpu.matmul %7, %8, %cst {dimension_numbers = #tpu.dot_dimension_numbers<[1], [0], [0], [1], [0, 0, 1, 1], [], []>} : vector<32x2xf32>, vector<2x32xf32>, vector<32x32xf32> -> vector<32x32xf32>
    %c0_13 = arith.constant 0 : index
    %c0_14 = arith.constant 0 : index
    %10 = vector.load %arg6[%c0_13, %c0_14] : memref<1x32xf32, #tpu.memory_space<vmem>>, vector<1x32xf32>
    %11 = vector.broadcast %10 : vector<1x32xf32> to vector<32x32xf32>
    %12 = arith.addf %9, %11 : vector<32x32xf32>
    %13 = vector.shape_cast %12 : vector<32x32xf32> to vector<2x16x32xf32>
    %14 = vector.shape_cast %2 : vector<16x32xf32> to vector<1x16x32xf32>
    %15 = vector.broadcast %14 : vector<1x16x32xf32> to vector<2x16x32xf32>
    %16 = arith.addf %13, %15 : vector<2x16x32xf32>
    %17 = vector.shape_cast %16 : vector<2x16x32xf32> to vector<32x32xf32>
    %c0_15 = arith.constant 0 : index
    %c0_16 = arith.constant 0 : index
    %c0_17 = arith.constant 0 : index
    %c0_18 = arith.constant 0 : index
    %18 = vector.load %arg7[%c0_15, %c0_16, %c0_17, %c0_18] : memref<1x2x32x96xf32, #tpu.memory_space<vmem>>, vector<1x1x32x96xf32>
    %19 = vector.shape_cast %18 : vector<1x1x32x96xf32> to vector<32x96xf32>
    %cst_19 = arith.constant dense<0.000000e+00> : vector<32x96xf32>
    %20 = tpu.matmul %17, %19, %cst_19 {dimension_numbers = #tpu.dot_dimension_numbers<[1], [0], [0], [1], [0, 0, 1, 1], [], []>} : vector<32x32xf32>, vector<32x96xf32>, vector<32x96xf32> -> vector<32x96xf32>
    %c0_20 = arith.constant 0 : index
    %c0_21 = arith.constant 0 : index
    %c0_22 = arith.constant 0 : index
    %c0_23 = arith.constant 0 : index
    %21 = vector.load %arg8[%c0_20, %c0_21, %c0_22, %c0_23] : memref<1x2x1x96xf32, #tpu.memory_space<vmem>>, vector<1x1x1x96xf32>
    %22 = vector.shape_cast %21 : vector<1x1x1x96xf32> to vector<1x96xf32>
    %23 = vector.broadcast %22 : vector<1x96xf32> to vector<32x96xf32>
    %24 = arith.addf %20, %23 : vector<32x96xf32>
    %25 = vector.extract_strided_slice %24 {offsets = [0, 0], sizes = [32, 32], strides = [1, 1]} : vector<32x96xf32> to vector<32x32xf32>
    %26 = vector.shape_cast %25 : vector<32x32xf32> to vector<2x16x32xf32>
    %27 = vector.extract_strided_slice %24 {offsets = [0, 32], sizes = [32, 32], strides = [1, 1]} : vector<32x96xf32> to vector<32x32xf32>
    %28 = vector.shape_cast %27 : vector<32x32xf32> to vector<2x16x32xf32>
    %29 = vector.extract_strided_slice %24 {offsets = [0, 64], sizes = [32, 32], strides = [1, 1]} : vector<32x96xf32> to vector<32x32xf32>
    %30 = vector.shape_cast %29 : vector<32x32xf32> to vector<2x16x32xf32>
    %c0_24 = arith.constant 0 : index
    %c0_25 = arith.constant 0 : index
    %c0_26 = arith.constant 0 : index
    %c0_27 = arith.constant 0 : index
    %31 = vector.load %arg9[%c0_24, %c0_25, %c0_26, %c0_27] : memref<1x2x32x32xf32, #tpu.memory_space<vmem>>, vector<1x1x32x32xf32>
    %32 = vector.shape_cast %31 : vector<1x1x32x32xf32> to vector<32x32xf32>
    %cst_28 = arith.constant 0.000000e+00 : f32
    %33 = vector.broadcast %cst_28 : f32 to vector<32x32xf32>
    %34 = vector.extract_strided_slice %26 {offsets = [0, 0, 0], sizes = [2, 16, 8], strides = [1, 1, 1]} : vector<2x16x32xf32> to vector<2x16x8xf32>
    %35 = vector.extract_strided_slice %28 {offsets = [0, 0, 0], sizes = [2, 16, 8], strides = [1, 1, 1]} : vector<2x16x32xf32> to vector<2x16x8xf32>
    %36 = vector.extract_strided_slice %30 {offsets = [0, 0, 0], sizes = [2, 16, 8], strides = [1, 1, 1]} : vector<2x16x32xf32> to vector<2x16x8xf32>
    "tpu.trace_start"() <{level = 10 : i32, message = "bqd,bkd->bqk"}> : () -> ()
    %cst_29 = arith.constant dense<0.000000e+00> : vector<2x16x16xf32>
    %37 = tpu.matmul %34, %35, %cst_29 {dimension_numbers = #tpu.dot_dimension_numbers<[2], [2], [1], [1], [0, 0, 0, 1, 1, 1], [0], [0]>} : vector<2x16x8xf32>, vector<2x16x8xf32>, vector<2x16x16xf32> -> vector<2x16x16xf32>
    "tpu.trace_stop"() : () -> ()
    %cst_30 = arith.constant 0.353553385 : f32
    %38 = vector.broadcast %cst_30 : f32 to vector<2x16x16xf32>
    %39 = arith.mulf %37, %38 : vector<2x16x16xf32>
    %40 = vector.shape_cast %4 : vector<1x16xf32> to vector<1x1x16xf32>
    %41 = vector.broadcast %40 : vector<1x1x16xf32> to vector<2x16x16xf32>
    %42 = arith.addf %39, %41 : vector<2x16x16xf32>
    %cst_31 = arith.constant dense<0xFF800000> : vector<2x16xf32>
    %43 = vector.multi_reduction <maximumf>, %42, %cst_31 [2] : vector<2x16x16xf32> to vector<2x16xf32>
    %44 = vector.shape_cast %43 : vector<2x16xf32> to vector<2x16x1xf32>
    %45 = vector.broadcast %44 : vector<2x16x1xf32> to vector<2x16x16xf32>
    %46 = arith.subf %42, %45 : vector<2x16x16xf32>
    %47 = math.exp %46 : vector<2x16x16xf32>
    %cst_32 = arith.constant dense<0.000000e+00> : vector<2x16xf32>
    %48 = vector.multi_reduction <add>, %47, %cst_32 [2] : vector<2x16x16xf32> to vector<2x16xf32>
    %49 = vector.shape_cast %48 : vector<2x16xf32> to vector<2x16x1xf32>
    %50 = vector.broadcast %49 : vector<2x16x1xf32> to vector<2x16x16xf32>
    %51 = arith.divf %47, %50 : vector<2x16x16xf32>
    "tpu.trace_start"() <{level = 10 : i32, message = "bqk,bkd->bqd"}> : () -> ()
    %cst_33 = arith.constant dense<0.000000e+00> : vector<2x16x8xf32>
    %52 = tpu.matmul %51, %36, %cst_33 {dimension_numbers = #tpu.dot_dimension_numbers<[2], [1], [1], [2], [0, 0, 0, 1, 1, 2], [0], [0]>} : vector<2x16x16xf32>, vector<2x16x8xf32>, vector<2x16x8xf32> -> vector<2x16x8xf32>
    "tpu.trace_stop"() : () -> ()
    %53 = vector.shape_cast %52 : vector<2x16x8xf32> to vector<32x8xf32>
    %54 = vector.extract_strided_slice %32 {offsets = [0, 0], sizes = [8, 32], strides = [1, 1]} : vector<32x32xf32> to vector<8x32xf32>
    %cst_34 = arith.constant dense<0.000000e+00> : vector<32x32xf32>
    %55 = tpu.matmul %53, %54, %cst_34 {dimension_numbers = #tpu.dot_dimension_numbers<[1], [0], [0], [1], [0, 0, 1, 1], [], []>} : vector<32x8xf32>, vector<8x32xf32>, vector<32x32xf32> -> vector<32x32xf32>
    %56 = arith.addf %33, %55 : vector<32x32xf32>
    %57 = vector.extract_strided_slice %26 {offsets = [0, 0, 8], sizes = [2, 16, 8], strides = [1, 1, 1]} : vector<2x16x32xf32> to vector<2x16x8xf32>
    %58 = vector.extract_strided_slice %28 {offsets = [0, 0, 8], sizes = [2, 16, 8], strides = [1, 1, 1]} : vector<2x16x32xf32> to vector<2x16x8xf32>
    %59 = vector.extract_strided_slice %30 {offsets = [0, 0, 8], sizes = [2, 16, 8], strides = [1, 1, 1]} : vector<2x16x32xf32> to vector<2x16x8xf32>
    "tpu.trace_start"() <{level = 10 : i32, message = "bqd,bkd->bqk"}> : () -> ()
    %cst_35 = arith.constant dense<0.000000e+00> : vector<2x16x16xf32>
    %60 = tpu.matmul %57, %58, %cst_35 {dimension_numbers = #tpu.dot_dimension_numbers<[2], [2], [1], [1], [0, 0, 0, 1, 1, 1], [0], [0]>} : vector<2x16x8xf32>, vector<2x16x8xf32>, vector<2x16x16xf32> -> vector<2x16x16xf32>
    "tpu.trace_stop"() : () -> ()
    %cst_36 = arith.constant 0.353553385 : f32
    %61 = vector.broadcast %cst_36 : f32 to vector<2x16x16xf32>
    %62 = arith.mulf %60, %61 : vector<2x16x16xf32>
    %63 = vector.shape_cast %4 : vector<1x16xf32> to vector<1x1x16xf32>
    %64 = vector.broadcast %63 : vector<1x1x16xf32> to vector<2x16x16xf32>
    %65 = arith.addf %62, %64 : vector<2x16x16xf32>
    %cst_37 = arith.constant dense<0xFF800000> : vector<2x16xf32>
    %66 = vector.multi_reduction <maximumf>, %65, %cst_37 [2] : vector<2x16x16xf32> to vector<2x16xf32>
    %67 = vector.shape_cast %66 : vector<2x16xf32> to vector<2x16x1xf32>
    %68 = vector.broadcast %67 : vector<2x16x1xf32> to vector<2x16x16xf32>
    %69 = arith.subf %65, %68 : vector<2x16x16xf32>
    %70 = math.exp %69 : vector<2x16x16xf32>
    %cst_38 = arith.constant dense<0.000000e+00> : vector<2x16xf32>
    %71 = vector.multi_reduction <add>, %70, %cst_38 [2] : vector<2x16x16xf32> to vector<2x16xf32>
    %72 = vector.shape_cast %71 : vector<2x16xf32> to vector<2x16x1xf32>
    %73 = vector.broadcast %72 : vector<2x16x1xf32> to vector<2x16x16xf32>
    %74 = arith.divf %70, %73 : vector<2x16x16xf32>
    "tpu.trace_start"() <{level = 10 : i32, message = "bqk,bkd->bqd"}> : () -> ()
    %cst_39 = arith.constant dense<0.000000e+00> : vector<2x16x8xf32>
    %75 = tpu.matmul %74, %59, %cst_39 {dimension_numbers = #tpu.dot_dimension_numbers<[2], [1], [1], [2], [0, 0, 0, 1, 1, 2], [0], [0]>} : vector<2x16x16xf32>, vector<2x16x8xf32>, vector<2x16x8xf32> -> vector<2x16x8xf32>
    "tpu.trace_stop"() : () -> ()
    %76 = vector.shape_cast %75 : vector<2x16x8xf32> to vector<32x8xf32>
    %77 = vector.extract_strided_slice %32 {offsets = [8, 0], sizes = [8, 32], strides = [1, 1]} : vector<32x32xf32> to vector<8x32xf32>
    %cst_40 = arith.constant dense<0.000000e+00> : vector<32x32xf32>
    %78 = tpu.matmul %76, %77, %cst_40 {dimension_numbers = #tpu.dot_dimension_numbers<[1], [0], [0], [1], [0, 0, 1, 1], [], []>} : vector<32x8xf32>, vector<8x32xf32>, vector<32x32xf32> -> vector<32x32xf32>
    %79 = arith.addf %56, %78 : vector<32x32xf32>
    %80 = vector.extract_strided_slice %26 {offsets = [0, 0, 16], sizes = [2, 16, 8], strides = [1, 1, 1]} : vector<2x16x32xf32> to vector<2x16x8xf32>
    %81 = vector.extract_strided_slice %28 {offsets = [0, 0, 16], sizes = [2, 16, 8], strides = [1, 1, 1]} : vector<2x16x32xf32> to vector<2x16x8xf32>
    %82 = vector.extract_strided_slice %30 {offsets = [0, 0, 16], sizes = [2, 16, 8], strides = [1, 1, 1]} : vector<2x16x32xf32> to vector<2x16x8xf32>
    "tpu.trace_start"() <{level = 10 : i32, message = "bqd,bkd->bqk"}> : () -> ()
    %cst_41 = arith.constant dense<0.000000e+00> : vector<2x16x16xf32>
    %83 = tpu.matmul %80, %81, %cst_41 {dimension_numbers = #tpu.dot_dimension_numbers<[2], [2], [1], [1], [0, 0, 0, 1, 1, 1], [0], [0]>} : vector<2x16x8xf32>, vector<2x16x8xf32>, vector<2x16x16xf32> -> vector<2x16x16xf32>
    "tpu.trace_stop"() : () -> ()
    %cst_42 = arith.constant 0.353553385 : f32
    %84 = vector.broadcast %cst_42 : f32 to vector<2x16x16xf32>
    %85 = arith.mulf %83, %84 : vector<2x16x16xf32>
    %86 = vector.shape_cast %4 : vector<1x16xf32> to vector<1x1x16xf32>
    %87 = vector.broadcast %86 : vector<1x1x16xf32> to vector<2x16x16xf32>
    %88 = arith.addf %85, %87 : vector<2x16x16xf32>
    %cst_43 = arith.constant dense<0xFF800000> : vector<2x16xf32>
    %89 = vector.multi_reduction <maximumf>, %88, %cst_43 [2] : vector<2x16x16xf32> to vector<2x16xf32>
    %90 = vector.shape_cast %89 : vector<2x16xf32> to vector<2x16x1xf32>
    %91 = vector.broadcast %90 : vector<2x16x1xf32> to vector<2x16x16xf32>
    %92 = arith.subf %88, %91 : vector<2x16x16xf32>
    %93 = math.exp %92 : vector<2x16x16xf32>
    %cst_44 = arith.constant dense<0.000000e+00> : vector<2x16xf32>
    %94 = vector.multi_reduction <add>, %93, %cst_44 [2] : vector<2x16x16xf32> to vector<2x16xf32>
    %95 = vector.shape_cast %94 : vector<2x16xf32> to vector<2x16x1xf32>
    %96 = vector.broadcast %95 : vector<2x16x1xf32> to vector<2x16x16xf32>
    %97 = arith.divf %93, %96 : vector<2x16x16xf32>
    "tpu.trace_start"() <{level = 10 : i32, message = "bqk,bkd->bqd"}> : () -> ()
    %cst_45 = arith.constant dense<0.000000e+00> : vector<2x16x8xf32>
    %98 = tpu.matmul %97, %82, %cst_45 {dimension_numbers = #tpu.dot_dimension_numbers<[2], [1], [1], [2], [0, 0, 0, 1, 1, 2], [0], [0]>} : vector<2x16x16xf32>, vector<2x16x8xf32>, vector<2x16x8xf32> -> vector<2x16x8xf32>
    "tpu.trace_stop"() : () -> ()
    %99 = vector.shape_cast %98 : vector<2x16x8xf32> to vector<32x8xf32>
    %100 = vector.extract_strided_slice %32 {offsets = [16, 0], sizes = [8, 32], strides = [1, 1]} : vector<32x32xf32> to vector<8x32xf32>
    %cst_46 = arith.constant dense<0.000000e+00> : vector<32x32xf32>
    %101 = tpu.matmul %99, %100, %cst_46 {dimension_numbers = #tpu.dot_dimension_numbers<[1], [0], [0], [1], [0, 0, 1, 1], [], []>} : vector<32x8xf32>, vector<8x32xf32>, vector<32x32xf32> -> vector<32x32xf32>
    %102 = arith.addf %79, %101 : vector<32x32xf32>
    %103 = vector.extract_strided_slice %26 {offsets = [0, 0, 24], sizes = [2, 16, 8], strides = [1, 1, 1]} : vector<2x16x32xf32> to vector<2x16x8xf32>
    %104 = vector.extract_strided_slice %28 {offsets = [0, 0, 24], sizes = [2, 16, 8], strides = [1, 1, 1]} : vector<2x16x32xf32> to vector<2x16x8xf32>
    %105 = vector.extract_strided_slice %30 {offsets = [0, 0, 24], sizes = [2, 16, 8], strides = [1, 1, 1]} : vector<2x16x32xf32> to vector<2x16x8xf32>
    "tpu.trace_start"() <{level = 10 : i32, message = "bqd,bkd->bqk"}> : () -> ()
    %cst_47 = arith.constant dense<0.000000e+00> : vector<2x16x16xf32>
    %106 = tpu.matmul %103, %104, %cst_47 {dimension_numbers = #tpu.dot_dimension_numbers<[2], [2], [1], [1], [0, 0, 0, 1, 1, 1], [0], [0]>} : vector<2x16x8xf32>, vector<2x16x8xf32>, vector<2x16x16xf32> -> vector<2x16x16xf32>
    "tpu.trace_stop"() : () -> ()
    %cst_48 = arith.constant 0.353553385 : f32
    %107 = vector.broadcast %cst_48 : f32 to vector<2x16x16xf32>
    %108 = arith.mulf %106, %107 : vector<2x16x16xf32>
    %109 = vector.shape_cast %4 : vector<1x16xf32> to vector<1x1x16xf32>
    %110 = vector.broadcast %109 : vector<1x1x16xf32> to vector<2x16x16xf32>
    %111 = arith.addf %108, %110 : vector<2x16x16xf32>
    %cst_49 = arith.constant dense<0xFF800000> : vector<2x16xf32>
    %112 = vector.multi_reduction <maximumf>, %111, %cst_49 [2] : vector<2x16x16xf32> to vector<2x16xf32>
    %113 = vector.shape_cast %112 : vector<2x16xf32> to vector<2x16x1xf32>
    %114 = vector.broadcast %113 : vector<2x16x1xf32> to vector<2x16x16xf32>
    %115 = arith.subf %111, %114 : vector<2x16x16xf32>
    %116 = math.exp %115 : vector<2x16x16xf32>
    %cst_50 = arith.constant dense<0.000000e+00> : vector<2x16xf32>
    %117 = vector.multi_reduction <add>, %116, %cst_50 [2] : vector<2x16x16xf32> to vector<2x16xf32>
    %118 = vector.shape_cast %117 : vector<2x16xf32> to vector<2x16x1xf32>
    %119 = vector.broadcast %118 : vector<2x16x1xf32> to vector<2x16x16xf32>
    %120 = arith.divf %116, %119 : vector<2x16x16xf32>
    "tpu.trace_start"() <{level = 10 : i32, message = "bqk,bkd->bqd"}> : () -> ()
    %cst_51 = arith.constant dense<0.000000e+00> : vector<2x16x8xf32>
    %121 = tpu.matmul %120, %105, %cst_51 {dimension_numbers = #tpu.dot_dimension_numbers<[2], [1], [1], [2], [0, 0, 0, 1, 1, 2], [0], [0]>} : vector<2x16x16xf32>, vector<2x16x8xf32>, vector<2x16x8xf32> -> vector<2x16x8xf32>
    "tpu.trace_stop"() : () -> ()
    %122 = vector.shape_cast %121 : vector<2x16x8xf32> to vector<32x8xf32>
    %123 = vector.extract_strided_slice %32 {offsets = [24, 0], sizes = [8, 32], strides = [1, 1]} : vector<32x32xf32> to vector<8x32xf32>
    %cst_52 = arith.constant dense<0.000000e+00> : vector<32x32xf32>
    %124 = tpu.matmul %122, %123, %cst_52 {dimension_numbers = #tpu.dot_dimension_numbers<[1], [0], [0], [1], [0, 0, 1, 1], [], []>} : vector<32x8xf32>, vector<8x32xf32>, vector<32x32xf32> -> vector<32x32xf32>
    %125 = arith.addf %102, %124 : vector<32x32xf32>
    %c0_53 = arith.constant 0 : index
    %c0_54 = arith.constant 0 : index
    %c0_55 = arith.constant 0 : index
    %c0_56 = arith.constant 0 : index
    %126 = vector.load %arg10[%c0_53, %c0_54, %c0_55, %c0_56] : memref<1x2x1x32xf32, #tpu.memory_space<vmem>>, vector<1x1x1x32xf32>
    %127 = vector.shape_cast %126 : vector<1x1x1x32xf32> to vector<1x32xf32>
    %128 = vector.broadcast %127 : vector<1x32xf32> to vector<32x32xf32>
    %129 = arith.addf %125, %128 : vector<32x32xf32>
    %130 = arith.addf %17, %129 : vector<32x32xf32>
    %c0_57 = arith.constant 0 : index
    %c0_58 = arith.constant 0 : index
    %c0_59 = arith.constant 0 : index
    %c0_60 = arith.constant 0 : index
    %131 = vector.load %arg11[%c0_57, %c0_58, %c0_59, %c0_60] : memref<1x2x1x32xf32, #tpu.memory_space<vmem>>, vector<1x1x1x32xf32>
    %132 = vector.shape_cast %131 : vector<1x1x1x32xf32> to vector<1x32xf32>
    %c0_61 = arith.constant 0 : index
    %c0_62 = arith.constant 0 : index
    %c0_63 = arith.constant 0 : index
    %c0_64 = arith.constant 0 : index
    %133 = vector.load %arg12[%c0_61, %c0_62, %c0_63, %c0_64] : memref<1x2x1x32xf32, #tpu.memory_space<vmem>>, vector<1x1x1x32xf32>
    %134 = vector.shape_cast %133 : vector<1x1x1x32xf32> to vector<1x32xf32>
    %cst_65 = arith.constant dense<0.000000e+00> : vector<32xf32>
    %135 = vector.multi_reduction <add>, %130, %cst_65 [1] : vector<32x32xf32> to vector<32xf32>
    %136 = vector.shape_cast %135 : vector<32xf32> to vector<32x1xf32>
    %cst_66 = arith.constant 3.200000e+01 : f32
    %137 = vector.broadcast %cst_66 : f32 to vector<32x1xf32>
    %138 = arith.divf %136, %137 : vector<32x1xf32>
    %139 = vector.broadcast %138 : vector<32x1xf32> to vector<32x32xf32>
    %140 = arith.subf %130, %139 : vector<32x32xf32>
    %141 = arith.mulf %140, %140 : vector<32x32xf32>
    %cst_67 = arith.constant dense<0.000000e+00> : vector<32xf32>
    %142 = vector.multi_reduction <add>, %141, %cst_67 [1] : vector<32x32xf32> to vector<32xf32>
    %143 = vector.shape_cast %142 : vector<32xf32> to vector<32x1xf32>
    %cst_68 = arith.constant 3.200000e+01 : f32
    %144 = vector.broadcast %cst_68 : f32 to vector<32x1xf32>
    %145 = arith.divf %143, %144 : vector<32x1xf32>
    %146 = vector.broadcast %138 : vector<32x1xf32> to vector<32x32xf32>
    %147 = arith.subf %130, %146 : vector<32x32xf32>
    %cst_69 = arith.constant 9.99999974E-6 : f32
    %148 = vector.broadcast %cst_69 : f32 to vector<32x1xf32>
    %149 = arith.addf %145, %148 : vector<32x1xf32>
    %150 = math.rsqrt %149 : vector<32x1xf32>
    %151 = vector.broadcast %150 : vector<32x1xf32> to vector<32x32xf32>
    %152 = arith.mulf %147, %151 : vector<32x32xf32>
    %153 = vector.broadcast %132 : vector<1x32xf32> to vector<32x32xf32>
    %154 = arith.mulf %152, %153 : vector<32x32xf32>
    %155 = vector.broadcast %134 : vector<1x32xf32> to vector<32x32xf32>
    %156 = arith.addf %154, %155 : vector<32x32xf32>
    %c0_70 = arith.constant 0 : index
    %c0_71 = arith.constant 0 : index
    %c0_72 = arith.constant 0 : index
    %c0_73 = arith.constant 0 : index
    %157 = vector.load %arg13[%c0_70, %c0_71, %c0_72, %c0_73] : memref<1x2x32x64xf32, #tpu.memory_space<vmem>>, vector<1x1x32x64xf32>
    %158 = vector.shape_cast %157 : vector<1x1x32x64xf32> to vector<32x64xf32>
    %cst_74 = arith.constant dense<0.000000e+00> : vector<32x64xf32>
    %159 = tpu.matmul %156, %158, %cst_74 {dimension_numbers = #tpu.dot_dimension_numbers<[1], [0], [0], [1], [0, 0, 1, 1], [], []>} : vector<32x32xf32>, vector<32x64xf32>, vector<32x64xf32> -> vector<32x64xf32>
    %c0_75 = arith.constant 0 : index
    %c0_76 = arith.constant 0 : index
    %c0_77 = arith.constant 0 : index
    %c0_78 = arith.constant 0 : index
    %160 = vector.load %arg14[%c0_75, %c0_76, %c0_77, %c0_78] : memref<1x2x1x64xf32, #tpu.memory_space<vmem>>, vector<1x1x1x64xf32>
    %161 = vector.shape_cast %160 : vector<1x1x1x64xf32> to vector<1x64xf32>
    %162 = vector.broadcast %161 : vector<1x64xf32> to vector<32x64xf32>
    %163 = arith.addf %159, %162 : vector<32x64xf32>
    %cst_79 = arith.constant 0.000000e+00 : f32
    %164 = vector.broadcast %cst_79 : f32 to vector<32x64xf32>
    %165 = arith.maximumf %163, %164 : vector<32x64xf32>
    %c0_80 = arith.constant 0 : index
    %c0_81 = arith.constant 0 : index
    %c0_82 = arith.constant 0 : index
    %c0_83 = arith.constant 0 : index
    %166 = vector.load %arg15[%c0_80, %c0_81, %c0_82, %c0_83] : memref<1x2x64x32xf32, #tpu.memory_space<vmem>>, vector<1x1x64x32xf32>
    %167 = vector.shape_cast %166 : vector<1x1x64x32xf32> to vector<64x32xf32>
    %cst_84 = arith.constant dense<0.000000e+00> : vector<32x32xf32>
    %168 = tpu.matmul %165, %167, %cst_84 {dimension_numbers = #tpu.dot_dimension_numbers<[1], [0], [0], [1], [0, 0, 1, 1], [], []>} : vector<32x64xf32>, vector<64x32xf32>, vector<32x32xf32> -> vector<32x32xf32>
    %c0_85 = arith.constant 0 : index
    %c0_86 = arith.constant 0 : index
    %c0_87 = arith.constant 0 : index
    %c0_88 = arith.constant 0 : index
    %169 = vector.load %arg16[%c0_85, %c0_86, %c0_87, %c0_88] : memref<1x2x1x32xf32, #tpu.memory_space<vmem>>, vector<1x1x1x32xf32>
    %170 = vector.shape_cast %169 : vector<1x1x1x32xf32> to vector<1x32xf32>
    %171 = vector.broadcast %170 : vector<1x32xf32> to vector<32x32xf32>
    %172 = arith.addf %168, %171 : vector<32x32xf32>
    %173 = arith.addf %156, %172 : vector<32x32xf32>
    %c0_89 = arith.constant 0 : index
    %c0_90 = arith.constant 0 : index
    %c0_91 = arith.constant 0 : index
    %c0_92 = arith.constant 0 : index
    %174 = vector.load %arg17[%c0_89, %c0_90, %c0_91, %c0_92] : memref<1x2x1x32xf32, #tpu.memory_space<vmem>>, vector<1x1x1x32xf32>
    %175 = vector.shape_cast %174 : vector<1x1x1x32xf32> to vector<1x32xf32>
    %c0_93 = arith.constant 0 : index
    %c0_94 = arith.constant 0 : index
    %c0_95 = arith.constant 0 : index
    %c0_96 = arith.constant 0 : index
    %176 = vector.load %arg18[%c0_93, %c0_94, %c0_95, %c0_96] : memref<1x2x1x32xf32, #tpu.memory_space<vmem>>, vector<1x1x1x32xf32>
    %177 = vector.shape_cast %176 : vector<1x1x1x32xf32> to vector<1x32xf32>
    %cst_97 = arith.constant dense<0.000000e+00> : vector<32xf32>
    %178 = vector.multi_reduction <add>, %173, %cst_97 [1] : vector<32x32xf32> to vector<32xf32>
    %179 = vector.shape_cast %178 : vector<32xf32> to vector<32x1xf32>
    %cst_98 = arith.constant 3.200000e+01 : f32
    %180 = vector.broadcast %cst_98 : f32 to vector<32x1xf32>
    %181 = arith.divf %179, %180 : vector<32x1xf32>
    %182 = vector.broadcast %181 : vector<32x1xf32> to vector<32x32xf32>
    %183 = arith.subf %173, %182 : vector<32x32xf32>
    %184 = arith.mulf %183, %183 : vector<32x32xf32>
    %cst_99 = arith.constant dense<0.000000e+00> : vector<32xf32>
    %185 = vector.multi_reduction <add>, %184, %cst_99 [1] : vector<32x32xf32> to vector<32xf32>
    %186 = vector.shape_cast %185 : vector<32xf32> to vector<32x1xf32>
    %cst_100 = arith.constant 3.200000e+01 : f32
    %187 = vector.broadcast %cst_100 : f32 to vector<32x1xf32>
    %188 = arith.divf %186, %187 : vector<32x1xf32>
    %189 = vector.broadcast %181 : vector<32x1xf32> to vector<32x32xf32>
    %190 = arith.subf %173, %189 : vector<32x32xf32>
    %cst_101 = arith.constant 9.99999974E-6 : f32
    %191 = vector.broadcast %cst_101 : f32 to vector<32x1xf32>
    %192 = arith.addf %188, %191 : vector<32x1xf32>
    %193 = math.rsqrt %192 : vector<32x1xf32>
    %194 = vector.broadcast %193 : vector<32x1xf32> to vector<32x32xf32>
    %195 = arith.mulf %190, %194 : vector<32x32xf32>
    %196 = vector.broadcast %175 : vector<1x32xf32> to vector<32x32xf32>
    %197 = arith.mulf %195, %196 : vector<32x32xf32>
    %198 = vector.broadcast %177 : vector<1x32xf32> to vector<32x32xf32>
    %199 = arith.addf %197, %198 : vector<32x32xf32>
    %c0_102 = arith.constant 0 : index
    %c1 = arith.constant 1 : index
    %c0_103 = arith.constant 0 : index
    %c0_104 = arith.constant 0 : index
    %200 = vector.load %arg7[%c0_102, %c1, %c0_103, %c0_104] : memref<1x2x32x96xf32, #tpu.memory_space<vmem>>, vector<1x1x32x96xf32>
    %201 = vector.shape_cast %200 : vector<1x1x32x96xf32> to vector<32x96xf32>
    %cst_105 = arith.constant dense<0.000000e+00> : vector<32x96xf32>
    %202 = tpu.matmul %199, %201, %cst_105 {dimension_numbers = #tpu.dot_dimension_numbers<[1], [0], [0], [1], [0, 0, 1, 1], [], []>} : vector<32x32xf32>, vector<32x96xf32>, vector<32x96xf32> -> vector<32x96xf32>
    %c0_106 = arith.constant 0 : index
    %c1_107 = arith.constant 1 : index
    %c0_108 = arith.constant 0 : index
    %c0_109 = arith.constant 0 : index
    %203 = vector.load %arg8[%c0_106, %c1_107, %c0_108, %c0_109] : memref<1x2x1x96xf32, #tpu.memory_space<vmem>>, vector<1x1x1x96xf32>
    %204 = vector.shape_cast %203 : vector<1x1x1x96xf32> to vector<1x96xf32>
    %205 = vector.broadcast %204 : vector<1x96xf32> to vector<32x96xf32>
    %206 = arith.addf %202, %205 : vector<32x96xf32>
    %207 = vector.extract_strided_slice %206 {offsets = [0, 0], sizes = [32, 32], strides = [1, 1]} : vector<32x96xf32> to vector<32x32xf32>
    %208 = vector.shape_cast %207 : vector<32x32xf32> to vector<2x16x32xf32>
    %209 = vector.extract_strided_slice %206 {offsets = [0, 32], sizes = [32, 32], strides = [1, 1]} : vector<32x96xf32> to vector<32x32xf32>
    %210 = vector.shape_cast %209 : vector<32x32xf32> to vector<2x16x32xf32>
    %211 = vector.extract_strided_slice %206 {offsets = [0, 64], sizes = [32, 32], strides = [1, 1]} : vector<32x96xf32> to vector<32x32xf32>
    %212 = vector.shape_cast %211 : vector<32x32xf32> to vector<2x16x32xf32>
    %c0_110 = arith.constant 0 : index
    %c1_111 = arith.constant 1 : index
    %c0_112 = arith.constant 0 : index
    %c0_113 = arith.constant 0 : index
    %213 = vector.load %arg9[%c0_110, %c1_111, %c0_112, %c0_113] : memref<1x2x32x32xf32, #tpu.memory_space<vmem>>, vector<1x1x32x32xf32>
    %214 = vector.shape_cast %213 : vector<1x1x32x32xf32> to vector<32x32xf32>
    %cst_114 = arith.constant 0.000000e+00 : f32
    %215 = vector.broadcast %cst_114 : f32 to vector<32x32xf32>
    %216 = vector.extract_strided_slice %208 {offsets = [0, 0, 0], sizes = [2, 16, 8], strides = [1, 1, 1]} : vector<2x16x32xf32> to vector<2x16x8xf32>
    %217 = vector.extract_strided_slice %210 {offsets = [0, 0, 0], sizes = [2, 16, 8], strides = [1, 1, 1]} : vector<2x16x32xf32> to vector<2x16x8xf32>
    %218 = vector.extract_strided_slice %212 {offsets = [0, 0, 0], sizes = [2, 16, 8], strides = [1, 1, 1]} : vector<2x16x32xf32> to vector<2x16x8xf32>
    "tpu.trace_start"() <{level = 10 : i32, message = "bqd,bkd->bqk"}> : () -> ()
    %cst_115 = arith.constant dense<0.000000e+00> : vector<2x16x16xf32>
    %219 = tpu.matmul %216, %217, %cst_115 {dimension_numbers = #tpu.dot_dimension_numbers<[2], [2], [1], [1], [0, 0, 0, 1, 1, 1], [0], [0]>} : vector<2x16x8xf32>, vector<2x16x8xf32>, vector<2x16x16xf32> -> vector<2x16x16xf32>
    "tpu.trace_stop"() : () -> ()
    %cst_116 = arith.constant 0.353553385 : f32
    %220 = vector.broadcast %cst_116 : f32 to vector<2x16x16xf32>
    %221 = arith.mulf %219, %220 : vector<2x16x16xf32>
    %222 = vector.shape_cast %4 : vector<1x16xf32> to vector<1x1x16xf32>
    %223 = vector.broadcast %222 : vector<1x1x16xf32> to vector<2x16x16xf32>
    %224 = arith.addf %221, %223 : vector<2x16x16xf32>
    %cst_117 = arith.constant dense<0xFF800000> : vector<2x16xf32>
    %225 = vector.multi_reduction <maximumf>, %224, %cst_117 [2] : vector<2x16x16xf32> to vector<2x16xf32>
    %226 = vector.shape_cast %225 : vector<2x16xf32> to vector<2x16x1xf32>
    %227 = vector.broadcast %226 : vector<2x16x1xf32> to vector<2x16x16xf32>
    %228 = arith.subf %224, %227 : vector<2x16x16xf32>
    %229 = math.exp %228 : vector<2x16x16xf32>
    %cst_118 = arith.constant dense<0.000000e+00> : vector<2x16xf32>
    %230 = vector.multi_reduction <add>, %229, %cst_118 [2] : vector<2x16x16xf32> to vector<2x16xf32>
    %231 = vector.shape_cast %230 : vector<2x16xf32> to vector<2x16x1xf32>
    %232 = vector.broadcast %231 : vector<2x16x1xf32> to vector<2x16x16xf32>
    %233 = arith.divf %229, %232 : vector<2x16x16xf32>
    "tpu.trace_start"() <{level = 10 : i32, message = "bqk,bkd->bqd"}> : () -> ()
    %cst_119 = arith.constant dense<0.000000e+00> : vector<2x16x8xf32>
    %234 = tpu.matmul %233, %218, %cst_119 {dimension_numbers = #tpu.dot_dimension_numbers<[2], [1], [1], [2], [0, 0, 0, 1, 1, 2], [0], [0]>} : vector<2x16x16xf32>, vector<2x16x8xf32>, vector<2x16x8xf32> -> vector<2x16x8xf32>
    "tpu.trace_stop"() : () -> ()
    %235 = vector.shape_cast %234 : vector<2x16x8xf32> to vector<32x8xf32>
    %236 = vector.extract_strided_slice %214 {offsets = [0, 0], sizes = [8, 32], strides = [1, 1]} : vector<32x32xf32> to vector<8x32xf32>
    %cst_120 = arith.constant dense<0.000000e+00> : vector<32x32xf32>
    %237 = tpu.matmul %235, %236, %cst_120 {dimension_numbers = #tpu.dot_dimension_numbers<[1], [0], [0], [1], [0, 0, 1, 1], [], []>} : vector<32x8xf32>, vector<8x32xf32>, vector<32x32xf32> -> vector<32x32xf32>
    %238 = arith.addf %215, %237 : vector<32x32xf32>
    %239 = vector.extract_strided_slice %208 {offsets = [0, 0, 8], sizes = [2, 16, 8], strides = [1, 1, 1]} : vector<2x16x32xf32> to vector<2x16x8xf32>
    %240 = vector.extract_strided_slice %210 {offsets = [0, 0, 8], sizes = [2, 16, 8], strides = [1, 1, 1]} : vector<2x16x32xf32> to vector<2x16x8xf32>
    %241 = vector.extract_strided_slice %212 {offsets = [0, 0, 8], sizes = [2, 16, 8], strides = [1, 1, 1]} : vector<2x16x32xf32> to vector<2x16x8xf32>
    "tpu.trace_start"() <{level = 10 : i32, message = "bqd,bkd->bqk"}> : () -> ()
    %cst_121 = arith.constant dense<0.000000e+00> : vector<2x16x16xf32>
    %242 = tpu.matmul %239, %240, %cst_121 {dimension_numbers = #tpu.dot_dimension_numbers<[2], [2], [1], [1], [0, 0, 0, 1, 1, 1], [0], [0]>} : vector<2x16x8xf32>, vector<2x16x8xf32>, vector<2x16x16xf32> -> vector<2x16x16xf32>
    "tpu.trace_stop"() : () -> ()
    %cst_122 = arith.constant 0.353553385 : f32
    %243 = vector.broadcast %cst_122 : f32 to vector<2x16x16xf32>
    %244 = arith.mulf %242, %243 : vector<2x16x16xf32>
    %245 = vector.shape_cast %4 : vector<1x16xf32> to vector<1x1x16xf32>
    %246 = vector.broadcast %245 : vector<1x1x16xf32> to vector<2x16x16xf32>
    %247 = arith.addf %244, %246 : vector<2x16x16xf32>
    %cst_123 = arith.constant dense<0xFF800000> : vector<2x16xf32>
    %248 = vector.multi_reduction <maximumf>, %247, %cst_123 [2] : vector<2x16x16xf32> to vector<2x16xf32>
    %249 = vector.shape_cast %248 : vector<2x16xf32> to vector<2x16x1xf32>
    %250 = vector.broadcast %249 : vector<2x16x1xf32> to vector<2x16x16xf32>
    %251 = arith.subf %247, %250 : vector<2x16x16xf32>
    %252 = math.exp %251 : vector<2x16x16xf32>
    %cst_124 = arith.constant dense<0.000000e+00> : vector<2x16xf32>
    %253 = vector.multi_reduction <add>, %252, %cst_124 [2] : vector<2x16x16xf32> to vector<2x16xf32>
    %254 = vector.shape_cast %253 : vector<2x16xf32> to vector<2x16x1xf32>
    %255 = vector.broadcast %254 : vector<2x16x1xf32> to vector<2x16x16xf32>
    %256 = arith.divf %252, %255 : vector<2x16x16xf32>
    "tpu.trace_start"() <{level = 10 : i32, message = "bqk,bkd->bqd"}> : () -> ()
    %cst_125 = arith.constant dense<0.000000e+00> : vector<2x16x8xf32>
    %257 = tpu.matmul %256, %241, %cst_125 {dimension_numbers = #tpu.dot_dimension_numbers<[2], [1], [1], [2], [0, 0, 0, 1, 1, 2], [0], [0]>} : vector<2x16x16xf32>, vector<2x16x8xf32>, vector<2x16x8xf32> -> vector<2x16x8xf32>
    "tpu.trace_stop"() : () -> ()
    %258 = vector.shape_cast %257 : vector<2x16x8xf32> to vector<32x8xf32>
    %259 = vector.extract_strided_slice %214 {offsets = [8, 0], sizes = [8, 32], strides = [1, 1]} : vector<32x32xf32> to vector<8x32xf32>
    %cst_126 = arith.constant dense<0.000000e+00> : vector<32x32xf32>
    %260 = tpu.matmul %258, %259, %cst_126 {dimension_numbers = #tpu.dot_dimension_numbers<[1], [0], [0], [1], [0, 0, 1, 1], [], []>} : vector<32x8xf32>, vector<8x32xf32>, vector<32x32xf32> -> vector<32x32xf32>
    %261 = arith.addf %238, %260 : vector<32x32xf32>
    %262 = vector.extract_strided_slice %208 {offsets = [0, 0, 16], sizes = [2, 16, 8], strides = [1, 1, 1]} : vector<2x16x32xf32> to vector<2x16x8xf32>
    %263 = vector.extract_strided_slice %210 {offsets = [0, 0, 16], sizes = [2, 16, 8], strides = [1, 1, 1]} : vector<2x16x32xf32> to vector<2x16x8xf32>
    %264 = vector.extract_strided_slice %212 {offsets = [0, 0, 16], sizes = [2, 16, 8], strides = [1, 1, 1]} : vector<2x16x32xf32> to vector<2x16x8xf32>
    "tpu.trace_start"() <{level = 10 : i32, message = "bqd,bkd->bqk"}> : () -> ()
    %cst_127 = arith.constant dense<0.000000e+00> : vector<2x16x16xf32>
    %265 = tpu.matmul %262, %263, %cst_127 {dimension_numbers = #tpu.dot_dimension_numbers<[2], [2], [1], [1], [0, 0, 0, 1, 1, 1], [0], [0]>} : vector<2x16x8xf32>, vector<2x16x8xf32>, vector<2x16x16xf32> -> vector<2x16x16xf32>
    "tpu.trace_stop"() : () -> ()
    %cst_128 = arith.constant 0.353553385 : f32
    %266 = vector.broadcast %cst_128 : f32 to vector<2x16x16xf32>
    %267 = arith.mulf %265, %266 : vector<2x16x16xf32>
    %268 = vector.shape_cast %4 : vector<1x16xf32> to vector<1x1x16xf32>
    %269 = vector.broadcast %268 : vector<1x1x16xf32> to vector<2x16x16xf32>
    %270 = arith.addf %267, %269 : vector<2x16x16xf32>
    %cst_129 = arith.constant dense<0xFF800000> : vector<2x16xf32>
    %271 = vector.multi_reduction <maximumf>, %270, %cst_129 [2] : vector<2x16x16xf32> to vector<2x16xf32>
    %272 = vector.shape_cast %271 : vector<2x16xf32> to vector<2x16x1xf32>
    %273 = vector.broadcast %272 : vector<2x16x1xf32> to vector<2x16x16xf32>
    %274 = arith.subf %270, %273 : vector<2x16x16xf32>
    %275 = math.exp %274 : vector<2x16x16xf32>
    %cst_130 = arith.constant dense<0.000000e+00> : vector<2x16xf32>
    %276 = vector.multi_reduction <add>, %275, %cst_130 [2] : vector<2x16x16xf32> to vector<2x16xf32>
    %277 = vector.shape_cast %276 : vector<2x16xf32> to vector<2x16x1xf32>
    %278 = vector.broadcast %277 : vector<2x16x1xf32> to vector<2x16x16xf32>
    %279 = arith.divf %275, %278 : vector<2x16x16xf32>
    "tpu.trace_start"() <{level = 10 : i32, message = "bqk,bkd->bqd"}> : () -> ()
    %cst_131 = arith.constant dense<0.000000e+00> : vector<2x16x8xf32>
    %280 = tpu.matmul %279, %264, %cst_131 {dimension_numbers = #tpu.dot_dimension_numbers<[2], [1], [1], [2], [0, 0, 0, 1, 1, 2], [0], [0]>} : vector<2x16x16xf32>, vector<2x16x8xf32>, vector<2x16x8xf32> -> vector<2x16x8xf32>
    "tpu.trace_stop"() : () -> ()
    %281 = vector.shape_cast %280 : vector<2x16x8xf32> to vector<32x8xf32>
    %282 = vector.extract_strided_slice %214 {offsets = [16, 0], sizes = [8, 32], strides = [1, 1]} : vector<32x32xf32> to vector<8x32xf32>
    %cst_132 = arith.constant dense<0.000000e+00> : vector<32x32xf32>
    %283 = tpu.matmul %281, %282, %cst_132 {dimension_numbers = #tpu.dot_dimension_numbers<[1], [0], [0], [1], [0, 0, 1, 1], [], []>} : vector<32x8xf32>, vector<8x32xf32>, vector<32x32xf32> -> vector<32x32xf32>
    %284 = arith.addf %261, %283 : vector<32x32xf32>
    %285 = vector.extract_strided_slice %208 {offsets = [0, 0, 24], sizes = [2, 16, 8], strides = [1, 1, 1]} : vector<2x16x32xf32> to vector<2x16x8xf32>
    %286 = vector.extract_strided_slice %210 {offsets = [0, 0, 24], sizes = [2, 16, 8], strides = [1, 1, 1]} : vector<2x16x32xf32> to vector<2x16x8xf32>
    %287 = vector.extract_strided_slice %212 {offsets = [0, 0, 24], sizes = [2, 16, 8], strides = [1, 1, 1]} : vector<2x16x32xf32> to vector<2x16x8xf32>
    "tpu.trace_start"() <{level = 10 : i32, message = "bqd,bkd->bqk"}> : () -> ()
    %cst_133 = arith.constant dense<0.000000e+00> : vector<2x16x16xf32>
    %288 = tpu.matmul %285, %286, %cst_133 {dimension_numbers = #tpu.dot_dimension_numbers<[2], [2], [1], [1], [0, 0, 0, 1, 1, 1], [0], [0]>} : vector<2x16x8xf32>, vector<2x16x8xf32>, vector<2x16x16xf32> -> vector<2x16x16xf32>
    "tpu.trace_stop"() : () -> ()
    %cst_134 = arith.constant 0.353553385 : f32
    %289 = vector.broadcast %cst_134 : f32 to vector<2x16x16xf32>
    %290 = arith.mulf %288, %289 : vector<2x16x16xf32>
    %291 = vector.shape_cast %4 : vector<1x16xf32> to vector<1x1x16xf32>
    %292 = vector.broadcast %291 : vector<1x1x16xf32> to vector<2x16x16xf32>
    %293 = arith.addf %290, %292 : vector<2x16x16xf32>
    %cst_135 = arith.constant dense<0xFF800000> : vector<2x16xf32>
    %294 = vector.multi_reduction <maximumf>, %293, %cst_135 [2] : vector<2x16x16xf32> to vector<2x16xf32>
    %295 = vector.shape_cast %294 : vector<2x16xf32> to vector<2x16x1xf32>
    %296 = vector.broadcast %295 : vector<2x16x1xf32> to vector<2x16x16xf32>
    %297 = arith.subf %293, %296 : vector<2x16x16xf32>
    %298 = math.exp %297 : vector<2x16x16xf32>
    %cst_136 = arith.constant dense<0.000000e+00> : vector<2x16xf32>
    %299 = vector.multi_reduction <add>, %298, %cst_136 [2] : vector<2x16x16xf32> to vector<2x16xf32>
    %300 = vector.shape_cast %299 : vector<2x16xf32> to vector<2x16x1xf32>
    %301 = vector.broadcast %300 : vector<2x16x1xf32> to vector<2x16x16xf32>
    %302 = arith.divf %298, %301 : vector<2x16x16xf32>
    "tpu.trace_start"() <{level = 10 : i32, message = "bqk,bkd->bqd"}> : () -> ()
    %cst_137 = arith.constant dense<0.000000e+00> : vector<2x16x8xf32>
    %303 = tpu.matmul %302, %287, %cst_137 {dimension_numbers = #tpu.dot_dimension_numbers<[2], [1], [1], [2], [0, 0, 0, 1, 1, 2], [0], [0]>} : vector<2x16x16xf32>, vector<2x16x8xf32>, vector<2x16x8xf32> -> vector<2x16x8xf32>
    "tpu.trace_stop"() : () -> ()
    %304 = vector.shape_cast %303 : vector<2x16x8xf32> to vector<32x8xf32>
    %305 = vector.extract_strided_slice %214 {offsets = [24, 0], sizes = [8, 32], strides = [1, 1]} : vector<32x32xf32> to vector<8x32xf32>
    %cst_138 = arith.constant dense<0.000000e+00> : vector<32x32xf32>
    %306 = tpu.matmul %304, %305, %cst_138 {dimension_numbers = #tpu.dot_dimension_numbers<[1], [0], [0], [1], [0, 0, 1, 1], [], []>} : vector<32x8xf32>, vector<8x32xf32>, vector<32x32xf32> -> vector<32x32xf32>
    %307 = arith.addf %284, %306 : vector<32x32xf32>
    %c0_139 = arith.constant 0 : index
    %c1_140 = arith.constant 1 : index
    %c0_141 = arith.constant 0 : index
    %c0_142 = arith.constant 0 : index
    %308 = vector.load %arg10[%c0_139, %c1_140, %c0_141, %c0_142] : memref<1x2x1x32xf32, #tpu.memory_space<vmem>>, vector<1x1x1x32xf32>
    %309 = vector.shape_cast %308 : vector<1x1x1x32xf32> to vector<1x32xf32>
    %310 = vector.broadcast %309 : vector<1x32xf32> to vector<32x32xf32>
    %311 = arith.addf %307, %310 : vector<32x32xf32>
    %312 = arith.addf %199, %311 : vector<32x32xf32>
    %c0_143 = arith.constant 0 : index
    %c1_144 = arith.constant 1 : index
    %c0_145 = arith.constant 0 : index
    %c0_146 = arith.constant 0 : index
    %313 = vector.load %arg11[%c0_143, %c1_144, %c0_145, %c0_146] : memref<1x2x1x32xf32, #tpu.memory_space<vmem>>, vector<1x1x1x32xf32>
    %314 = vector.shape_cast %313 : vector<1x1x1x32xf32> to vector<1x32xf32>
    %c0_147 = arith.constant 0 : index
    %c1_148 = arith.constant 1 : index
    %c0_149 = arith.constant 0 : index
    %c0_150 = arith.constant 0 : index
    %315 = vector.load %arg12[%c0_147, %c1_148, %c0_149, %c0_150] : memref<1x2x1x32xf32, #tpu.memory_space<vmem>>, vector<1x1x1x32xf32>
    %316 = vector.shape_cast %315 : vector<1x1x1x32xf32> to vector<1x32xf32>
    %cst_151 = arith.constant dense<0.000000e+00> : vector<32xf32>
    %317 = vector.multi_reduction <add>, %312, %cst_151 [1] : vector<32x32xf32> to vector<32xf32>
    %318 = vector.shape_cast %317 : vector<32xf32> to vector<32x1xf32>
    %cst_152 = arith.constant 3.200000e+01 : f32
    %319 = vector.broadcast %cst_152 : f32 to vector<32x1xf32>
    %320 = arith.divf %318, %319 : vector<32x1xf32>
    %321 = vector.broadcast %320 : vector<32x1xf32> to vector<32x32xf32>
    %322 = arith.subf %312, %321 : vector<32x32xf32>
    %323 = arith.mulf %322, %322 : vector<32x32xf32>
    %cst_153 = arith.constant dense<0.000000e+00> : vector<32xf32>
    %324 = vector.multi_reduction <add>, %323, %cst_153 [1] : vector<32x32xf32> to vector<32xf32>
    %325 = vector.shape_cast %324 : vector<32xf32> to vector<32x1xf32>
    %cst_154 = arith.constant 3.200000e+01 : f32
    %326 = vector.broadcast %cst_154 : f32 to vector<32x1xf32>
    %327 = arith.divf %325, %326 : vector<32x1xf32>
    %328 = vector.broadcast %320 : vector<32x1xf32> to vector<32x32xf32>
    %329 = arith.subf %312, %328 : vector<32x32xf32>
    %cst_155 = arith.constant 9.99999974E-6 : f32
    %330 = vector.broadcast %cst_155 : f32 to vector<32x1xf32>
    %331 = arith.addf %327, %330 : vector<32x1xf32>
    %332 = math.rsqrt %331 : vector<32x1xf32>
    %333 = vector.broadcast %332 : vector<32x1xf32> to vector<32x32xf32>
    %334 = arith.mulf %329, %333 : vector<32x32xf32>
    %335 = vector.broadcast %314 : vector<1x32xf32> to vector<32x32xf32>
    %336 = arith.mulf %334, %335 : vector<32x32xf32>
    %337 = vector.broadcast %316 : vector<1x32xf32> to vector<32x32xf32>
    %338 = arith.addf %336, %337 : vector<32x32xf32>
    %c0_156 = arith.constant 0 : index
    %c1_157 = arith.constant 1 : index
    %c0_158 = arith.constant 0 : index
    %c0_159 = arith.constant 0 : index
    %339 = vector.load %arg13[%c0_156, %c1_157, %c0_158, %c0_159] : memref<1x2x32x64xf32, #tpu.memory_space<vmem>>, vector<1x1x32x64xf32>
    %340 = vector.shape_cast %339 : vector<1x1x32x64xf32> to vector<32x64xf32>
    %cst_160 = arith.constant dense<0.000000e+00> : vector<32x64xf32>
    %341 = tpu.matmul %338, %340, %cst_160 {dimension_numbers = #tpu.dot_dimension_numbers<[1], [0], [0], [1], [0, 0, 1, 1], [], []>} : vector<32x32xf32>, vector<32x64xf32>, vector<32x64xf32> -> vector<32x64xf32>
    %c0_161 = arith.constant 0 : index
    %c1_162 = arith.constant 1 : index
    %c0_163 = arith.constant 0 : index
    %c0_164 = arith.constant 0 : index
    %342 = vector.load %arg14[%c0_161, %c1_162, %c0_163, %c0_164] : memref<1x2x1x64xf32, #tpu.memory_space<vmem>>, vector<1x1x1x64xf32>
    %343 = vector.shape_cast %342 : vector<1x1x1x64xf32> to vector<1x64xf32>
    %344 = vector.broadcast %343 : vector<1x64xf32> to vector<32x64xf32>
    %345 = arith.addf %341, %344 : vector<32x64xf32>
    %cst_165 = arith.constant 0.000000e+00 : f32
    %346 = vector.broadcast %cst_165 : f32 to vector<32x64xf32>
    %347 = arith.maximumf %345, %346 : vector<32x64xf32>
    %c0_166 = arith.constant 0 : index
    %c1_167 = arith.constant 1 : index
    %c0_168 = arith.constant 0 : index
    %c0_169 = arith.constant 0 : index
    %348 = vector.load %arg15[%c0_166, %c1_167, %c0_168, %c0_169] : memref<1x2x64x32xf32, #tpu.memory_space<vmem>>, vector<1x1x64x32xf32>
    %349 = vector.shape_cast %348 : vector<1x1x64x32xf32> to vector<64x32xf32>
    %cst_170 = arith.constant dense<0.000000e+00> : vector<32x32xf32>
    %350 = tpu.matmul %347, %349, %cst_170 {dimension_numbers = #tpu.dot_dimension_numbers<[1], [0], [0], [1], [0, 0, 1, 1], [], []>} : vector<32x64xf32>, vector<64x32xf32>, vector<32x32xf32> -> vector<32x32xf32>
    %c0_171 = arith.constant 0 : index
    %c1_172 = arith.constant 1 : index
    %c0_173 = arith.constant 0 : index
    %c0_174 = arith.constant 0 : index
    %351 = vector.load %arg16[%c0_171, %c1_172, %c0_173, %c0_174] : memref<1x2x1x32xf32, #tpu.memory_space<vmem>>, vector<1x1x1x32xf32>
    %352 = vector.shape_cast %351 : vector<1x1x1x32xf32> to vector<1x32xf32>
    %353 = vector.broadcast %352 : vector<1x32xf32> to vector<32x32xf32>
    %354 = arith.addf %350, %353 : vector<32x32xf32>
    %355 = arith.addf %338, %354 : vector<32x32xf32>
    %c0_175 = arith.constant 0 : index
    %c1_176 = arith.constant 1 : index
    %c0_177 = arith.constant 0 : index
    %c0_178 = arith.constant 0 : index
    %356 = vector.load %arg17[%c0_175, %c1_176, %c0_177, %c0_178] : memref<1x2x1x32xf32, #tpu.memory_space<vmem>>, vector<1x1x1x32xf32>
    %357 = vector.shape_cast %356 : vector<1x1x1x32xf32> to vector<1x32xf32>
    %c0_179 = arith.constant 0 : index
    %c1_180 = arith.constant 1 : index
    %c0_181 = arith.constant 0 : index
    %c0_182 = arith.constant 0 : index
    %358 = vector.load %arg18[%c0_179, %c1_180, %c0_181, %c0_182] : memref<1x2x1x32xf32, #tpu.memory_space<vmem>>, vector<1x1x1x32xf32>
    %359 = vector.shape_cast %358 : vector<1x1x1x32xf32> to vector<1x32xf32>
    %cst_183 = arith.constant dense<0.000000e+00> : vector<32xf32>
    %360 = vector.multi_reduction <add>, %355, %cst_183 [1] : vector<32x32xf32> to vector<32xf32>
    %361 = vector.shape_cast %360 : vector<32xf32> to vector<32x1xf32>
    %cst_184 = arith.constant 3.200000e+01 : f32
    %362 = vector.broadcast %cst_184 : f32 to vector<32x1xf32>
    %363 = arith.divf %361, %362 : vector<32x1xf32>
    %364 = vector.broadcast %363 : vector<32x1xf32> to vector<32x32xf32>
    %365 = arith.subf %355, %364 : vector<32x32xf32>
    %366 = arith.mulf %365, %365 : vector<32x32xf32>
    %cst_185 = arith.constant dense<0.000000e+00> : vector<32xf32>
    %367 = vector.multi_reduction <add>, %366, %cst_185 [1] : vector<32x32xf32> to vector<32xf32>
    %368 = vector.shape_cast %367 : vector<32xf32> to vector<32x1xf32>
    %cst_186 = arith.constant 3.200000e+01 : f32
    %369 = vector.broadcast %cst_186 : f32 to vector<32x1xf32>
    %370 = arith.divf %368, %369 : vector<32x1xf32>
    %371 = vector.broadcast %363 : vector<32x1xf32> to vector<32x32xf32>
    %372 = arith.subf %355, %371 : vector<32x32xf32>
    %cst_187 = arith.constant 9.99999974E-6 : f32
    %373 = vector.broadcast %cst_187 : f32 to vector<32x1xf32>
    %374 = arith.addf %370, %373 : vector<32x1xf32>
    %375 = math.rsqrt %374 : vector<32x1xf32>
    %376 = vector.broadcast %375 : vector<32x1xf32> to vector<32x32xf32>
    %377 = arith.mulf %372, %376 : vector<32x32xf32>
    %378 = vector.broadcast %357 : vector<1x32xf32> to vector<32x32xf32>
    %379 = arith.mulf %377, %378 : vector<32x32xf32>
    %380 = vector.broadcast %359 : vector<1x32xf32> to vector<32x32xf32>
    %381 = arith.addf %379, %380 : vector<32x32xf32>
    %382 = vector.shape_cast %381 : vector<32x32xf32> to vector<2x16x32xf32>
    %383 = vector.shape_cast %6 : vector<16x1xf32> to vector<1x16x1xf32>
    %384 = vector.broadcast %383 : vector<1x16x1xf32> to vector<2x16x32xf32>
    %385 = arith.mulf %382, %384 : vector<2x16x32xf32>
    %cst_188 = arith.constant dense<0.000000e+00> : vector<2x32xf32>
    %386 = vector.multi_reduction <add>, %385, %cst_188 [1] : vector<2x16x32xf32> to vector<2x32xf32>
    %c0_189 = arith.constant 0 : index
    %c0_190 = arith.constant 0 : index
    %c0_191 = arith.constant 0 : index
    %387 = vector.load %arg19[%c0_189, %c0_190, %c0_191] : memref<1x2x32xf32, #tpu.memory_space<vmem>>, vector<1x2x32xf32>
    %388 = vector.shape_cast %387 : vector<1x2x32xf32> to vector<2x32xf32>
    %389 = vector.shape_cast %386 : vector<2x32xf32> to vector<1x2x32xf32>
    tpu.vector_store %arg19[%c0_189, %c0_190, %c0_191], %389 {strides = array<i32>} : memref<1x2x32xf32, #tpu.memory_space<vmem>>, vector<1x2x32xf32>,
    return
  }
  func.func @transform_0(%arg0: i32) -> (i32, i32, i32, i32) {
    %c0_i32 = arith.constant 0 : i32
    %c0_i32_0 = arith.constant 0 : i32
    %c0_i32_1 = arith.constant 0 : i32
    %c0_i32_2 = arith.constant 0 : i32
    return %arg0, %c0_i32, %c0_i32_0, %c0_i32_1 : i32, i32, i32, i32
  }
  func.func @transform_1(%arg0: i32) -> (i32, i32) {
    %c0_i32 = arith.constant 0 : i32
    %c0_i32_0 = arith.constant 0 : i32
    %c0_i32_1 = arith.constant 0 : i32
    return %c0_i32, %c0_i32_0 : i32, i32
  }
  func.func @transform_2(%arg0: i32) -> (i32, i32, i32) {
    %c0_i32 = arith.constant 0 : i32
    %c0_i32_0 = arith.constant 0 : i32
    %c0_i32_1 = arith.constant 0 : i32
    return %arg0, %c0_i32, %c0_i32_0 : i32, i32, i32
  }
  func.func @transform_3(%arg0: i32) -> (i32, i32, i32) {
    %c0_i32 = arith.constant 0 : i32
    %c0_i32_0 = arith.constant 0 : i32
    %c0_i32_1 = arith.constant 0 : i32
    return %arg0, %c0_i32, %c0_i32_0 : i32, i32, i32
  }
  func.func @transform_4(%arg0: i32) -> (i32, i32) {
    %c0_i32 = arith.constant 0 : i32
    %c0_i32_0 = arith.constant 0 : i32
    %c0_i32_1 = arith.constant 0 : i32
    return %c0_i32, %c0_i32_0 : i32, i32
  }
  func.func @transform_5(%arg0: i32) -> (i32, i32) {
    %c0_i32 = arith.constant 0 : i32
    %c0_i32_0 = arith.constant 0 : i32
    %c0_i32_1 = arith.constant 0 : i32
    return %c0_i32, %c0_i32_0 : i32, i32
  }
  func.func @transform_6(%arg0: i32) -> (i32, i32, i32, i32) {
    %c0_i32 = arith.constant 0 : i32
    %c0_i32_0 = arith.constant 0 : i32
    %c0_i32_1 = arith.constant 0 : i32
    %c0_i32_2 = arith.constant 0 : i32
    return %arg0, %c0_i32, %c0_i32_0, %c0_i32_1 : i32, i32, i32, i32
  }
  func.func @transform_7(%arg0: i32) -> (i32, i32, i32, i32) {
    %c0_i32 = arith.constant 0 : i32
    %c0_i32_0 = arith.constant 0 : i32
    %c0_i32_1 = arith.constant 0 : i32
    %c0_i32_2 = arith.constant 0 : i32
    return %arg0, %c0_i32, %c0_i32_0, %c0_i32_1 : i32, i32, i32, i32
  }
  func.func @transform_8(%arg0: i32) -> (i32, i32, i32, i32) {
    %c0_i32 = arith.constant 0 : i32
    %c0_i32_0 = arith.constant 0 : i32
    %c0_i32_1 = arith.constant 0 : i32
    %c0_i32_2 = arith.constant 0 : i32
    return %arg0, %c0_i32, %c0_i32_0, %c0_i32_1 : i32, i32, i32, i32
  }
  func.func @transform_9(%arg0: i32) -> (i32, i32, i32, i32) {
    %c0_i32 = arith.constant 0 : i32
    %c0_i32_0 = arith.constant 0 : i32
    %c0_i32_1 = arith.constant 0 : i32
    %c0_i32_2 = arith.constant 0 : i32
    return %arg0, %c0_i32, %c0_i32_0, %c0_i32_1 : i32, i32, i32, i32
  }
  func.func @transform_10(%arg0: i32) -> (i32, i32, i32, i32) {
    %c0_i32 = arith.constant 0 : i32
    %c0_i32_0 = arith.constant 0 : i32
    %c0_i32_1 = arith.constant 0 : i32
    %c0_i32_2 = arith.constant 0 : i32
    return %arg0, %c0_i32, %c0_i32_0, %c0_i32_1 : i32, i32, i32, i32
  }
  func.func @transform_11(%arg0: i32) -> (i32, i32, i32, i32) {
    %c0_i32 = arith.constant 0 : i32
    %c0_i32_0 = arith.constant 0 : i32
    %c0_i32_1 = arith.constant 0 : i32
    %c0_i32_2 = arith.constant 0 : i32
    return %arg0, %c0_i32, %c0_i32_0, %c0_i32_1 : i32, i32, i32, i32
  }
  func.func @transform_12(%arg0: i32) -> (i32, i32, i32, i32) {
    %c0_i32 = arith.constant 0 : i32
    %c0_i32_0 = arith.constant 0 : i32
    %c0_i32_1 = arith.constant 0 : i32
    %c0_i32_2 = arith.constant 0 : i32
    return %arg0, %c0_i32, %c0_i32_0, %c0_i32_1 : i32, i32, i32, i32
  }
  func.func @transform_13(%arg0: i32) -> (i32, i32, i32, i32) {
    %c0_i32 = arith.constant 0 : i32
    %c0_i32_0 = arith.constant 0 : i32
    %c0_i32_1 = arith.constant 0 : i32
    %c0_i32_2 = arith.constant 0 : i32
    return %arg0, %c0_i32, %c0_i32_0, %c0_i32_1 : i32, i32, i32, i32
  }
  func.func @transform_14(%arg0: i32) -> (i32, i32, i32, i32) {
    %c0_i32 = arith.constant 0 : i32
    %c0_i32_0 = arith.constant 0 : i32
    %c0_i32_1 = arith.constant 0 : i32
    %c0_i32_2 = arith.constant 0 : i32
    return %arg0, %c0_i32, %c0_i32_0, %c0_i32_1 : i32, i32, i32, i32
  }
  func.func @transform_15(%arg0: i32) -> (i32, i32, i32, i32) {
    %c0_i32 = arith.constant 0 : i32
    %c0_i32_0 = arith.constant 0 : i32
    %c0_i32_1 = arith.constant 0 : i32
    %c0_i32_2 = arith.constant 0 : i32
    return %arg0, %c0_i32, %c0_i32_0, %c0_i32_1 : i32, i32, i32, i32
  }
  func.func @transform_16(%arg0: i32) -> (i32, i32, i32, i32) {
    %c0_i32 = arith.constant 0 : i32
    %c0_i32_0 = arith.constant 0 : i32
    %c0_i32_1 = arith.constant 0 : i32
    %c0_i32_2 = arith.constant 0 : i32
    return %arg0, %c0_i32, %c0_i32_0, %c0_i32_1 : i32, i32, i32, i32
  }
  func.func @transform_17(%arg0: i32) -> (i32, i32, i32, i32) {
    %c0_i32 = arith.constant 0 : i32
    %c0_i32_0 = arith.constant 0 : i32
    %c0_i32_1 = arith.constant 0 : i32
    %c0_i32_2 = arith.constant 0 : i32
    return %arg0, %c0_i32, %c0_i32_0, %c0_i32_1 : i32, i32, i32, i32
  }
  func.func @transform_18(%arg0: i32) -> (i32, i32, i32) {
    %c0_i32 = arith.constant 0 : i32
    %c0_i32_0 = arith.constant 0 : i32
    %c0_i32_1 = arith.constant 0 : i32
    return %arg0, %c0_i32, %c0_i32_0 : i32, i32, i32
  }
}

module attributes {stable_mosaic.version = 11 : i64} {
  func.func @kernel(%arg0: memref<3x2x32xf32, #tpu.memory_space<vmem>>, %arg1: memref<96x32xf32, #tpu.memory_space<vmem>>, %arg2: memref<1x32xf32, #tpu.memory_space<vmem>>, %arg3: memref<32x4xf32, #tpu.memory_space<vmem>>, %arg4: memref<1x4xf32, #tpu.memory_space<vmem>>, %arg5: memref<32x16xf32, #tpu.memory_space<vmem>>, %arg6: memref<1x16xf32, #tpu.memory_space<vmem>>, %arg7: memref<16x1xf32, #tpu.memory_space<vmem>>, %arg8: memref<1x1xf32, #tpu.memory_space<vmem>>, %arg9: memref<96x16xf32, #tpu.memory_space<vmem>>, %arg10: memref<1x16xf32, #tpu.memory_space<vmem>>, %arg11: memref<16x64xf32, #tpu.memory_space<vmem>>, %arg12: memref<1x64xf32, #tpu.memory_space<vmem>>, %arg13: memref<16x64xf32, #tpu.memory_space<vmem>>, %arg14: memref<16x1xf32, #tpu.memory_space<vmem>>, %arg15: memref<1x1xf32, #tpu.memory_space<vmem>>, %arg16: memref<2x128xf32, #tpu.memory_space<vmem>>) attributes {dimension_semantics = [], scalar_prefetch = 0 : i64, scratch_operands = 0 : i64, tpu.core_type = #tpu.core_type<tc>} {
    %c0 = arith.constant 0 : index
    %c0_0 = arith.constant 0 : index
    %c0_1 = arith.constant 0 : index
    %0 = vector.load %arg0[%c0, %c0_0, %c0_1] : memref<3x2x32xf32, #tpu.memory_space<vmem>>, vector<3x2x32xf32>
    %1 = vector.extract_strided_slice %0 {offsets = [0, 0, 0], sizes = [1, 2, 32], strides = [1, 1, 1]} : vector<3x2x32xf32> to vector<1x2x32xf32>
    %2 = vector.shape_cast %1 : vector<1x2x32xf32> to vector<2x32xf32>
    %3 = vector.extract_strided_slice %0 {offsets = [0, 0, 0], sizes = [1, 2, 32], strides = [1, 1, 1]} : vector<3x2x32xf32> to vector<1x2x32xf32>
    %4 = vector.shape_cast %3 : vector<1x2x32xf32> to vector<2x32xf32>
    %5 = vector.extract_strided_slice %0 {offsets = [1, 0, 0], sizes = [1, 2, 32], strides = [1, 1, 1]} : vector<3x2x32xf32> to vector<1x2x32xf32>
    %6 = vector.shape_cast %5 : vector<1x2x32xf32> to vector<2x32xf32>
    %7 = vector.extract_strided_slice %0 {offsets = [2, 0, 0], sizes = [1, 2, 32], strides = [1, 1, 1]} : vector<3x2x32xf32> to vector<1x2x32xf32>
    %8 = vector.shape_cast %7 : vector<1x2x32xf32> to vector<2x32xf32>
    %9 = tpu.concatenate %4, %6, %8 in 1 : vector<2x32xf32>, vector<2x32xf32>, vector<2x32xf32> -> vector<2x96xf32>
    %c0_2 = arith.constant 0 : index
    %c0_3 = arith.constant 0 : index
    %10 = vector.load %arg1[%c0_2, %c0_3] : memref<96x32xf32, #tpu.memory_space<vmem>>, vector<96x32xf32>
    %c0_4 = arith.constant 0 : index
    %c0_5 = arith.constant 0 : index
    %11 = vector.load %arg2[%c0_4, %c0_5] : memref<1x32xf32, #tpu.memory_space<vmem>>, vector<1x32xf32>
    %cst = arith.constant dense<0.000000e+00> : vector<2x32xf32>
    %12 = tpu.matmul %9, %10, %cst {dimension_numbers = #tpu.dot_dimension_numbers<[1], [0], [0], [1], [0, 0, 1, 1], [], []>} : vector<2x96xf32>, vector<96x32xf32>, vector<2x32xf32> -> vector<2x32xf32>
    %13 = vector.broadcast %11 : vector<1x32xf32> to vector<2x32xf32>
    %14 = arith.addf %12, %13 : vector<2x32xf32>
    %cst_6 = arith.constant 0.000000e+00 : f32
    %15 = vector.broadcast %cst_6 : f32 to vector<2x32xf32>
    %16 = arith.cmpf ogt, %14, %15 : vector<2x32xf32>
    %cst_7 = arith.constant 0.00999999977 : f32
    %17 = vector.broadcast %cst_7 : f32 to vector<2x32xf32>
    %18 = arith.mulf %17, %14 : vector<2x32xf32>
    %19 = arith.select %16, %14, %18 : vector<2x32xi1>, vector<2x32xf32>
    %c0_8 = arith.constant 0 : index
    %c0_9 = arith.constant 0 : index
    %20 = vector.load %arg3[%c0_8, %c0_9] : memref<32x4xf32, #tpu.memory_space<vmem>>, vector<32x4xf32>
    %c0_10 = arith.constant 0 : index
    %c0_11 = arith.constant 0 : index
    %21 = vector.load %arg4[%c0_10, %c0_11] : memref<1x4xf32, #tpu.memory_space<vmem>>, vector<1x4xf32>
    %cst_12 = arith.constant dense<0.000000e+00> : vector<2x4xf32>
    %22 = tpu.matmul %19, %20, %cst_12 {dimension_numbers = #tpu.dot_dimension_numbers<[1], [0], [0], [1], [0, 0, 1, 1], [], []>} : vector<2x32xf32>, vector<32x4xf32>, vector<2x4xf32> -> vector<2x4xf32>
    %23 = vector.broadcast %21 : vector<1x4xf32> to vector<2x4xf32>
    %24 = arith.addf %22, %23 : vector<2x4xf32>
    %cst_13 = arith.constant dense<0xFF800000> : vector<2xf32>
    %25 = vector.multi_reduction <maximumf>, %24, %cst_13 [1] : vector<2x4xf32> to vector<2xf32>
    %26 = vector.shape_cast %25 : vector<2xf32> to vector<2x1xf32>
    %27 = vector.broadcast %26 : vector<2x1xf32> to vector<2x4xf32>
    %28 = arith.subf %24, %27 : vector<2x4xf32>
    %29 = math.exp %28 : vector<2x4xf32>
    %cst_14 = arith.constant dense<0.000000e+00> : vector<2xf32>
    %30 = vector.multi_reduction <add>, %29, %cst_14 [1] : vector<2x4xf32> to vector<2xf32>
    %31 = vector.shape_cast %30 : vector<2xf32> to vector<2x1xf32>
    %32 = vector.broadcast %31 : vector<2x1xf32> to vector<2x4xf32>
    %33 = arith.divf %29, %32 : vector<2x4xf32>
    %c0_15 = arith.constant 0 : index
    %c0_16 = arith.constant 0 : index
    %34 = vector.load %arg5[%c0_15, %c0_16] : memref<32x16xf32, #tpu.memory_space<vmem>>, vector<32x16xf32>
    %c0_17 = arith.constant 0 : index
    %c0_18 = arith.constant 0 : index
    %35 = vector.load %arg6[%c0_17, %c0_18] : memref<1x16xf32, #tpu.memory_space<vmem>>, vector<1x16xf32>
    %cst_19 = arith.constant dense<0.000000e+00> : vector<2x16xf32>
    %36 = tpu.matmul %2, %34, %cst_19 {dimension_numbers = #tpu.dot_dimension_numbers<[1], [0], [0], [1], [0, 0, 1, 1], [], []>} : vector<2x32xf32>, vector<32x16xf32>, vector<2x16xf32> -> vector<2x16xf32>
    %37 = vector.broadcast %35 : vector<1x16xf32> to vector<2x16xf32>
    %38 = arith.addf %36, %37 : vector<2x16xf32>
    %cst_20 = arith.constant 0.000000e+00 : f32
    %39 = vector.broadcast %cst_20 : f32 to vector<2x16xf32>
    %40 = arith.cmpf ogt, %38, %39 : vector<2x16xf32>
    %cst_21 = arith.constant 0.00999999977 : f32
    %41 = vector.broadcast %cst_21 : f32 to vector<2x16xf32>
    %42 = arith.mulf %41, %38 : vector<2x16xf32>
    %43 = arith.select %40, %38, %42 : vector<2x16xi1>, vector<2x16xf32>
    %c0_22 = arith.constant 0 : index
    %c0_23 = arith.constant 0 : index
    %44 = vector.load %arg7[%c0_22, %c0_23] : memref<16x1xf32, #tpu.memory_space<vmem>>, vector<16x1xf32>
    %c0_24 = arith.constant 0 : index
    %c0_25 = arith.constant 0 : index
    %45 = vector.load %arg8[%c0_24, %c0_25] : memref<1x1xf32, #tpu.memory_space<vmem>>, vector<1x1xf32>
    %cst_26 = arith.constant dense<0.000000e+00> : vector<2x1xf32>
    %46 = tpu.matmul %43, %44, %cst_26 {dimension_numbers = #tpu.dot_dimension_numbers<[1], [0], [0], [1], [0, 0, 1, 1], [], []>} : vector<2x16xf32>, vector<16x1xf32>, vector<2x1xf32> -> vector<2x1xf32>
    %47 = vector.broadcast %45 : vector<1x1xf32> to vector<2x1xf32>
    %48 = arith.addf %46, %47 : vector<2x1xf32>
    %49 = arith.negf %48 : vector<2x1xf32>
    %50 = math.exp %49 : vector<2x1xf32>
    %cst_27 = arith.constant 1.000000e+00 : f32
    %51 = vector.broadcast %cst_27 : f32 to vector<2x1xf32>
    %52 = arith.addf %51, %50 : vector<2x1xf32>
    %53 = arith.divf %51, %52 : vector<2x1xf32>
    %cst_28 = arith.constant 6.000000e+01 : f32
    %54 = vector.broadcast %cst_28 : f32 to vector<2x1xf32>
    %55 = arith.mulf %53, %54 : vector<2x1xf32>
    %c0_29 = arith.constant 0 : index
    %c0_30 = arith.constant 0 : index
    %56 = vector.load %arg9[%c0_29, %c0_30] : memref<96x16xf32, #tpu.memory_space<vmem>>, vector<96x16xf32>
    %c0_31 = arith.constant 0 : index
    %c0_32 = arith.constant 0 : index
    %57 = vector.load %arg10[%c0_31, %c0_32] : memref<1x16xf32, #tpu.memory_space<vmem>>, vector<1x16xf32>
    %c0_33 = arith.constant 0 : index
    %c0_34 = arith.constant 0 : index
    %58 = vector.load %arg11[%c0_33, %c0_34] : memref<16x64xf32, #tpu.memory_space<vmem>>, vector<16x64xf32>
    %c0_35 = arith.constant 0 : index
    %c0_36 = arith.constant 0 : index
    %59 = vector.load %arg12[%c0_35, %c0_36] : memref<1x64xf32, #tpu.memory_space<vmem>>, vector<1x64xf32>
    %c0_37 = arith.constant 0 : index
    %c0_38 = arith.constant 0 : index
    %60 = vector.load %arg13[%c0_37, %c0_38] : memref<16x64xf32, #tpu.memory_space<vmem>>, vector<16x64xf32>
    %c0_39 = arith.constant 0 : index
    %c0_40 = arith.constant 0 : index
    %61 = vector.load %arg14[%c0_39, %c0_40] : memref<16x1xf32, #tpu.memory_space<vmem>>, vector<16x1xf32>
    %c0_41 = arith.constant 0 : index
    %c0_42 = arith.constant 0 : index
    %62 = vector.load %arg15[%c0_41, %c0_42] : memref<1x1xf32, #tpu.memory_space<vmem>>, vector<1x1xf32>
    %cst_43 = arith.constant dense<0.000000e+00> : vector<2x16xf32>
    %63 = tpu.matmul %9, %56, %cst_43 {dimension_numbers = #tpu.dot_dimension_numbers<[1], [0], [0], [1], [0, 0, 1, 1], [], []>} : vector<2x96xf32>, vector<96x16xf32>, vector<2x16xf32> -> vector<2x16xf32>
    %64 = vector.broadcast %57 : vector<1x16xf32> to vector<2x16xf32>
    %65 = arith.addf %63, %64 : vector<2x16xf32>
    %cst_44 = arith.constant 0.000000e+00 : f32
    %66 = vector.broadcast %cst_44 : f32 to vector<2x16xf32>
    %67 = arith.maximumf %65, %66 : vector<2x16xf32>
    %cst_45 = arith.constant dense<0.000000e+00> : vector<2x64xf32>
    %68 = tpu.matmul %67, %58, %cst_45 {dimension_numbers = #tpu.dot_dimension_numbers<[1], [0], [0], [1], [0, 0, 1, 1], [], []>} : vector<2x16xf32>, vector<16x64xf32>, vector<2x64xf32> -> vector<2x64xf32>
    %69 = vector.broadcast %59 : vector<1x64xf32> to vector<2x64xf32>
    %70 = arith.addf %68, %69 : vector<2x64xf32>
    %71 = vector.extract_strided_slice %70 {offsets = [0, 0], sizes = [2, 16], strides = [1, 1]} : vector<2x64xf32> to vector<2x16xf32>
    %72 = vector.extract_strided_slice %70 {offsets = [0, 16], sizes = [2, 16], strides = [1, 1]} : vector<2x64xf32> to vector<2x16xf32>
    %73 = vector.extract_strided_slice %70 {offsets = [0, 32], sizes = [2, 16], strides = [1, 1]} : vector<2x64xf32> to vector<2x16xf32>
    %74 = vector.extract_strided_slice %70 {offsets = [0, 48], sizes = [2, 16], strides = [1, 1]} : vector<2x64xf32> to vector<2x16xf32>
    %75 = vector.extract_strided_slice %60 {offsets = [0, 0], sizes = [16, 16], strides = [1, 1]} : vector<16x64xf32> to vector<16x16xf32>
    %76 = vector.extract_strided_slice %60 {offsets = [0, 16], sizes = [16, 16], strides = [1, 1]} : vector<16x64xf32> to vector<16x16xf32>
    %77 = vector.extract_strided_slice %60 {offsets = [0, 32], sizes = [16, 16], strides = [1, 1]} : vector<16x64xf32> to vector<16x16xf32>
    %78 = vector.extract_strided_slice %60 {offsets = [0, 48], sizes = [16, 16], strides = [1, 1]} : vector<16x64xf32> to vector<16x16xf32>
    %cst_46 = arith.constant 0.000000e+00 : f32
    %79 = vector.broadcast %cst_46 : f32 to vector<2x16xf32>
    %cst_47 = arith.constant 0.000000e+00 : f32
    %80 = vector.broadcast %cst_47 : f32 to vector<2x16xf32>
    %cst_48 = arith.constant dense<0.000000e+00> : vector<2x16xf32>
    %81 = tpu.matmul %79, %75, %cst_48 {dimension_numbers = #tpu.dot_dimension_numbers<[1], [0], [0], [1], [0, 0, 1, 1], [], []>} : vector<2x16xf32>, vector<16x16xf32>, vector<2x16xf32> -> vector<2x16xf32>
    %82 = arith.addf %71, %81 : vector<2x16xf32>
    %83 = arith.negf %82 : vector<2x16xf32>
    %84 = math.exp %83 : vector<2x16xf32>
    %cst_49 = arith.constant 1.000000e+00 : f32
    %85 = vector.broadcast %cst_49 : f32 to vector<2x16xf32>
    %86 = arith.addf %85, %84 : vector<2x16xf32>
    %87 = arith.divf %85, %86 : vector<2x16xf32>
    %cst_50 = arith.constant dense<0.000000e+00> : vector<2x16xf32>
    %88 = tpu.matmul %79, %76, %cst_50 {dimension_numbers = #tpu.dot_dimension_numbers<[1], [0], [0], [1], [0, 0, 1, 1], [], []>} : vector<2x16xf32>, vector<16x16xf32>, vector<2x16xf32> -> vector<2x16xf32>
    %89 = arith.addf %72, %88 : vector<2x16xf32>
    %90 = arith.negf %89 : vector<2x16xf32>
    %91 = math.exp %90 : vector<2x16xf32>
    %cst_51 = arith.constant 1.000000e+00 : f32
    %92 = vector.broadcast %cst_51 : f32 to vector<2x16xf32>
    %93 = arith.addf %92, %91 : vector<2x16xf32>
    %94 = arith.divf %92, %93 : vector<2x16xf32>
    %cst_52 = arith.constant dense<0.000000e+00> : vector<2x16xf32>
    %95 = tpu.matmul %79, %77, %cst_52 {dimension_numbers = #tpu.dot_dimension_numbers<[1], [0], [0], [1], [0, 0, 1, 1], [], []>} : vector<2x16xf32>, vector<16x16xf32>, vector<2x16xf32> -> vector<2x16xf32>
    %96 = arith.addf %73, %95 : vector<2x16xf32>
    %97 = math.tanh %96 : vector<2x16xf32>
    %cst_53 = arith.constant dense<0.000000e+00> : vector<2x16xf32>
    %98 = tpu.matmul %79, %78, %cst_53 {dimension_numbers = #tpu.dot_dimension_numbers<[1], [0], [0], [1], [0, 0, 1, 1], [], []>} : vector<2x16xf32>, vector<16x16xf32>, vector<2x16xf32> -> vector<2x16xf32>
    %99 = arith.addf %74, %98 : vector<2x16xf32>
    %100 = arith.negf %99 : vector<2x16xf32>
    %101 = math.exp %100 : vector<2x16xf32>
    %cst_54 = arith.constant 1.000000e+00 : f32
    %102 = vector.broadcast %cst_54 : f32 to vector<2x16xf32>
    %103 = arith.addf %102, %101 : vector<2x16xf32>
    %104 = arith.divf %102, %103 : vector<2x16xf32>
    %105 = arith.mulf %94, %80 : vector<2x16xf32>
    %106 = arith.mulf %87, %97 : vector<2x16xf32>
    %107 = arith.addf %105, %106 : vector<2x16xf32>
    %108 = math.tanh %107 : vector<2x16xf32>
    %109 = arith.mulf %104, %108 : vector<2x16xf32>
    %cst_55 = arith.constant 0.000000e+00 : f32
    %110 = vector.broadcast %cst_55 : f32 to vector<2x16xf32>
    %111 = arith.maximumf %109, %110 : vector<2x16xf32>
    %cst_56 = arith.constant dense<0.000000e+00> : vector<2x1xf32>
    %112 = tpu.matmul %111, %61, %cst_56 {dimension_numbers = #tpu.dot_dimension_numbers<[1], [0], [0], [1], [0, 0, 1, 1], [], []>} : vector<2x16xf32>, vector<16x1xf32>, vector<2x1xf32> -> vector<2x1xf32>
    %113 = vector.broadcast %62 : vector<1x1xf32> to vector<2x1xf32>
    %114 = arith.addf %112, %113 : vector<2x1xf32>
    %115 = math.tanh %114 : vector<2x1xf32>
    %cst_57 = arith.constant 1.000000e+01 : f32
    %116 = vector.broadcast %cst_57 : f32 to vector<2x1xf32>
    %117 = arith.mulf %115, %116 : vector<2x1xf32>
    %cst_58 = arith.constant dense<0.000000e+00> : vector<2x16xf32>
    %118 = tpu.matmul %109, %75, %cst_58 {dimension_numbers = #tpu.dot_dimension_numbers<[1], [0], [0], [1], [0, 0, 1, 1], [], []>} : vector<2x16xf32>, vector<16x16xf32>, vector<2x16xf32> -> vector<2x16xf32>
    %119 = arith.addf %71, %118 : vector<2x16xf32>
    %120 = arith.negf %119 : vector<2x16xf32>
    %121 = math.exp %120 : vector<2x16xf32>
    %cst_59 = arith.constant 1.000000e+00 : f32
    %122 = vector.broadcast %cst_59 : f32 to vector<2x16xf32>
    %123 = arith.addf %122, %121 : vector<2x16xf32>
    %124 = arith.divf %122, %123 : vector<2x16xf32>
    %cst_60 = arith.constant dense<0.000000e+00> : vector<2x16xf32>
    %125 = tpu.matmul %109, %76, %cst_60 {dimension_numbers = #tpu.dot_dimension_numbers<[1], [0], [0], [1], [0, 0, 1, 1], [], []>} : vector<2x16xf32>, vector<16x16xf32>, vector<2x16xf32> -> vector<2x16xf32>
    %126 = arith.addf %72, %125 : vector<2x16xf32>
    %127 = arith.negf %126 : vector<2x16xf32>
    %128 = math.exp %127 : vector<2x16xf32>
    %cst_61 = arith.constant 1.000000e+00 : f32
    %129 = vector.broadcast %cst_61 : f32 to vector<2x16xf32>
    %130 = arith.addf %129, %128 : vector<2x16xf32>
    %131 = arith.divf %129, %130 : vector<2x16xf32>
    %cst_62 = arith.constant dense<0.000000e+00> : vector<2x16xf32>
    %132 = tpu.matmul %109, %77, %cst_62 {dimension_numbers = #tpu.dot_dimension_numbers<[1], [0], [0], [1], [0, 0, 1, 1], [], []>} : vector<2x16xf32>, vector<16x16xf32>, vector<2x16xf32> -> vector<2x16xf32>
    %133 = arith.addf %73, %132 : vector<2x16xf32>
    %134 = math.tanh %133 : vector<2x16xf32>
    %cst_63 = arith.constant dense<0.000000e+00> : vector<2x16xf32>
    %135 = tpu.matmul %109, %78, %cst_63 {dimension_numbers = #tpu.dot_dimension_numbers<[1], [0], [0], [1], [0, 0, 1, 1], [], []>} : vector<2x16xf32>, vector<16x16xf32>, vector<2x16xf32> -> vector<2x16xf32>
    %136 = arith.addf %74, %135 : vector<2x16xf32>
    %137 = arith.negf %136 : vector<2x16xf32>
    %138 = math.exp %137 : vector<2x16xf32>
    %cst_64 = arith.constant 1.000000e+00 : f32
    %139 = vector.broadcast %cst_64 : f32 to vector<2x16xf32>
    %140 = arith.addf %139, %138 : vector<2x16xf32>
    %141 = arith.divf %139, %140 : vector<2x16xf32>
    %142 = arith.mulf %131, %107 : vector<2x16xf32>
    %143 = arith.mulf %124, %134 : vector<2x16xf32>
    %144 = arith.addf %142, %143 : vector<2x16xf32>
    %145 = math.tanh %144 : vector<2x16xf32>
    %146 = arith.mulf %141, %145 : vector<2x16xf32>
    %cst_65 = arith.constant 0.000000e+00 : f32
    %147 = vector.broadcast %cst_65 : f32 to vector<2x16xf32>
    %148 = arith.maximumf %146, %147 : vector<2x16xf32>
    %cst_66 = arith.constant dense<0.000000e+00> : vector<2x1xf32>
    %149 = tpu.matmul %148, %61, %cst_66 {dimension_numbers = #tpu.dot_dimension_numbers<[1], [0], [0], [1], [0, 0, 1, 1], [], []>} : vector<2x16xf32>, vector<16x1xf32>, vector<2x1xf32> -> vector<2x1xf32>
    %150 = vector.broadcast %62 : vector<1x1xf32> to vector<2x1xf32>
    %151 = arith.addf %149, %150 : vector<2x1xf32>
    %152 = math.tanh %151 : vector<2x1xf32>
    %cst_67 = arith.constant 1.000000e+01 : f32
    %153 = vector.broadcast %cst_67 : f32 to vector<2x1xf32>
    %154 = arith.mulf %152, %153 : vector<2x1xf32>
    %cst_68 = arith.constant dense<0.000000e+00> : vector<2x16xf32>
    %155 = tpu.matmul %146, %75, %cst_68 {dimension_numbers = #tpu.dot_dimension_numbers<[1], [0], [0], [1], [0, 0, 1, 1], [], []>} : vector<2x16xf32>, vector<16x16xf32>, vector<2x16xf32> -> vector<2x16xf32>
    %156 = arith.addf %71, %155 : vector<2x16xf32>
    %157 = arith.negf %156 : vector<2x16xf32>
    %158 = math.exp %157 : vector<2x16xf32>
    %cst_69 = arith.constant 1.000000e+00 : f32
    %159 = vector.broadcast %cst_69 : f32 to vector<2x16xf32>
    %160 = arith.addf %159, %158 : vector<2x16xf32>
    %161 = arith.divf %159, %160 : vector<2x16xf32>
    %cst_70 = arith.constant dense<0.000000e+00> : vector<2x16xf32>
    %162 = tpu.matmul %146, %76, %cst_70 {dimension_numbers = #tpu.dot_dimension_numbers<[1], [0], [0], [1], [0, 0, 1, 1], [], []>} : vector<2x16xf32>, vector<16x16xf32>, vector<2x16xf32> -> vector<2x16xf32>
    %163 = arith.addf %72, %162 : vector<2x16xf32>
    %164 = arith.negf %163 : vector<2x16xf32>
    %165 = math.exp %164 : vector<2x16xf32>
    %cst_71 = arith.constant 1.000000e+00 : f32
    %166 = vector.broadcast %cst_71 : f32 to vector<2x16xf32>
    %167 = arith.addf %166, %165 : vector<2x16xf32>
    %168 = arith.divf %166, %167 : vector<2x16xf32>
    %cst_72 = arith.constant dense<0.000000e+00> : vector<2x16xf32>
    %169 = tpu.matmul %146, %77, %cst_72 {dimension_numbers = #tpu.dot_dimension_numbers<[1], [0], [0], [1], [0, 0, 1, 1], [], []>} : vector<2x16xf32>, vector<16x16xf32>, vector<2x16xf32> -> vector<2x16xf32>
    %170 = arith.addf %73, %169 : vector<2x16xf32>
    %171 = math.tanh %170 : vector<2x16xf32>
    %cst_73 = arith.constant dense<0.000000e+00> : vector<2x16xf32>
    %172 = tpu.matmul %146, %78, %cst_73 {dimension_numbers = #tpu.dot_dimension_numbers<[1], [0], [0], [1], [0, 0, 1, 1], [], []>} : vector<2x16xf32>, vector<16x16xf32>, vector<2x16xf32> -> vector<2x16xf32>
    %173 = arith.addf %74, %172 : vector<2x16xf32>
    %174 = arith.negf %173 : vector<2x16xf32>
    %175 = math.exp %174 : vector<2x16xf32>
    %cst_74 = arith.constant 1.000000e+00 : f32
    %176 = vector.broadcast %cst_74 : f32 to vector<2x16xf32>
    %177 = arith.addf %176, %175 : vector<2x16xf32>
    %178 = arith.divf %176, %177 : vector<2x16xf32>
    %179 = arith.mulf %168, %144 : vector<2x16xf32>
    %180 = arith.mulf %161, %171 : vector<2x16xf32>
    %181 = arith.addf %179, %180 : vector<2x16xf32>
    %182 = math.tanh %181 : vector<2x16xf32>
    %183 = arith.mulf %178, %182 : vector<2x16xf32>
    %cst_75 = arith.constant 0.000000e+00 : f32
    %184 = vector.broadcast %cst_75 : f32 to vector<2x16xf32>
    %185 = arith.maximumf %183, %184 : vector<2x16xf32>
    %cst_76 = arith.constant dense<0.000000e+00> : vector<2x1xf32>
    %186 = tpu.matmul %185, %61, %cst_76 {dimension_numbers = #tpu.dot_dimension_numbers<[1], [0], [0], [1], [0, 0, 1, 1], [], []>} : vector<2x16xf32>, vector<16x1xf32>, vector<2x1xf32> -> vector<2x1xf32>
    %187 = vector.broadcast %62 : vector<1x1xf32> to vector<2x1xf32>
    %188 = arith.addf %186, %187 : vector<2x1xf32>
    %189 = math.tanh %188 : vector<2x1xf32>
    %cst_77 = arith.constant 1.000000e+01 : f32
    %190 = vector.broadcast %cst_77 : f32 to vector<2x1xf32>
    %191 = arith.mulf %189, %190 : vector<2x1xf32>
    %cst_78 = arith.constant dense<0.000000e+00> : vector<2x16xf32>
    %192 = tpu.matmul %183, %75, %cst_78 {dimension_numbers = #tpu.dot_dimension_numbers<[1], [0], [0], [1], [0, 0, 1, 1], [], []>} : vector<2x16xf32>, vector<16x16xf32>, vector<2x16xf32> -> vector<2x16xf32>
    %193 = arith.addf %71, %192 : vector<2x16xf32>
    %194 = arith.negf %193 : vector<2x16xf32>
    %195 = math.exp %194 : vector<2x16xf32>
    %cst_79 = arith.constant 1.000000e+00 : f32
    %196 = vector.broadcast %cst_79 : f32 to vector<2x16xf32>
    %197 = arith.addf %196, %195 : vector<2x16xf32>
    %198 = arith.divf %196, %197 : vector<2x16xf32>
    %cst_80 = arith.constant dense<0.000000e+00> : vector<2x16xf32>
    %199 = tpu.matmul %183, %76, %cst_80 {dimension_numbers = #tpu.dot_dimension_numbers<[1], [0], [0], [1], [0, 0, 1, 1], [], []>} : vector<2x16xf32>, vector<16x16xf32>, vector<2x16xf32> -> vector<2x16xf32>
    %200 = arith.addf %72, %199 : vector<2x16xf32>
    %201 = arith.negf %200 : vector<2x16xf32>
    %202 = math.exp %201 : vector<2x16xf32>
    %cst_81 = arith.constant 1.000000e+00 : f32
    %203 = vector.broadcast %cst_81 : f32 to vector<2x16xf32>
    %204 = arith.addf %203, %202 : vector<2x16xf32>
    %205 = arith.divf %203, %204 : vector<2x16xf32>
    %cst_82 = arith.constant dense<0.000000e+00> : vector<2x16xf32>
    %206 = tpu.matmul %183, %77, %cst_82 {dimension_numbers = #tpu.dot_dimension_numbers<[1], [0], [0], [1], [0, 0, 1, 1], [], []>} : vector<2x16xf32>, vector<16x16xf32>, vector<2x16xf32> -> vector<2x16xf32>
    %207 = arith.addf %73, %206 : vector<2x16xf32>
    %208 = math.tanh %207 : vector<2x16xf32>
    %cst_83 = arith.constant dense<0.000000e+00> : vector<2x16xf32>
    %209 = tpu.matmul %183, %78, %cst_83 {dimension_numbers = #tpu.dot_dimension_numbers<[1], [0], [0], [1], [0, 0, 1, 1], [], []>} : vector<2x16xf32>, vector<16x16xf32>, vector<2x16xf32> -> vector<2x16xf32>
    %210 = arith.addf %74, %209 : vector<2x16xf32>
    %211 = arith.negf %210 : vector<2x16xf32>
    %212 = math.exp %211 : vector<2x16xf32>
    %cst_84 = arith.constant 1.000000e+00 : f32
    %213 = vector.broadcast %cst_84 : f32 to vector<2x16xf32>
    %214 = arith.addf %213, %212 : vector<2x16xf32>
    %215 = arith.divf %213, %214 : vector<2x16xf32>
    %216 = arith.mulf %205, %181 : vector<2x16xf32>
    %217 = arith.mulf %198, %208 : vector<2x16xf32>
    %218 = arith.addf %216, %217 : vector<2x16xf32>
    %219 = math.tanh %218 : vector<2x16xf32>
    %220 = arith.mulf %215, %219 : vector<2x16xf32>
    %cst_85 = arith.constant 0.000000e+00 : f32
    %221 = vector.broadcast %cst_85 : f32 to vector<2x16xf32>
    %222 = arith.maximumf %220, %221 : vector<2x16xf32>
    %cst_86 = arith.constant dense<0.000000e+00> : vector<2x1xf32>
    %223 = tpu.matmul %222, %61, %cst_86 {dimension_numbers = #tpu.dot_dimension_numbers<[1], [0], [0], [1], [0, 0, 1, 1], [], []>} : vector<2x16xf32>, vector<16x1xf32>, vector<2x1xf32> -> vector<2x1xf32>
    %224 = vector.broadcast %62 : vector<1x1xf32> to vector<2x1xf32>
    %225 = arith.addf %223, %224 : vector<2x1xf32>
    %226 = math.tanh %225 : vector<2x1xf32>
    %cst_87 = arith.constant 1.000000e+01 : f32
    %227 = vector.broadcast %cst_87 : f32 to vector<2x1xf32>
    %228 = arith.mulf %226, %227 : vector<2x1xf32>
    %cst_88 = arith.constant dense<0.000000e+00> : vector<2x16xf32>
    %229 = tpu.matmul %220, %75, %cst_88 {dimension_numbers = #tpu.dot_dimension_numbers<[1], [0], [0], [1], [0, 0, 1, 1], [], []>} : vector<2x16xf32>, vector<16x16xf32>, vector<2x16xf32> -> vector<2x16xf32>
    %230 = arith.addf %71, %229 : vector<2x16xf32>
    %231 = arith.negf %230 : vector<2x16xf32>
    %232 = math.exp %231 : vector<2x16xf32>
    %cst_89 = arith.constant 1.000000e+00 : f32
    %233 = vector.broadcast %cst_89 : f32 to vector<2x16xf32>
    %234 = arith.addf %233, %232 : vector<2x16xf32>
    %235 = arith.divf %233, %234 : vector<2x16xf32>
    %cst_90 = arith.constant dense<0.000000e+00> : vector<2x16xf32>
    %236 = tpu.matmul %220, %76, %cst_90 {dimension_numbers = #tpu.dot_dimension_numbers<[1], [0], [0], [1], [0, 0, 1, 1], [], []>} : vector<2x16xf32>, vector<16x16xf32>, vector<2x16xf32> -> vector<2x16xf32>
    %237 = arith.addf %72, %236 : vector<2x16xf32>
    %238 = arith.negf %237 : vector<2x16xf32>
    %239 = math.exp %238 : vector<2x16xf32>
    %cst_91 = arith.constant 1.000000e+00 : f32
    %240 = vector.broadcast %cst_91 : f32 to vector<2x16xf32>
    %241 = arith.addf %240, %239 : vector<2x16xf32>
    %242 = arith.divf %240, %241 : vector<2x16xf32>
    %cst_92 = arith.constant dense<0.000000e+00> : vector<2x16xf32>
    %243 = tpu.matmul %220, %77, %cst_92 {dimension_numbers = #tpu.dot_dimension_numbers<[1], [0], [0], [1], [0, 0, 1, 1], [], []>} : vector<2x16xf32>, vector<16x16xf32>, vector<2x16xf32> -> vector<2x16xf32>
    %244 = arith.addf %73, %243 : vector<2x16xf32>
    %245 = math.tanh %244 : vector<2x16xf32>
    %cst_93 = arith.constant dense<0.000000e+00> : vector<2x16xf32>
    %246 = tpu.matmul %220, %78, %cst_93 {dimension_numbers = #tpu.dot_dimension_numbers<[1], [0], [0], [1], [0, 0, 1, 1], [], []>} : vector<2x16xf32>, vector<16x16xf32>, vector<2x16xf32> -> vector<2x16xf32>
    %247 = arith.addf %74, %246 : vector<2x16xf32>
    %248 = arith.negf %247 : vector<2x16xf32>
    %249 = math.exp %248 : vector<2x16xf32>
    %cst_94 = arith.constant 1.000000e+00 : f32
    %250 = vector.broadcast %cst_94 : f32 to vector<2x16xf32>
    %251 = arith.addf %250, %249 : vector<2x16xf32>
    %252 = arith.divf %250, %251 : vector<2x16xf32>
    %253 = arith.mulf %242, %218 : vector<2x16xf32>
    %254 = arith.mulf %235, %245 : vector<2x16xf32>
    %255 = arith.addf %253, %254 : vector<2x16xf32>
    %256 = math.tanh %255 : vector<2x16xf32>
    %257 = arith.mulf %252, %256 : vector<2x16xf32>
    %cst_95 = arith.constant 0.000000e+00 : f32
    %258 = vector.broadcast %cst_95 : f32 to vector<2x16xf32>
    %259 = arith.maximumf %257, %258 : vector<2x16xf32>
    %cst_96 = arith.constant dense<0.000000e+00> : vector<2x1xf32>
    %260 = tpu.matmul %259, %61, %cst_96 {dimension_numbers = #tpu.dot_dimension_numbers<[1], [0], [0], [1], [0, 0, 1, 1], [], []>} : vector<2x16xf32>, vector<16x1xf32>, vector<2x1xf32> -> vector<2x1xf32>
    %261 = vector.broadcast %62 : vector<1x1xf32> to vector<2x1xf32>
    %262 = arith.addf %260, %261 : vector<2x1xf32>
    %263 = math.tanh %262 : vector<2x1xf32>
    %cst_97 = arith.constant 1.000000e+01 : f32
    %264 = vector.broadcast %cst_97 : f32 to vector<2x1xf32>
    %265 = arith.mulf %263, %264 : vector<2x1xf32>
    %266 = tpu.concatenate %117, %154, %191, %228, %265 in 1 : vector<2x1xf32>, vector<2x1xf32>, vector<2x1xf32>, vector<2x1xf32>, vector<2x1xf32> -> vector<2x5xf32>
    %cst_98 = arith.constant 0.000000e+00 : f32
    %267 = vector.broadcast %cst_98 : f32 to vector<2x118xf32>
    %268 = tpu.concatenate %33, %55, %266, %267 in 1 : vector<2x4xf32>, vector<2x1xf32>, vector<2x5xf32>, vector<2x118xf32> -> vector<2x128xf32>
    %c0_99 = arith.constant 0 : index
    %c0_100 = arith.constant 0 : index
    %269 = vector.load %arg16[%c0_99, %c0_100] : memref<2x128xf32, #tpu.memory_space<vmem>>, vector<2x128xf32>
    tpu.vector_store %arg16[%c0_99, %c0_100], %268 {strides = array<i32>} : memref<2x128xf32, #tpu.memory_space<vmem>>, vector<2x128xf32>,
    return
  }
}

</mosaic_0001>

<bundles_post_ra>
// kernel: mixnet_forward.3
= control target key start
LH: loop header
LB: loop body
LE: loop exit
PB: predicated region body
PF: predicated region fallthrough
CT: control target
= control target key end

     0   :  { %v3448_v1 = vmov 0.0|0.0   ;;  %s3449_s26 = smov 32   ;;  %vm3450_vm0 = vmmov 0   ;;  %v3451_v6 = vmov 0.0   ;;  %s3452_s22 = smov 64   ;;  %vm68_vm1 = vcmask 261120   ;;  %s3979_s0 = inlined_call_operand.vmem [shape: f32[3,2,32], index: 0, kind: input, shape index: {}]   ;;  %s3980_s1 = inlined_call_operand.vmem [shape: f32[96,32], index: 1, kind: input, shape index: {}]   ;;  %s3981_s3 = inlined_call_operand.vmem [shape: f32[32,4], index: 3, kind: input, shape index: {}]   ;;  %s3982_s2 = inlined_call_operand.vmem [shape: f32[1,32], index: 2, kind: input, shape index: {}]   ;;  %s3983_s5 = inlined_call_operand.vmem [shape: f32[32,16], index: 5, kind: input, shape index: {}]   ;;  %s3984_s7 = inlined_call_operand.vmem [shape: f32[16,1], index: 7, kind: input, shape index: {}]   ;;  %s3985_s13 = inlined_call_operand.vmem [shape: f32[16,64], index: 13, kind: input, shape index: {}]   ;;  %s3986_s8 = inlined_call_operand.<no memory space> [shape: f32[1,1], index: 8, kind: input, shape index: {}]   ;;  %s3987_s6 = inlined_call_operand.vmem [shape: f32[1,16], index: 6, kind: input, shape index: {}]   ;;  %s3988_s9 = inlined_call_operand.vmem [shape: f32[96,16], index: 9, kind: input, shape index: {}]   ;;  %s3989_s11 = inlined_call_operand.vmem [shape: f32[16,64], index: 11, kind: input, shape index: {}]   ;;  %s3990_s10 = inlined_call_operand.vmem [shape: f32[1,16], index: 10, kind: input, shape index: {}]   ;;  %s3991_s12 = inlined_call_operand.vmem [shape: f32[1,64], index: 12, kind: input, shape index: {}]   ;;  %s3992_s14 = inlined_call_operand.vmem [shape: f32[16,1], index: 14, kind: input, shape index: {}]   ;;  %s3993_s15 = inlined_call_operand.<no memory space> [shape: f32[1,1], index: 15, kind: input, shape index: {}]   ;;  %s3994_s4 = inlined_call_operand.vmem [shape: f32[1,4], index: 4, kind: input, shape index: {}]   ;;  %s3995_s16 = inlined_call_operand.vmem [shape: f32[2,128], index: 16, kind: output, shape index: {}]  }
   0x1   :  { %3997 = sst [smem:[#allocation4_spill]] %s3979_s0  ;;  %3191 = vmatprep.subr.bf16.mxu0 %v3448_v1  ;;  %v72_v2 = vld [vmem:[%s3980_s1] sm:$0xff]  ;;  %3209 = vmatprep.subr.bf16.mxu1 %v3448_v1  ;;  %v73_v3 = vld [vmem:[%s3980_s1 + $0x8] sm:$0xff]  ;;  %v74_v4 = vld [vmem:[%s3980_s1 + $0x10] sm:$0xff]  ;;  %vm70_vm2 = vcmask 523264   ;;  %vm91_vm3 = vcmask 785408   ;;  %v21_v50 = vstv %s3986_s8 }
   0x2   :  { %s3998_s23 = sld [smem:[#allocation4_spill]]  ;;  %v75_v5 = vld [vmem:[%s3980_s1 + $0x18] sm:$0xff]  ;;  %2950 = vmatprep.mubr.msk.f32.mxu0 %vm3450_vm0, %v3451_v6  ;;  %v3192_v8 = vpack.c.bf16 %v73_v3, %v72_v2  ;;  %2961 = vmatprep.mubr.msk.f32.mxu1 %vm3450_vm0, %v3451_v6  ;;  %v76_v10 = vld [vmem:[%s3980_s1 + $0x20] sm:$0xff]  ;;  %v77_v11 = vld [vmem:[%s3980_s1 + $0x28] sm:$0xff]  ;;  %22 = vst [vmem:[#allocation2] sm:$0x1] %v21_v50 }
   0x3   :  { %v3195_v9 = vpack.c.bf16 %v75_v5, %v74_v4  ;;  %v168_v12 = vld [vmem:[%s3981_s3] sm:$0xff]  ;;  %v169_v13 = vld [vmem:[%s3981_s3 + $0x8] sm:$0xff]  ;;  %v3198_v15 = vpack.c.bf16 %v77_v11, %v76_v10  ;;  %v78_v16 = vld [vmem:[%s3980_s1 + $0x30] sm:$0xff]  ;;  %s3454_s21 = smov 80   ;;  %vm360_vm6 = vcmask 130048   ;;  %vm252_vm7 = vcmask 25600  }
   0x4   :  { %3193 = vmatpush3.bf16.msra.mxu0 %v3192_v8  ;;  %v3210_v14 = vpack.c.bf16 %v169_v13, %v168_v12  ;;  %v79_v17 = vld [vmem:[%s3980_s1 + $0x38] sm:$0xff]  ;;  %v80_v19 = vld [vmem:[%s3980_s1 + $0x40] sm:$0xff]  ;;  %v81_v20 = vld [vmem:[%s3980_s1 + $0x48] sm:$0xff]  ;;  %s3461_s20 = smov 3   ;;  %vm2733_vm8 = vcmask 7168   ;;  %vm2735_vm9 = vcmask 15360  }
   0x5   :  { %3194 = vmatprep.subr.bf16.mxu0 %v3448_v1  ;;  %v3201_v18 = vpack.c.bf16 %v79_v17, %v78_v16  ;;  %v3204_v21 = vpack.c.bf16 %v81_v20, %v80_v19  ;;  %v82_v22 = vld [vmem:[%s3980_s1 + $0x50] sm:$0xff]  ;;  %v83_v23 = vld [vmem:[%s3980_s1 + $0x58] sm:$0xff]  ;;  %v2759_v33 = vld [vmem:[%s3982_s2] ss:$0 sm:$0xff]  ;;  %vm2737_vm10 = vcmask 23552   ;;  %vm2739_vm11 = vcmask 31744  }
   0x6   :  { %3211 = vmatpush3.bf16.msra.mxu1 %v3210_v14  ;;  %v3207_v24 = vpack.c.bf16 %v83_v23, %v82_v22  ;;  %v170_v30 = vld [vmem:[%s3981_s3 + $0x10] sm:$0xff]  ;;  %v171_v31 = vld [vmem:[%s3981_s3 + $0x18] sm:$0xff]  ;;  %v264_v35 = vld [vmem:[%s3983_s5] sm:$0xff]  ;;  %vm2750_vm12 = vcmask 39936   ;;  %vm2752_vm13 = vcmask 80896  }
   0x7   :  { %3212 = vmatprep.subr.bf16.mxu1 %v3448_v1  ;;  %v3213_v32 = vpack.c.bf16 %v171_v31, %v170_v30  ;;  %v265_v36 = vld [vmem:[%s3983_s5 + $0x8] sm:$0xff]  ;;  %v266_v41 = vld [vmem:[%s3983_s5 + $0x10] sm:$0xff]  ;;  %v267_v42 = vld [vmem:[%s3983_s5 + $0x18] sm:$0xff] }
   0x8   :  { %v58_v0 = vld [vmem:[%s3998_s23 + $0x2] sm:$0x3]  ;;  %v59_v7 = vld [vmem:[%s3998_s23 + $0x4] sm:$0x3]  ;;  %3196 = vmatpush3.bf16.msra.mxu0 %v3195_v9  ;;  %v57_v26 = vld [vmem:[%s3998_s23] sm:$0x3]  ;;  %v3216_v40 = vpack.c.bf16 %v265_v36, %v264_v35  ;;  %v3219_v44 = vpack.c.bf16 %v267_v42, %v266_v41 }
   0x9   :  { %61 = vrot.lane.b32.xlu0 %v58_v0, %s3449_s26  ;;  %3197 = vmatprep.subr.bf16.mxu0 %v3448_v1  ;;  %v351_v45 = vld [vmem:[%s3984_s7] sm:$0xff]  ;;  %v352_v46 = vld [vmem:[%s3984_s7 + $0x8] sm:$0xff]  ;;  %s3453_s7 = smov 112   ;;  %v443_v63 = vld [vmem:[%s3988_s9 + $0x10] sm:$0xff]  ;;  %s3460_s23 = smov 2  }
   0xa   :  { %3214 = vmatpush3.bf16.msra.mxu1 %v3213_v32  ;;  %v3222_v47 = vpack.c.bf16 %v352_v46, %v351_v45  ;;  %v457_v48 = vld [vmem:[%s3985_s13] sm:$0xff]  ;;  %v458_v49 = vld [vmem:[%s3985_s13 + $0x8] sm:$0xff]  ;;  %v444_v0 = vld [vmem:[%s3988_s9 + $0x18] sm:$0xff] }
   0xb   :  { %3215 = vmatprep.subr.bf16.mxu1 %v3448_v1  ;;  %v3335_v51 = vpack.i.bf16 %v458_v49, %v457_v48  ;;  %v3666_v52 = vpack.c.bf16 %v458_v49, %v457_v48  ;;  %v2763_v55 = vld [vmem:[%s3987_s6] ss:$0 sm:$0xff]  ;;  %v442_v58 = vld [vmem:[%s3988_s9 + $0x8] sm:$0xff]  ;;  %v3228_v3 = vpack.c.bf16 %v444_v0, %v443_v63  ;;  %v447_v8 = vld [vmem:[%s3988_s9 + $0x30] sm:$0xff] }
   0xc   :  { %3199 = vmatpush3.bf16.msra.mxu0 %v3198_v15  ;;  %v441_v57 = vld [vmem:[%s3988_s9] sm:$0xff]  ;;  %v446_v5 = vld [vmem:[%s3988_s9 + $0x28] sm:$0xff]  ;;  %v448_v9 = vld [vmem:[%s3988_s9 + $0x38] sm:$0xff] }
   0xd   :  { %65 = vrot.lane.b32.xlu0 %v59_v7, %s3452_s22  ;;  %3200 = vmatprep.subr.bf16.mxu0 %v3448_v1  ;;  %s3455_s22 = smov 96   ;;  %v3225_v62 = vpack.c.bf16 %v442_v58, %v441_v57  ;;  %v445_v4 = vld [vmem:[%s3988_s9 + $0x20] sm:$0xff]  ;;  %v3234_v10 = vpack.c.bf16 %v448_v9, %v447_v8  ;;  %v450_v12 = vld [vmem:[%s3988_s9 + $0x48] sm:$0xff]  ;;  %v451_v14 = vld [vmem:[%s3988_s9 + $0x50] sm:$0xff] }
   0xe   :  { %3336 = vrot.lane.b32.xlu1 %v3335_v51, %s3453_s7  ;;  %v3231_v7 = vpack.c.bf16 %v446_v5, %v445_v4  ;;  %v449_v11 = vld [vmem:[%s3988_s9 + $0x40] sm:$0xff]  ;;  %v452_v15 = vld [vmem:[%s3988_s9 + $0x58] sm:$0xff] }
   0xf   :  { %v3237_v13 = vpack.c.bf16 %v450_v12, %v449_v11  ;;  %v3240_v16 = vpack.c.bf16 %v452_v15, %v451_v14  ;;  %v454_v17 = vld [vmem:[%s3989_s11] sm:$0xff]  ;;  %v460_v11 = vld [vmem:[%s3992_s14 + $0x8] sm:$0xff] }
  0x10   :  { %3202 = vmatpush3.bf16.msra.mxu0 %v3201_v18  ;;  %v455_v18 = vld [vmem:[%s3989_s11 + $0x8] sm:$0xff]  ;;  %v2768_v23 = vld [vmem:[%s3990_s10] ss:$0 sm:$0xff]  ;;  %s3456_s10 = smov 16   ;;  %s3457_s11 = smov 48  }
  0x11   :  { %3203 = vmatprep.subr.bf16.mxu0 %v3448_v1  ;;  %3346 = vrot.lane.b32.xlu0 %v3335_v51, %s3454_s21  ;;  %v3243_v19 = vpack.c.bf16 %v455_v18, %v454_v17  ;;  %v2770_v49 = vld [vmem:[%s3991_s12] ss:$0 sm:$0xff] }
  0x12   :  { %3341 = vrot.lane.b32.xlu1 %v3335_v51, %s3455_s22 }
  0x14   :  { %3205 = vmatpush3.bf16.msra.mxu0 %v3204_v21 }
  0x15   :  { %3206 = vmatprep.subr.bf16.mxu0 %v3448_v1 }
  0x18   :  { %3208 = vmatpush3.bf16.msra.mxu0 %v3207_v24 }
  0x19   :  { %3242 = vmatprep.subr.bf16.mxu0 %v3448_v1 }
  0x7b   :  { %v62_v25 = vpop.permute.xlu0 %61 }
  0x7c   :  { %v69_v27 = vsel %vm68_vm1, %v57_v26, %v62_v25 }
  0x7f   :  { %v66_v28 = vpop.permute.xlu0 %65 }
  0x80   :  { %v3614_v29 = vsel %vm70_vm2, %v69_v27, %v66_v28  ;;  %v3337_v22 = vpop.permute.xlu1 %3336 }
  0x81   :  { %2951 = vmatmul.mubr.msk.f32.vlgmr.msra.gmra.mrb[0].mxu0 %vm91_vm3, %v3614_v29  ;;  %v3339_v27 = vunpack.i.h.bf16 %v3337_v22  ;;  %v3338_v28 = vunpack.i.l.bf16 %v3337_v22 }
  0x82   :  { %3013 = vmatprep.mubr.msk.f32.mxu0 %vm3450_vm0, %v3451_v6  ;;  %3244 = vmatpush3.bf16.msra.mxu0 %v3243_v19 }
  0x83   :  { %3245 = vmatprep.subr.bf16.mxu0 %v3448_v1  ;;  %v3739_v31 = vpack.c.bf16 %v3339_v27, %v3338_v28 }
  0x84   :  { %v3342_v30 = vpop.permute.xlu1 %3341 }
  0x85   :  { %v3344_v32 = vunpack.i.h.bf16 %v3342_v30 }
 0x154   :  { %v161_v34 = vpop.f32.mrb[0].mxu0 }
 0x155   :  { %v162_v37 = vadd.f32 %v2759_v33, %v161_v34  ;;  %v2952_v38 = vpop.f32.mrb[1].mxu0  ;;  %v3343_v33 = vunpack.i.l.bf16 %v3342_v30  ;;  %v3347_v34 = vpop.permute.xlu0 %3346 }
 0x156   :  { %v3349_v36 = vunpack.i.h.bf16 %v3347_v34 }
 0x157   :  { %vm165_vm4 = vcmp.gt.f32.partialorder %v162_v37, 0.0  ;;  %v166_v39 = vmul.f32 0.01, %v162_v37  ;;  %v3746_v35 = vpack.c.bf16 %v3344_v32, %v3343_v33 }
 0x159   :  { %v167_v43 = vsel %vm165_vm4, %v162_v37, %v166_v39  ;;  %v3348_v37 = vunpack.i.l.bf16 %v3347_v34 }
 0x15a   :  { %2962 = vmatmul.mubr.msk.f32.vlgmr.msra.gmra.mrb[0].mxu1 %vm68_vm1, %v167_v43 }
 0x15b   :  { %3217 = vmatpush3.bf16.msra.mxu1 %v3216_v40  ;;  %2972 = vmatprep.mubr.msk.f32.mxu1 %vm3450_vm0, %v3451_v6  ;;  %v3756_v38 = vpack.c.bf16 %v3349_v36, %v3348_v37 }
 0x15c   :  { %3218 = vmatprep.subr.bf16.mxu1 %v3448_v1 }
 0x15f   :  { %3220 = vmatpush3.bf16.msra.mxu1 %v3219_v44 }
 0x160   :  { %3221 = vmatprep.subr.bf16.mxu1 %v3448_v1 }
 0x162   :  { %2973 = vmatmul.mubr.msk.f32.vlgmr.msra.gmra.mrb[2].mxu1 %vm68_vm1, %v57_v26 }
 0x163   :  { %2979 = vmatprep.mubr.msk.f32.mxu1 %vm3450_vm0, %v3451_v6  ;;  %3223 = vmatpush3.bf16.msra.mxu1 %v3222_v47 }
 0x164   :  { %3224 = vmatprep.subr.bf16.mxu1 %v3448_v1 }
 0x22d   :  { %v3670_v53 = vpop.f32.mrb[0].mxu1 }
 0x22e   :  { %v2963_v54 = vpop.f32.mrb[1].mxu1 }
 0x235   :  { %v344_v56 = vpop.f32.mrb[2].mxu1 }
 0x236   :  { %v345_v59 = vadd.f32 %v2763_v55, %v344_v56  ;;  %v2974_v60 = vpop.f32.mrb[3].mxu1 }
 0x238   :  { %vm348_vm5 = vcmp.gt.f32.partialorder %v345_v59, 0.0  ;;  %v349_v61 = vmul.f32 0.01, %v345_v59 }
 0x23a   :  { %v350_v2 = vsel %vm348_vm5, %v345_v59, %v349_v61 }
 0x23b   :  { %2980 = vmatmul.mubr.msk.f32.vlgmr.msra.gmra.mrb[4].mxu1 %vm360_vm6, %v350_v2 }
 0x23c   :  { %3226 = vmatpush3.bf16.msra.mxu1 %v3225_v62  ;;  %3006 = vmatprep.mubr.msk.f32.mxu1 %vm3450_vm0, %v3451_v6 }
 0x23d   :  { %3227 = vmatprep.subr.bf16.mxu1 %v3448_v1 }
 0x240   :  { %3229 = vmatpush3.bf16.msra.mxu1 %v3228_v3 }
 0x241   :  { %3230 = vmatprep.subr.bf16.mxu1 %v3448_v1 }
 0x244   :  { %3232 = vmatpush3.bf16.msra.mxu1 %v3231_v7 }
 0x245   :  { %3233 = vmatprep.subr.bf16.mxu1 %v3448_v1 }
 0x248   :  { %3235 = vmatpush3.bf16.msra.mxu1 %v3234_v10  ;;  %v459_v10 = vld [vmem:[%s3992_s14] sm:$0xff] }
 0x249   :  { %3236 = vmatprep.subr.bf16.mxu1 %v3448_v1  ;;  %v3789_v12 = vpack.c.bf16 %v460_v11, %v459_v10 }
 0x24c   :  { %3238 = vmatpush3.bf16.msra.mxu1 %v3237_v13 }
 0x24d   :  { %3239 = vmatprep.subr.bf16.mxu1 %v3448_v1 }
 0x250   :  { %3241 = vmatpush3.bf16.msra.mxu1 %v3240_v16 }
 0x251   :  { %3260 = vmatprep.subr.bf16.mxu1 %v3448_v1 }
 0x253   :  { %3007 = vmatmul.mubr.msk.f32.vlgmr.msra.gmra.mrb[6].mxu1 %vm91_vm3, %v3614_v29 }
 0x254   :  { %3262 = vmatpush3.bf16.msra.mxu1 %v3666_v52  ;;  %3055 = vmatprep.mubr.msk.f32.mxu1 %vm3450_vm0, %v3451_v6 }
 0x255   :  { %3266 = vmatprep.subr.bf16.mxu1 %v3448_v1 }
 0x30e   :  { %v3733_v20 = vpop.f32.mrb[4].mxu1 }
 0x30f   :  { %v2981_v21 = vpop.f32.mrb[5].mxu1 }
 0x326   :  { %v534_v24 = vpop.f32.mrb[6].mxu1 }
 0x327   :  { %v535_v25 = vadd.f32 %v2768_v23, %v534_v24  ;;  %v3008_v26 = vpop.f32.mrb[7].mxu1 }
 0x328   :  { %v23_v26 = vstv %s3993_s15 }
 0x329   :  { %v538_v29 = vmax.f32 %v535_v25, 0.0  ;;  %24 = vst [vmem:[#allocation3] sm:$0x1] %v23_v26 }
 0x32b   :  { %3014 = vmatmul.mubr.msk.f32.vlgmr.msra.gmra.mrb[2].mxu0 %vm360_vm6, %v538_v29 }
 0x32c   :  { %3247 = vmatpush3.bf16.msra.mxu0 %v3666_v52  ;;  %3020 = vmatprep.mubr.msk.f32.mxu0 %vm3450_vm0, %v3451_v6 }
 0x32d   :  { %3248 = vmatprep.subr.bf16.mxu0 %v3448_v1 }
 0x32f   :  { %3021 = vmatmul.mubr.f32.vlgmr.msra.gmra.mrb[4].mxu0 %v3451_v6 }
 0x330   :  { %3250 = vmatpush3.bf16.msra.mxu0 %v3739_v31  ;;  %3027 = vmatprep.mubr.msk.f32.mxu0 %vm3450_vm0, %v3451_v6 }
 0x331   :  { %3251 = vmatprep.subr.bf16.mxu0 %v3448_v1 }
 0x333   :  { %3028 = vmatmul.mubr.f32.vlgmr.msra.gmra.mrb[6].mxu0 %v3451_v6 }
 0x334   :  { %3253 = vmatpush3.bf16.msra.mxu0 %v3746_v35  ;;  %3034 = vmatprep.mubr.msk.f32.mxu0 %vm3450_vm0, %v3451_v6 }
 0x335   :  { %3254 = vmatprep.subr.bf16.mxu0 %v3448_v1 }
 0x337   :  { %3035 = vmatmul.mubr.f32.vlgmr.msra.gmra.mrb[8].mxu0 %v3451_v6 }
 0x338   :  { %3256 = vmatpush3.bf16.msra.mxu0 %v3756_v38  ;;  %3041 = vmatprep.mubr.msk.f32.mxu0 %vm3450_vm0, %v3451_v6 }
 0x339   :  { %3257 = vmatprep.subr.bf16.mxu0 %v3448_v1 }
 0x33b   :  { %3042 = vmatmul.mubr.f32.vlgmr.msra.gmra.mrb[10].mxu0 %v3451_v6 }
 0x33c   :  { %3048 = vmatprep.mubr.msk.f32.mxu0 %vm3450_vm0, %v3451_v6  ;;  %3259 = vmatpush3.bf16.msra.mxu0 %v3789_v12 }
 0x33d   :  { %3263 = vmatprep.subr.bf16.mxu0 %v3448_v1 }
 0x3fe   :  { %v614_v39 = vpop.f32.mrb[2].mxu0 }
 0x3ff   :  { %v3015_v40 = vpop.f32.mrb[3].mxu0  ;;  %v3773_v50 = vadd.f32 %v2770_v49, %v614_v39 }
 0x402   :  { %v687_v41 = vpop.f32.mrb[4].mxu0 }
 0x403   :  { %v3022_v42 = vpop.f32.mrb[5].mxu0  ;;  %v691_v56 = vadd.f32 %v687_v41, %v3773_v50 }
 0x405   :  { %v2772_v57 = vmul.f32 -1.442695, %v691_v56 }
 0x406   :  { %v772_v43 = vpop.f32.mrb[6].mxu0 }
 0x407   :  { %v3029_v44 = vpop.f32.mrb[7].mxu0 }
 0x40a   :  { %v859_v45 = vpop.f32.mrb[8].mxu0 }
 0x40b   :  { %864 = vrot.lane.b32.xlu1 %v859_v45, %s3449_s26  ;;  %v3036_v46 = vpop.f32.mrb[9].mxu0 }
 0x40e   :  { %v941_v47 = vpop.f32.mrb[10].mxu0 }
 0x40f   :  { %777 = vrot.lane.b32.xlu1 %v772_v43, %s3456_s10  ;;  %v3043_v48 = vpop.f32.mrb[11].mxu0 }
 0x413   :  { %946 = vrot.lane.b32.xlu1 %v941_v47, %s3457_s11 }
 0x47d   :  { %v865_v51 = vpop.permute.xlu1 %864 }
 0x47e   :  { %v867_v54 = vadd.f32 %v865_v51, %v3773_v50 }
 0x480   :  { %3350 = vtanh.f32 %v867_v54 }
 0x481   :  { %3352 = vpow2.f32 %v2772_v57  ;;  %v778_v63 = vpop.permute.xlu1 %777 }
 0x482   :  { %v780_v0 = vadd.f32 %v778_v63, %v3773_v50 }
 0x484   :  { %v2773_v2 = vmul.f32 -1.442695, %v780_v0 }
 0x485   :  { %v947_v14 = vpop.permute.xlu1 %946 }
 0x486   :  { %v949_v15 = vadd.f32 %v947_v14, %v3773_v50 }
 0x488   :  { %v2774_v16 = vmul.f32 -1.442695, %v949_v15 }
 0x48a   :  { %v3351_v55 = vpop.eup %3350 }
 0x48b   :  { %958 = vrot.lane.b32.xlu0 %v3351_v55, %s3455_s22  ;;  %v3353_v58 = vpop.eup %3352 }
 0x48c   :  { %v695_v59 = vadd.f32 1.0, %v3353_v58 }
 0x48e   :  { %3354 = vrcp.f32 %v695_v59 }
 0x48f   :  { %3356 = vpow2.f32 %v2773_v2 }
 0x498   :  { %v3355_v60 = vpop.eup %3354 }
 0x499   :  { %v3357_v3 = vpop.eup %3356 }
 0x49a   :  { %v784_v4 = vadd.f32 1.0, %v3357_v3 }
 0x49c   :  { %3358 = vrcp.f32 %v784_v4 }
 0x4a6   :  { %v3359_v5 = vpop.eup %3358 }
 0x4a7   :  { %v956_v7 = vmul.f32 0.0, %v3359_v5 }
 0x4fd   :  { %v959_v61 = vpop.permute.xlu0 %958 }
 0x4fe   :  { %v961_v62 = vmul.f32 %v3355_v60, %v959_v61 }
 0x500   :  { %963 = vrot.lane.b32.xlu0 %v961_v62, %s3456_s10 }
 0x572   :  { %v964_v8 = vpop.permute.xlu0 %963 }
 0x573   :  { %v3780_v9 = vadd.f32 %v964_v8, %v956_v7 }
 0x575   :  { %3360 = vtanh.f32 %v3780_v9 }
 0x576   :  { %3362 = vpow2.f32 %v2774_v16 }
 0x57f   :  { %v3361_v13 = vpop.eup %3360 }
 0x580   :  { %969 = vrot.lane.b32.xlu0 %v3361_v13, %s3449_s26  ;;  %v3363_v17 = vpop.eup %3362 }
 0x581   :  { %v953_v18 = vadd.f32 1.0, %v3363_v17 }
 0x583   :  { %3364 = vrcp.f32 %v953_v18 }
 0x58d   :  { %v3365_v19 = vpop.eup %3364 }
 0x5f2   :  { %v970_v21 = vpop.permute.xlu0 %969 }
 0x5f3   :  { %v972_v22 = vmul.f32 %v3365_v19, %v970_v21 }
 0x5f5   :  { %v973_v23 = vmax.f32 %v972_v22, 0.0  ;;  %1058 = vrot.lane.b32.xlu1 %v972_v22, %s3454_s21 }
 0x5f7   :  { %981 = vrot.lane.b32.xlu0 %v973_v23, %s3454_s21 }
 0x667   :  { %v1059_v24 = vpop.permute.xlu1 %1058 }
 0x668   :  { %3056 = vmatmul.mubr.msk.f32.vlgmr.msra.gmra.mrb[8].mxu1 %vm360_vm6, %v1059_v24 }
 0x669   :  { %3268 = vmatpush3.bf16.msra.mxu1 %v3746_v35  ;;  %v982_v25 = vpop.permute.xlu0 %981  ;;  %3069 = vmatprep.mubr.msk.f32.mxu1 %vm3450_vm0, %v3451_v6 }
 0x66a   :  { %3049 = vmatmul.mubr.msk.f32.vlgmr.msra.gmra.mrb[12].mxu0 %vm360_vm6, %v982_v25  ;;  %3272 = vmatprep.subr.bf16.mxu1 %v3448_v1 }
 0x66b   :  { %3265 = vmatpush3.bf16.msra.mxu0 %v3739_v31  ;;  %3062 = vmatprep.mubr.msk.f32.mxu0 %vm3450_vm0, %v3451_v6 }
 0x66c   :  { %3070 = vmatmul.mubr.msk.f32.vlgmr.msra.gmra.mrb[10].mxu1 %vm360_vm6, %v1059_v24  ;;  %3269 = vmatprep.subr.bf16.mxu0 %v3448_v1 }
 0x66d   :  { %3274 = vmatpush3.bf16.msra.mxu1 %v3789_v12  ;;  %3083 = vmatprep.mubr.msk.f32.mxu1 %vm3450_vm0, %v3451_v6 }
 0x66e   :  { %3063 = vmatmul.mubr.msk.f32.vlgmr.msra.gmra.mrb[14].mxu0 %vm360_vm6, %v1059_v24  ;;  %3278 = vmatprep.subr.bf16.mxu1 %v3448_v1 }
 0x66f   :  { %3271 = vmatpush3.bf16.msra.mxu0 %v3756_v38  ;;  %3076 = vmatprep.mubr.msk.f32.mxu0 %vm3450_vm0, %v3451_v6 }
 0x670   :  { %3275 = vmatprep.subr.bf16.mxu0 %v3448_v1 }
 0x672   :  { %3077 = vmatmul.mubr.msk.f32.vlgmr.msra.gmra.mrb[16].mxu0 %vm360_vm6, %v1059_v24 }
 0x673   :  { %3277 = vmatpush3.bf16.msra.mxu0 %v3666_v52  ;;  %3090 = vmatprep.mubr.msk.f32.mxu0 %vm3450_vm0, %v3451_v6 }
 0x674   :  { %3281 = vmatprep.subr.bf16.mxu0 %v3448_v1 }
 0x73b   :  { %v1128_v27 = vpop.f32.mrb[8].mxu1 }
 0x73c   :  { %v3057_v28 = vpop.f32.mrb[9].mxu1  ;;  %v1132_v43 = vadd.f32 %v1128_v27, %v3773_v50 }
 0x73d   :  { %v3825_v29 = vpop.f32.mrb[12].mxu0 }
 0x73e   :  { %v3050_v30 = vpop.f32.mrb[13].mxu0  ;;  %v2778_v44 = vmul.f32 -1.442695, %v1132_v43 }
 0x73f   :  { %v1286_v32 = vpop.f32.mrb[10].mxu1 }
 0x740   :  { %1291 = vrot.lane.b32.xlu1 %v1286_v32, %s3449_s26  ;;  %v3071_v33 = vpop.f32.mrb[11].mxu1 }
 0x741   :  { %v1205_v34 = vpop.f32.mrb[14].mxu0 }
 0x742   :  { %v3064_v36 = vpop.f32.mrb[15].mxu0 }
 0x744   :  { %1210 = vrot.lane.b32.xlu1 %v1205_v34, %s3456_s10 }
 0x745   :  { %v1362_v37 = vpop.f32.mrb[16].mxu0 }
 0x746   :  { %v3078_v39 = vpop.f32.mrb[17].mxu0 }
 0x748   :  { %1367 = vrot.lane.b32.xlu1 %v1362_v37, %s3457_s11 }
 0x7b2   :  { %v1292_v40 = vpop.permute.xlu1 %1291 }
 0x7b3   :  { %v1294_v41 = vadd.f32 %v1292_v40, %v3773_v50 }
 0x7b5   :  { %3366 = vtanh.f32 %v1294_v41 }
 0x7b6   :  { %3368 = vpow2.f32 %v2778_v44  ;;  %v1211_v51 = vpop.permute.xlu1 %1210 }
 0x7b7   :  { %v1213_v54 = vadd.f32 %v1211_v51, %v3773_v50 }
 0x7b9   :  { %v2780_v55 = vmul.f32 -1.442695, %v1213_v54 }
 0x7ba   :  { %v1368_v63 = vpop.permute.xlu1 %1367 }
 0x7bb   :  { %v1370_v0 = vadd.f32 %v1368_v63, %v3773_v50 }
 0x7bd   :  { %v2783_v2 = vmul.f32 -1.442695, %v1370_v0 }
 0x7bf   :  { %v3367_v42 = vpop.eup %3366 }
 0x7c0   :  { %1379 = vrot.lane.b32.xlu0 %v3367_v42, %s3455_s22  ;;  %v3369_v45 = vpop.eup %3368 }
 0x7c1   :  { %v1136_v46 = vadd.f32 1.0, %v3369_v45 }
 0x7c3   :  { %3370 = vrcp.f32 %v1136_v46 }
 0x7c4   :  { %3372 = vpow2.f32 %v2780_v55 }
 0x7cd   :  { %v3371_v47 = vpop.eup %3370 }
 0x7ce   :  { %v3373_v56 = vpop.eup %3372 }
 0x7cf   :  { %v1217_v57 = vadd.f32 1.0, %v3373_v56 }
 0x7d1   :  { %3374 = vrcp.f32 %v1217_v57 }
 0x7db   :  { %v3375_v58 = vpop.eup %3374 }
 0x7dc   :  { %v1377_v59 = vmul.f32 %v3375_v58, %v3780_v9 }
 0x832   :  { %v1380_v48 = vpop.permute.xlu0 %1379 }
 0x833   :  { %v1382_v49 = vmul.f32 %v3371_v47, %v1380_v48 }
 0x835   :  { %1384 = vrot.lane.b32.xlu0 %v1382_v49, %s3456_s10 }
 0x8a7   :  { %v1385_v60 = vpop.permute.xlu0 %1384 }
 0x8a8   :  { %v3836_v61 = vadd.f32 %v1385_v60, %v1377_v59 }
 0x8aa   :  { %3376 = vtanh.f32 %v3836_v61 }
 0x8ab   :  { %3378 = vpow2.f32 %v2783_v2 }
 0x8b4   :  { %v3377_v62 = vpop.eup %3376 }
 0x8b5   :  { %1390 = vrot.lane.b32.xlu0 %v3377_v62, %s3449_s26  ;;  %v3379_v3 = vpop.eup %3378 }
 0x8b6   :  { %v1374_v4 = vadd.f32 1.0, %v3379_v3 }
 0x8b8   :  { %3380 = vrcp.f32 %v1374_v4 }
 0x8c2   :  { %v3381_v5 = vpop.eup %3380 }
 0x927   :  { %v1391_v7 = vpop.permute.xlu0 %1390 }
 0x928   :  { %v1393_v8 = vmul.f32 %v3381_v5, %v1391_v7 }
 0x92a   :  { %v1394_v9 = vmax.f32 %v1393_v8, 0.0  ;;  %1473 = vrot.lane.b32.xlu1 %v1393_v8, %s3454_s21 }
 0x92c   :  { %1396 = vrot.lane.b32.xlu0 %v1394_v9, %s3454_s21 }
 0x99c   :  { %v1474_v10 = vpop.permute.xlu1 %1473 }
 0x99d   :  { %3091 = vmatmul.mubr.msk.f32.vlgmr.msra.gmra.mrb[18].mxu0 %vm360_vm6, %v1474_v10 }
 0x99e   :  { %3283 = vmatpush3.bf16.msra.mxu0 %v3746_v35  ;;  %v1397_v11 = vpop.permute.xlu0 %1396  ;;  %3104 = vmatprep.mubr.msk.f32.mxu0 %vm3450_vm0, %v3451_v6 }
 0x99f   :  { %3084 = vmatmul.mubr.msk.f32.vlgmr.msra.gmra.mrb[12].mxu1 %vm360_vm6, %v1397_v11  ;;  %3287 = vmatprep.subr.bf16.mxu0 %v3448_v1 }
 0x9a0   :  { %3280 = vmatpush3.bf16.msra.mxu1 %v3739_v31  ;;  %3097 = vmatprep.mubr.msk.f32.mxu1 %vm3450_vm0, %v3451_v6 }
 0x9a1   :  { %3105 = vmatmul.mubr.msk.f32.vlgmr.msra.gmra.mrb[20].mxu0 %vm360_vm6, %v1474_v10  ;;  %3284 = vmatprep.subr.bf16.mxu1 %v3448_v1 }
 0x9a2   :  { %3289 = vmatpush3.bf16.msra.mxu0 %v3789_v12  ;;  %3118 = vmatprep.mubr.msk.f32.mxu0 %vm3450_vm0, %v3451_v6 }
 0x9a3   :  { %3098 = vmatmul.mubr.msk.f32.vlgmr.msra.gmra.mrb[14].mxu1 %vm360_vm6, %v1474_v10  ;;  %3293 = vmatprep.subr.bf16.mxu0 %v3448_v1 }
 0x9a4   :  { %3286 = vmatpush3.bf16.msra.mxu1 %v3756_v38  ;;  %3111 = vmatprep.mubr.msk.f32.mxu1 %vm3450_vm0, %v3451_v6 }
 0x9a5   :  { %3290 = vmatprep.subr.bf16.mxu1 %v3448_v1 }
 0x9a7   :  { %3112 = vmatmul.mubr.msk.f32.vlgmr.msra.gmra.mrb[16].mxu1 %vm360_vm6, %v1474_v10 }
 0x9a8   :  { %3292 = vmatpush3.bf16.msra.mxu1 %v3666_v52  ;;  %3125 = vmatprep.mubr.msk.f32.mxu1 %vm3450_vm0, %v3451_v6 }
 0x9a9   :  { %3296 = vmatprep.subr.bf16.mxu1 %v3448_v1 }
 0xa70   :  { %v1543_v13 = vpop.f32.mrb[18].mxu0 }
 0xa71   :  { %v3092_v14 = vpop.f32.mrb[19].mxu0  ;;  %v1547_v27 = vadd.f32 %v1543_v13, %v3773_v50 }
 0xa72   :  { %v3868_v15 = vpop.f32.mrb[12].mxu1 }
 0xa73   :  { %v3085_v16 = vpop.f32.mrb[13].mxu1  ;;  %v2786_v28 = vmul.f32 -1.442695, %v1547_v27 }
 0xa74   :  { %v1701_v17 = vpop.f32.mrb[20].mxu0 }
 0xa75   :  { %1706 = vrot.lane.b32.xlu1 %v1701_v17, %s3449_s26  ;;  %v3106_v18 = vpop.f32.mrb[21].mxu0 }
 0xa76   :  { %v1620_v19 = vpop.f32.mrb[14].mxu1 }
 0xa77   :  { %v3099_v21 = vpop.f32.mrb[15].mxu1 }
 0xa79   :  { %1625 = vrot.lane.b32.xlu1 %v1620_v19, %s3456_s10 }
 0xa7a   :  { %v1777_v22 = vpop.f32.mrb[16].mxu1 }
 0xa7b   :  { %v3113_v23 = vpop.f32.mrb[17].mxu1 }
 0xa7d   :  { %1782 = vrot.lane.b32.xlu1 %v1777_v22, %s3457_s11 }
 0xae7   :  { %v1707_v24 = vpop.permute.xlu1 %1706 }
 0xae8   :  { %v1709_v25 = vadd.f32 %v1707_v24, %v3773_v50 }
 0xaea   :  { %3382 = vtanh.f32 %v1709_v25 }
 0xaeb   :  { %3384 = vpow2.f32 %v2786_v28  ;;  %v1626_v37 = vpop.permute.xlu1 %1625 }
 0xaec   :  { %v1628_v39 = vadd.f32 %v1626_v37, %v3773_v50 }
 0xaee   :  { %v2788_v40 = vmul.f32 -1.442695, %v1628_v39 }
 0xaef   :  { %v1783_v48 = vpop.permute.xlu1 %1782 }
 0xaf0   :  { %v1785_v49 = vadd.f32 %v1783_v48, %v3773_v50 }
 0xaf2   :  { %v2791_v51 = vmul.f32 -1.442695, %v1785_v49 }
 0xaf4   :  { %v3383_v26 = vpop.eup %3382 }
 0xaf5   :  { %1794 = vrot.lane.b32.xlu0 %v3383_v26, %s3455_s22  ;;  %v3385_v30 = vpop.eup %3384 }
 0xaf6   :  { %v1551_v32 = vadd.f32 1.0, %v3385_v30 }
 0xaf8   :  { %3386 = vrcp.f32 %v1551_v32 }
 0xaf9   :  { %3388 = vpow2.f32 %v2788_v40 }
 0xb02   :  { %v3387_v33 = vpop.eup %3386 }
 0xb03   :  { %v3389_v41 = vpop.eup %3388 }
 0xb04   :  { %v1632_v42 = vadd.f32 1.0, %v3389_v41 }
 0xb06   :  { %3390 = vrcp.f32 %v1632_v42 }
 0xb10   :  { %v3391_v43 = vpop.eup %3390 }
 0xb11   :  { %v1792_v44 = vmul.f32 %v3391_v43, %v3836_v61 }
 0xb67   :  { %v1795_v34 = vpop.permute.xlu0 %1794 }
 0xb68   :  { %v1797_v36 = vmul.f32 %v3387_v33, %v1795_v34 }
 0xb6a   :  { %1799 = vrot.lane.b32.xlu0 %v1797_v36, %s3456_s10 }
 0xbdc   :  { %v1800_v45 = vpop.permute.xlu0 %1799 }
 0xbdd   :  { %v3879_v46 = vadd.f32 %v1800_v45, %v1792_v44 }
 0xbdf   :  { %3392 = vtanh.f32 %v3879_v46 }
 0xbe0   :  { %3394 = vpow2.f32 %v2791_v51 }
 0xbe9   :  { %v3393_v47 = vpop.eup %3392 }
 0xbea   :  { %1805 = vrot.lane.b32.xlu0 %v3393_v47, %s3449_s26  ;;  %v3395_v54 = vpop.eup %3394 }
 0xbeb   :  { %v1789_v55 = vadd.f32 1.0, %v3395_v54 }
 0xbed   :  { %3396 = vrcp.f32 %v1789_v55 }
 0xbf7   :  { %v3397_v56 = vpop.eup %3396 }
 0xc5c   :  { %v1806_v57 = vpop.permute.xlu0 %1805 }
 0xc5d   :  { %v1808_v58 = vmul.f32 %v3397_v56, %v1806_v57 }
 0xc5f   :  { %v1809_v59 = vmax.f32 %v1808_v58, 0.0  ;;  %1888 = vrot.lane.b32.xlu1 %v1808_v58, %s3454_s21 }
 0xc61   :  { %1811 = vrot.lane.b32.xlu0 %v1809_v59, %s3454_s21 }
 0xcd1   :  { %v1889_v60 = vpop.permute.xlu1 %1888 }
 0xcd2   :  { %3126 = vmatmul.mubr.msk.f32.vlgmr.msra.gmra.mrb[18].mxu1 %vm360_vm6, %v1889_v60 }
 0xcd3   :  { %3298 = vmatpush3.bf16.msra.mxu1 %v3746_v35  ;;  %v1812_v61 = vpop.permute.xlu0 %1811  ;;  %3139 = vmatprep.mubr.msk.f32.mxu1 %vm3450_vm0, %v3451_v6 }
 0xcd4   :  { %3119 = vmatmul.mubr.msk.f32.vlgmr.msra.gmra.mrb[22].mxu0 %vm360_vm6, %v1812_v61  ;;  %3302 = vmatprep.subr.bf16.mxu1 %v3448_v1 }
 0xcd5   :  { %3295 = vmatpush3.bf16.msra.mxu0 %v3739_v31  ;;  %3132 = vmatprep.mubr.msk.f32.mxu0 %vm3450_vm0, %v3451_v6 }
 0xcd6   :  { %3140 = vmatmul.mubr.msk.f32.vlgmr.msra.gmra.mrb[20].mxu1 %vm360_vm6, %v1889_v60  ;;  %3299 = vmatprep.subr.bf16.mxu0 %v3448_v1 }
 0xcd7   :  { %3304 = vmatpush3.bf16.msra.mxu1 %v3789_v12  ;;  %3153 = vmatprep.mubr.msk.f32.mxu1 %vm3450_vm0, %v3451_v6 }
 0xcd8   :  { %3133 = vmatmul.mubr.msk.f32.vlgmr.msra.gmra.mrb[24].mxu0 %vm360_vm6, %v1889_v60  ;;  %3308 = vmatprep.subr.bf16.mxu1 %v3448_v1 }
 0xcd9   :  { %3301 = vmatpush3.bf16.msra.mxu0 %v3756_v38  ;;  %3146 = vmatprep.mubr.msk.f32.mxu0 %vm3450_vm0, %v3451_v6 }
 0xcda   :  { %3305 = vmatprep.subr.bf16.mxu0 %v3448_v1 }
 0xcdc   :  { %3147 = vmatmul.mubr.msk.f32.vlgmr.msra.gmra.mrb[26].mxu0 %vm360_vm6, %v1889_v60 }
 0xcdd   :  { %3307 = vmatpush3.bf16.msra.mxu0 %v3666_v52  ;;  %3160 = vmatprep.mubr.msk.f32.mxu0 %vm3450_vm0, %v3451_v6 }
 0xcde   :  { %3311 = vmatprep.subr.bf16.mxu0 %v3448_v1 }
 0xda5   :  { %v1958_v62 = vpop.f32.mrb[18].mxu1 }
 0xda6   :  { %v3127_v63 = vpop.f32.mrb[19].mxu1  ;;  %v1962_v13 = vadd.f32 %v1958_v62, %v3773_v50 }
 0xda7   :  { %v3911_v0 = vpop.f32.mrb[22].mxu0 }
 0xda8   :  { %v3120_v2 = vpop.f32.mrb[23].mxu0  ;;  %v2794_v14 = vmul.f32 -1.442695, %v1962_v13  ;;  %v2765_v13 = vld [vmem:[#allocation2] ss:$0 sm:$0xff] }
 0xda9   :  { %v2116_v3 = vpop.f32.mrb[20].mxu1 }
 0xdaa   :  { %2121 = vrot.lane.b32.xlu1 %v2116_v3, %s3449_s26  ;;  %v3141_v4 = vpop.f32.mrb[21].mxu1 }
 0xdab   :  { %v2035_v5 = vpop.f32.mrb[24].mxu0 }
 0xdac   :  { %v3134_v7 = vpop.f32.mrb[25].mxu0 }
 0xdae   :  { %2040 = vrot.lane.b32.xlu1 %v2035_v5, %s3456_s10 }
 0xdaf   :  { %v2192_v8 = vpop.f32.mrb[26].mxu0 }
 0xdb0   :  { %v3148_v52 = vpop.f32.mrb[27].mxu0 }
 0xdb2   :  { %2197 = vrot.lane.b32.xlu1 %v2192_v8, %s3457_s11 }
 0xe1c   :  { %v2122_v9 = vpop.permute.xlu1 %2121 }
 0xe1d   :  { %v2124_v10 = vadd.f32 %v2122_v9, %v3773_v50 }
 0xe1f   :  { %3398 = vtanh.f32 %v2124_v10 }
 0xe20   :  { %3400 = vpow2.f32 %v2794_v14  ;;  %v2041_v22 = vpop.permute.xlu1 %2040  ;;  %v431_v14 = vadd.f32 %v2765_v13, %v3733_v20 }
 0xe21   :  { %v2043_v23 = vadd.f32 %v2041_v22, %v3773_v50 }
 0xe23   :  { %v2796_v24 = vmul.f32 -1.442695, %v2043_v23 }
 0xe24   :  { %v2198_v34 = vpop.permute.xlu1 %2197 }
 0xe25   :  { %v2200_v36 = vadd.f32 %v2198_v34, %v3773_v50 }
 0xe27   :  { %v2799_v37 = vmul.f32 -1.442695, %v2200_v36 }
 0xe29   :  { %v3399_v11 = vpop.eup %3398 }
 0xe2a   :  { %2209 = vrot.lane.b32.xlu0 %v3399_v11, %s3455_s22  ;;  %v3401_v16 = vpop.eup %3400 }
 0xe2b   :  { %v1966_v17 = vadd.f32 1.0, %v3401_v16  ;;  %v2767_v16 = vmul.f32 -1.442695, %v431_v14 }
 0xe2d   :  { %3402 = vrcp.f32 %v1966_v17  ;;  %v2761_v17 = vld [vmem:[%s3994_s4] ss:$0 sm:$0xff]  ;;  %s3459_s4 = smov 1  }
 0xe2e   :  { %3404 = vpow2.f32 %v2796_v24 }
 0xe37   :  { %v3403_v18 = vpop.eup %3402 }
 0xe38   :  { %v3405_v25 = vpop.eup %3404 }
 0xe39   :  { %v2047_v26 = vadd.f32 1.0, %v3405_v25 }
 0xe3b   :  { %3406 = vrcp.f32 %v2047_v26 }
 0xe45   :  { %v3407_v27 = vpop.eup %3406 }
 0xe46   :  { %v2207_v28 = vmul.f32 %v3407_v27, %v3879_v46 }
 0xe9c   :  { %v2210_v19 = vpop.permute.xlu0 %2209 }
 0xe9d   :  { %v2212_v21 = vmul.f32 %v3403_v18, %v2210_v19  ;;  %v249_v18 = vadd.f32 %v2761_v17, %v3670_v53  ;;  %v2775_v53 = vld [vmem:[#allocation3] ss:$0 sm:$0xff] }
 0xe9f   :  { %2214 = vrot.lane.b32.xlu0 %v2212_v21, %s3456_s10  ;;  %v253_v19 = vsel %vm252_vm7, %v249_v18, -inf }
 0xf11   :  { %v2215_v30 = vpop.permute.xlu0 %2214 }
 0xf12   :  { %v3922_v32 = vadd.f32 %v2215_v30, %v2207_v28  ;;  %v1467_v30 = vadd.f32 %v2775_v53, %v3868_v15 }
 0xf14   :  { %3408 = vtanh.f32 %v3922_v32 }
 0xf15   :  { %3410 = vpow2.f32 %v2799_v37 }
 0xf1e   :  { %v3409_v33 = vpop.eup %3408 }
 0xf1f   :  { %2220 = vrot.lane.b32.xlu0 %v3409_v33, %s3449_s26  ;;  %v3411_v39 = vpop.eup %3410 }
 0xf20   :  { %v2204_v40 = vadd.f32 1.0, %v3411_v39 }
 0xf22   :  { %3412 = vrcp.f32 %v2204_v40 }
 0xf2c   :  { %v3413_v41 = vpop.eup %3412 }
 0xf91   :  { %v2221_v42 = vpop.permute.xlu0 %2220 }
 0xf92   :  { %v2223_v43 = vmul.f32 %v3413_v41, %v2221_v42 }
 0xf94   :  { %v2224_v44 = vmax.f32 %v2223_v43, 0.0  ;;  %2303 = vrot.lane.b32.xlu1 %v2223_v43, %s3454_s21 }
 0xf96   :  { %2226 = vrot.lane.b32.xlu0 %v2224_v44, %s3454_s21 }
0x1006   :  { %v2304_v45 = vpop.permute.xlu1 %2303 }
0x1007   :  { %3161 = vmatmul.mubr.msk.f32.vlgmr.msra.gmra.mrb[28].mxu0 %vm360_vm6, %v2304_v45 }
0x1008   :  { %3313 = vmatpush3.bf16.msra.mxu0 %v3746_v35  ;;  %v2227_v46 = vpop.permute.xlu0 %2226  ;;  %3174 = vmatprep.mubr.msk.f32.mxu0 %vm3450_vm0, %v3451_v6 }
0x1009   :  { %3154 = vmatmul.mubr.msk.f32.vlgmr.msra.gmra.mrb[22].mxu1 %vm360_vm6, %v2227_v46  ;;  %3317 = vmatprep.subr.bf16.mxu0 %v3448_v1 }
0x100a   :  { %3310 = vmatpush3.bf16.msra.mxu1 %v3739_v31  ;;  %3167 = vmatprep.mubr.msk.f32.mxu1 %vm3450_vm0, %v3451_v6 }
0x100b   :  { %3175 = vmatmul.mubr.msk.f32.vlgmr.msra.gmra.mrb[30].mxu0 %vm360_vm6, %v2304_v45  ;;  %3314 = vmatprep.subr.bf16.mxu1 %v3448_v1 }
0x100c   :  { %3319 = vmatpush3.bf16.msra.mxu0 %v3789_v12  ;;  %3188 = vmatprep.mubr.msk.f32.mxu0 %vm3450_vm0, %v3451_v6 }
0x100d   :  { %3168 = vmatmul.mubr.msk.f32.vlgmr.msra.gmra.mrb[24].mxu1 %vm360_vm6, %v2304_v45 }
0x100e   :  { %3316 = vmatpush3.bf16.msra.mxu1 %v3756_v38  ;;  %3181 = vmatprep.mubr.msk.f32.mxu1 %vm3450_vm0, %v3451_v6 }
0x1011   :  { %3182 = vmatmul.mubr.msk.f32.vlgmr.msra.gmra.mrb[26].mxu1 %vm360_vm6, %v2304_v45 }
0x10da   :  { %v2373_v31 = vpop.f32.mrb[28].mxu0 }
0x10db   :  { %v3162_v35 = vpop.f32.mrb[29].mxu0  ;;  %v2377_v57 = vadd.f32 %v2373_v31, %v3773_v50 }
0x10dc   :  { %v3948_v47 = vpop.f32.mrb[22].mxu1 }
0x10dd   :  { %v3155_v48 = vpop.f32.mrb[23].mxu1  ;;  %v2802_v58 = vmul.f32 -1.442695, %v2377_v57  ;;  %v2297_v33 = vadd.f32 %v2775_v53, %v3948_v47 }
0x10de   :  { %v2531_v1 = vpop.f32.mrb[30].mxu0 }
0x10df   :  { %2536 = vrot.lane.b32.xlu1 %v2531_v1, %s3449_s26  ;;  %v3176_v12 = vpop.f32.mrb[31].mxu0 }
0x10e0   :  { %v2450_v49 = vpop.f32.mrb[24].mxu1 }
0x10e1   :  { %v3169_v51 = vpop.f32.mrb[25].mxu1 }
0x10e2   :  { %v1052_v51 = vadd.f32 %v2775_v53, %v3825_v29 }
0x10e3   :  { %2455 = vrot.lane.b32.xlu1 %v2450_v49, %s3456_s10 }
0x10e4   :  { %v2607_v54 = vpop.f32.mrb[26].mxu1 }
0x10e5   :  { %v3183_v38 = vpop.f32.mrb[27].mxu1 }
0x10e7   :  { %2612 = vrot.lane.b32.xlu1 %v2607_v54, %s3457_s11 }
0x1151   :  { %v2537_v6 = vpop.permute.xlu1 %2536 }
0x1152   :  { %v2539_v55 = vadd.f32 %v2537_v6, %v3773_v50 }
0x1154   :  { %3414 = vtanh.f32 %v2539_v55 }
0x1155   :  { %3416 = vpow2.f32 %v2802_v58  ;;  %v2456_v2 = vpop.permute.xlu1 %2455 }
0x1156   :  { %v2458_v3 = vadd.f32 %v2456_v2, %v3773_v50 }
0x1158   :  { %v2804_v4 = vmul.f32 -1.442695, %v2458_v3 }
0x1159   :  { %v2613_v20 = vpop.permute.xlu1 %2612 }
0x115a   :  { %v2615_v25 = vadd.f32 %v2613_v20, %v3773_v50 }
0x115c   :  { %v2807_v26 = vmul.f32 -1.442695, %v2615_v25 }
0x115e   :  { %v3415_v56 = vpop.eup %3414 }
0x115f   :  { %2624 = vrot.lane.b32.xlu0 %v3415_v56, %s3455_s22  ;;  %v3417_v59 = vpop.eup %3416 }
0x1160   :  { %v2381_v60 = vadd.f32 1.0, %v3417_v59 }
0x1162   :  { %3418 = vrcp.f32 %v2381_v60 }
0x1163   :  { %3420 = vpow2.f32 %v2804_v4 }
0x116c   :  { %v3419_v61 = vpop.eup %3418 }
0x116d   :  { %v3421_v5 = vpop.eup %3420 }
0x116e   :  { %v2462_v7 = vadd.f32 1.0, %v3421_v5 }
0x1170   :  { %3422 = vrcp.f32 %v2462_v7 }
0x117a   :  { %v3423_v8 = vpop.eup %3422 }
0x117b   :  { %v2622_v52 = vmul.f32 %v3423_v8, %v3922_v32  ;;  %v1882_v32 = vadd.f32 %v2775_v53, %v3911_v0 }
0x11d1   :  { %v2625_v62 = vpop.permute.xlu0 %2624 }
0x11d2   :  { %v2627_v63 = vmul.f32 %v3419_v61, %v2625_v62 }
0x11d4   :  { %2629 = vrot.lane.b32.xlu0 %v2627_v63, %s3456_s10 }
0x1246   :  { %v2630_v9 = vpop.permute.xlu0 %2629 }
0x1247   :  { %v2632_v10 = vadd.f32 %v2630_v9, %v2622_v52 }
0x1249   :  { %3424 = vtanh.f32 %v2632_v10 }
0x124a   :  { %3426 = vpow2.f32 %v2767_v16 }
0x1253   :  { %v3425_v11 = vpop.eup %3424 }
0x1254   :  { %2635 = vrot.lane.b32.xlu0 %v3425_v11, %s3449_s26  ;;  %v3427_v21 = vpop.eup %3426  ;;  %s3458_s26 = smov 4  }
0x1255   :  { %v437_v22 = vadd.f32 1.0, %v3427_v21 }
0x1257   :  { %3428 = vrcp.f32 %v437_v22 }
0x1258   :  { %3430 = vpow2.f32 %v2807_v26 }
0x1261   :  { %v3429_v23 = vpop.eup %3428 }
0x1262   :  { %v440_v24 = vmul.f32 60.0, %v3429_v23  ;;  %v3431_v27 = vpop.eup %3430 }
0x1263   :  { %v2619_v28 = vadd.f32 1.0, %v3431_v27 }
0x1265   :  { %3432 = vrcp.f32 %v2619_v28 }
0x1266   :  { %3434 = vtanh.f32 %v1467_v30 }
0x1267   :  { %3436 = vtanh.f32 %v1882_v32 }
0x1268   :  { %3438 = vtanh.f32 %v2297_v33 }
0x126f   :  { %v3433_v34 = vpop.eup %3432 }
0x1270   :  { %v3435_v50 = vpop.eup %3434 }
0x1271   :  { %v1471_v40 = vmul.f32 10.0, %v3435_v50  ;;  %v3437_v41 = vpop.eup %3436 }
0x1272   :  { %v1886_v15 = vmul.f32 10.0, %v3437_v41  ;;  %v3439_v42 = vpop.eup %3438 }
0x1273   :  { %254 = vmax.xlane.f32.xlu0 %v253_v19  ;;  %v2301_v0 = vmul.f32 10.0, %v3439_v42 }
0x1289   :  { %2742 = vrot.lane.b32.xlu0 %v440_v24, %s3458_s26 }
0x12c6   :  { %v2636_v36 = vpop.permute.xlu0 %2635 }
0x12c7   :  { %v2638_v37 = vmul.f32 %v3433_v34, %v2636_v36 }
0x12c9   :  { %v2639_v39 = vmax.f32 %v2638_v37, 0.0 }
0x12cb   :  { %2641 = vrot.lane.b32.xlu1 %v2639_v39, %s3454_s21  ;;  %s3462_s21 = smov 5  }
0x12cf   :  { %2718 = vrot.lane.b32.xlu1 %v1471_v40, %s3459_s4 }
0x12d3   :  { %2722 = vrot.lane.b32.xlu1 %v1886_v15, %s3460_s23 }
0x12d7   :  { %2726 = vrot.lane.b32.xlu1 %v2301_v0, %s3461_s20 }
0x1300   :  { %v255_v47 = vpop.xlane.xlu0 %254 }
0x1301   :  { %v256_v48 = vsub.f32 %v249_v18, %v255_v47 }
0x1303   :  { %v257_v1 = vmul.f32 1.442695, %v256_v48 }
0x1304   :  { %v2743_v2 = vpop.permute.xlu0 %2742 }
0x133d   :  { %v2642_v43 = vpop.permute.xlu1 %2641 }
0x133e   :  { %3189 = vmatmul.mubr.msk.f32.vlgmr.msra.gmra.mrb[32].mxu0 %vm360_vm6, %v2642_v43 }
0x1341   :  { %v2719_v54 = vpop.permute.xlu1 %2718 }
0x1345   :  { %v2723_v38 = vpop.permute.xlu1 %2722 }
0x1349   :  { %v2727_v56 = vpop.permute.xlu1 %2726 }
0x1411   :  { %v2711_v44 = vpop.f32.mrb[32].mxu0 }
0x1412   :  { %v2712_v45 = vadd.f32 %v2775_v53, %v2711_v44  ;;  %v3190_v46 = vpop.f32.mrb[33].mxu0 }
0x1414   :  { %3440 = vtanh.f32 %v2712_v45 }
0x1415   :  { %3442 = vpow2.f32 %v257_v1 }
0x1416   :  { %3444 = vtanh.f32 %v1052_v51 }
0x141e   :  { %v3441_v31 = vpop.eup %3440 }
0x141f   :  { %v2716_v35 = vmul.f32 10.0, %v3441_v31  ;;  %v3443_v12 = vpop.eup %3442 }
0x1420   :  { %v259_v49 = vsel %vm252_vm7, %v3443_v12, 0.0  ;;  %v3445_v6 = vpop.eup %3444 }
0x1421   :  { %2730 = vrot.lane.b32.xlu1 %v2716_v35, %s3458_s26  ;;  %v1056_v55 = vmul.f32 10.0, %v3445_v6 }
0x1423   :  { %v2734_v57 = vsel %vm2733_vm8, %v1056_v55, %v2719_v54 }
0x1424   :  { %v2736_v58 = vsel %vm2735_vm9, %v2734_v57, %v2723_v38 }
0x1425   :  { %v2738_v59 = vsel %vm2737_vm10, %v2736_v58, %v2727_v56 }
0x1445   :  { %260 = vadd.xlane.f32.xlu1 %v259_v49 }
0x1493   :  { %v2731_v60 = vpop.permute.xlu1 %2730 }
0x1494   :  { %v2740_v61 = vsel %vm2739_vm11, %v2738_v59, %v2731_v60 }
0x1495   :  { %2746 = vrot.lane.b32.xlu1 %v2740_v61, %s3462_s21 }
0x14d2   :  { %v261_v62 = vpop.xlane.xlu1 %260 }
0x14d3   :  { %3446 = vrcp.f32 %v261_v62 }
0x14dd   :  { %v3447_v29 = vpop.eup %3446 }
0x14de   :  { %v263_v63 = vmul.f32 %v3447_v29, %v3443_v12 }
0x14e0   :  { %v2749_v3 = vsel %vm2739_vm11, %v263_v63, %v2743_v2 }
0x1507   :  { %v2747_v4 = vpop.permute.xlu1 %2746 }
0x1508   :  { %v2751_v5 = vsel %vm2750_vm12, %v2749_v3, %v2747_v4 }
0x1509   :  { %v2753_v7 = vsel %vm2752_vm13, %v2751_v5, 0.0 }
0x150a   :  { %2754 = vst [vmem:[%s3995_s16] sm:$0x3] %v2753_v7 }

// kernel: mixnet_forward.2
= control target key start
LH: loop header
LB: loop body
LE: loop exit
PB: predicated region body
PF: predicated region fallthrough
CT: control target
= control target key end

     0   :  { %s7849_s27 = smov 0   ;;  %s8620_s0 = inlined_call_operand.vmem [shape: f32[3,2,16,2], index: 0, kind: input, shape index: {}]   ;;  %s8621_s1 = inlined_call_operand.vmem [shape: f32[16,32], index: 1, kind: input, shape index: {}]   ;;  %s8622_s2 = inlined_call_operand.vmem [shape: f32[3,1,16], index: 2, kind: input, shape index: {}]   ;;  %s8623_s3 = inlined_call_operand.vmem [shape: f32[3,16,1], index: 3, kind: input, shape index: {}]   ;;  %s8624_s4 = inlined_call_operand.vmem [shape: f32[2,32], index: 4, kind: input, shape index: {}]   ;;  %s8625_s5 = inlined_call_operand.vmem [shape: f32[1,32], index: 5, kind: input, shape index: {}]   ;;  %s8626_s6 = inlined_call_operand.vmem [shape: f32[3,2,32,96], index: 6, kind: input, shape index: {}]   ;;  %s8627_s7 = inlined_call_operand.vmem [shape: f32[3,2,1,96], index: 7, kind: input, shape index: {}]   ;;  %s8628_s8 = inlined_call_operand.vmem [shape: f32[3,2,32,32], index: 8, kind: input, shape index: {}]   ;;  %s8629_s9 = inlined_call_operand.vmem [shape: f32[3,2,1,32], index: 9, kind: input, shape index: {}]   ;;  %s8630_s10 = inlined_call_operand.vmem [shape: f32[3,2,1,32], index: 10, kind: input, shape index: {}]   ;;  %s8631_s11 = inlined_call_operand.vmem [shape: f32[3,2,1,32], index: 11, kind: input, shape index: {}]   ;;  %s8632_s12 = inlined_call_operand.vmem [shape: f32[3,2,32,64], index: 12, kind: input, shape index: {}]   ;;  %s8633_s13 = inlined_call_operand.vmem [shape: f32[3,2,1,64], index: 13, kind: input, shape index: {}]   ;;  %s8634_s14 = inlined_call_operand.vmem [shape: f32[3,2,64,32], index: 14, kind: input, shape index: {}]   ;;  %s8635_s15 = inlined_call_operand.vmem [shape: f32[3,2,1,32], index: 15, kind: input, shape index: {}]   ;;  %s8636_s16 = inlined_call_operand.vmem [shape: f32[3,2,1,32], index: 16, kind: input, shape index: {}]   ;;  %s8637_s17 = inlined_call_operand.vmem [shape: f32[3,2,1,32], index: 17, kind: input, shape index: {}]   ;;  %s8638_s18 = inlined_call_operand.vmem [shape: f32[3,2,32], index: 18, kind: output, shape index: {}]  }
   0x1   :  { %8663 = sst [smem:[#allocation2_spill]] %s8620_s0 }
   0x2   :  { %8664 = sst [smem:[#allocation3_spill]] %s8621_s1 }
   0x3   :  { %8665 = sst [smem:[#allocation4_spill]] %s8622_s2 }
   0x4   :  { %8666 = sst [smem:[#allocation5_spill]] %s8624_s4 }
   0x5   :  { %8667 = sst [smem:[#allocation6_spill]] %s8625_s5 }
   0x6   :  { %8668 = sst [smem:[#allocation7_spill]] %s8626_s6 }
   0x7   :  { %8669 = sst [smem:[#allocation8_spill]] %s8627_s7 }
   0x8 LB: > { %s6281_s28 = sadd.s32 4294967295, %s7740_s27   ;;  %p6285_p0 = scmp.ge.s32.totalorder %s7740_s27, 1  ;;  %s7740_s27 = sphi %s7849_s27, %s28_s27  }
   0x9   : > { %p642_p1 = scmp.lt.s32.totalorder %s7740_s27, 4 }
   0xb   : > { %p643_p2 = pnand %p6285_p0, %p642_p1 }
   0xc   : > { %s8670_s4 = sld [smem:[#allocation5_spill]] (!%p643_p2)  ;;  %vm854_vm0 = vcmask (!%p643_p2), 1041408   ;;  %p755_p3 = scmp.lt.s32.totalorder (!%p643_p2), %s6281_s28, 2  ;;  %vm841_vm1 = vcmask (!%p643_p2), 15360   ;;  %vm958_vm2 = vcmask (!%p643_p2), 261120   ;;  %vm1066_vm3 = vcmask (!%p643_p2), 64512  }
   0xd   : > { %646 = sbr.rel (%p643_p2) target bundleno = 8979 (0x2313), region = 92  ;;  %s8671_s20 = sld [smem:[#allocation2_spill]] (!%p643_p2)  ;;  %vm7940_vm4 = vmpackc.low (!%p643_p2), %vm1066_vm3, %vm1066_vm3  ;;  %vm1253_vm5 = vcmask (!%p643_p2), 130048   ;;  %vm3309_vm6 = vcmask (!%p643_p2), 523264   ;;  %vm6058_vm7 = vcmask (!%p643_p2), 1041409   ;;  %vm6061_vm8 = vcmask (!%p643_p2), 254976  }
   0xe   : > { %s8672_s6 = sld [smem:[#allocation7_spill]] (!%p643_p2)  ;;  %s8673_s5 = sld [smem:[#allocation6_spill]] (!%p643_p2) }
   0xf   : > { %s8675_s7 = sld [smem:[#allocation8_spill]] (!%p643_p2)  ;;  %s8660_s25 = smov (!%p643_p2), 96  }
  0x10   : > { %s8678_s30 = sld [smem:[#allocation4_spill]] (!%p643_p2)  ;;  %s8658_s1 = smov (!%p643_p2), 64  }
  0x11   : > { %s8644_s2 = smov (!%p643_p2), 120   ;;  %s8642_s26 = smov (!%p643_p2), 56  }
  0x12   : > { %v833_v0 = vld [vmem:[%s8670_s4] sm:$0x3] (!%p643_p2)  ;;  %s8640_s29 = smov (!%p643_p2), 80  }
  0x13   : > { %6747 = vmatprep.subr.msk.mxu0 (!%p643_p2), %vm854_vm0, %v833_v0 }
  0x14   : > { %6748 = vmatpush3.msk.msra.mxu0 %vm854_vm0, %v833_v0  ;;  %s8691_s28 = smov (!%p755_p3, %s6281_s28), 2  ;;  %v6307_v11 = vld [vmem:[%s8673_s5] ss:$0 sm:$0xff]  ;;  %s8679_s5 = smov 96  }
  0x15   : > { %s6512_s0 = sshll.u32 %s8691_s28, 5  ;;  %s7867_s22 = sshll.u32 %s8691_s28, 6 }
  0x16   : > { %s759_s21 = scalar_lea.vmem %s8671_s20, %s6512_s0  ;;  %s7873_s24 = scalar_lea.vmem %s8672_s6, %s7867_s22 }
  0x17   : > { %v824_v1 = vld [vmem:[%s759_s21] sm:$0xff]  ;;  %v825_v2 = vld [vmem:[%s759_s21 + $0x8] sm:$0xff]  ;;  %v826_v3 = vld [vmem:[%s759_s21 + $0x10] sm:$0xff]  ;;  %s8674_s0 = sld [smem:[#allocation3_spill]]  ;;  %s7905_s20 = sshll.u32 %s8691_s28, 1 }
  0x18   : > { %6749 = vmatprep.mubr.msk.f32.mxu0 %vm841_vm1, %v824_v1  ;;  %v947_v4 = vld [vmem:[%s7873_s24] sm:$0xff]  ;;  %v948_v5 = vld [vmem:[%s7873_s24 + $0x8] sm:$0xff]  ;;  %v827_v6 = vld [vmem:[%s759_s21 + $0x18] sm:$0xff]  ;;  %s7911_s23 = scalar_lea.vmem %s8675_s7, %s7905_s20  ;;  %s7960_s19 = scalar_lea.vmem %s8678_s30, %s8691_s28 }
  0x19   : > { %6750 = vmatmul.mubr.msk.f32.vlgmr.msra.gmra.mrb[0].mxu0 %vm841_vm1, %v825_v2  ;;  %v7143_v7 = vpack.c.bf16 %v948_v5, %v947_v4  ;;  %v949_v8 = vld [vmem:[%s7873_s24 + $0x10] sm:$0xff]  ;;  %v950_v9 = vld [vmem:[%s7873_s24 + $0x18] sm:$0xff]  ;;  %v6313_v26 = vld [vmem:[%s7911_s23] ss:$0 sm:$0xff]  ;;  %s8656_s21 = smov 88   ;;  %s8646_s30 = smov 112  }
  0x1a   : > { %6752 = vmatprep.mubr.msk.f32.mxu0 %vm841_vm1, %v826_v3  ;;  %v7147_v10 = vpack.c.bf16 %v950_v9, %v949_v8  ;;  %v7963_v47 = vld [vmem:[%s7960_s19] ss:$0 sm:$0xff]  ;;  %s8234_s4 = scalar_lea.vmem %s8631_s11, %s7905_s20  ;;  %s8288_s7 = scalar_lea.vmem %s8637_s17, %s7905_s20 }
  0x1b   : > { %7144 = vmatprep.subr.bf16.mxu1 %v7143_v7  ;;  %s8680_s6 = smov 64  }
  0x1c   : > { %7146 = vmatpush3.bf16.msra.mxu1 %v7143_v7 }
  0x1d   : > { %6753 = vmatmul.mubr.msk.f32.gmra.mrb[2].mxu0 %vm841_vm1, %v827_v6  ;;  %7148 = vmatprep.subr.bf16.mxu1 %v7147_v10  ;;  %v828_v15 = vld [vmem:[%s8674_s0] sm:$0xff]  ;;  %v829_v16 = vld [vmem:[%s8674_s0 + $0x8] sm:$0xff]  ;;  %s8282_s0 = scalar_lea.vmem %s8636_s16, %s7905_s20 }
  0x20   : > { %7150 = vmatpush3.bf16.msra.mxu1 %v7147_v10 }
  0xec   : > { %v6751_v12 = vpop.f32.mrb[0].mxu0 }
  0xed   : > { %v930_v13 = vadd.f32 %v6751_v12, %v6307_v11  ;;  %v924_v14 = vpop.f32.mrb[1].mxu0 }
  0xee   : > { %v925_v17 = vadd.f32 %v6307_v11, %v924_v14 }
  0xef   : > { %v7890_v20 = vadd.f32 %v930_v13, %v829_v16 }
  0xf0   : > { %v6754_v18 = vpop.f32.mrb[2].mxu0  ;;  %v7888_v19 = vadd.f32 %v925_v17, %v828_v15 }
  0xf1   : > { %v940_v21 = vadd.f32 %v6754_v18, %v6307_v11  ;;  %v934_v22 = vpop.f32.mrb[3].mxu0 }
  0xf2   : > { %v935_v23 = vadd.f32 %v6307_v11, %v934_v22  ;;  %6763 = vmatprep.mubr.msk.f32.mxu1 %vm958_vm2, %v7888_v19 }
  0xf3   : > { %v7894_v24 = vadd.f32 %v940_v21, %v829_v16  ;;  %6764 = vmatmul.mubr.msk.f32.vlgmr.msra.gmra.mrb[0].mxu1 %vm958_vm2, %v7890_v20 }
  0xf4   : > { %v7898_v25 = vadd.f32 %v935_v23, %v828_v15 }
  0xf6   : > { %6766 = vmatprep.mubr.msk.f32.mxu1 %vm958_vm2, %v7898_v25 }
  0xf7   : > { %6767 = vmatmul.mubr.msk.f32.gmra.mrb[2].mxu1 %vm958_vm2, %v7894_v24 }
 0x1c6   : > { %v6765_v27 = vpop.f32.mrb[0].mxu1 }
 0x1c7   : > { %v7914_v28 = vadd.f32 %v6765_v27, %v6313_v26  ;;  %v1037_v29 = vpop.f32.mrb[1].mxu1 }
 0x1c8   : > { %v7916_v30 = vadd.f32 %v6313_v26, %v1037_v29 }
 0x1ca   : > { %v6768_v31 = vpop.f32.mrb[2].mxu1  ;;  %6773 = vmatprep.mubr.msk.f32.mxu0 %vm1066_vm3, %v7916_v30  ;;  %v7922_v32 = vpack.i.bf16 %v7914_v28, %v7916_v30 }
 0x1cb   : > { %v7924_v33 = vadd.f32 %v6768_v31, %v6313_v26  ;;  %v1047_v34 = vpop.f32.mrb[3].mxu1 }
 0x1cc   : > { %v7926_v35 = vadd.f32 %v6313_v26, %v1047_v34  ;;  %7412 = vrot.lane.b32.xlu0 %v7922_v32, %s8660_s25 }
 0x1ce   : > { %v7932_v36 = vpack.i.bf16 %v7924_v33, %v7926_v35  ;;  %6780 = vmatprep.mubr.msk.f32.mxu1 %vm1066_vm3, %v7926_v35 }
 0x1d0   : > { %7417 = vrot.lane.b32.xlu0 %v7932_v36, %s8660_s25  ;;  %s8263_s25 = scalar_lea.vmem %s8635_s15, %s7905_s20 }
 0x23e   : > { %v7413_v37 = vpop.permute.xlu0 %7412 }
 0x23f   : > { %v7415_v38 = vunpack.i.h.bf16 %v7413_v37  ;;  %v7414_v39 = vunpack.i.l.bf16 %v7413_v37 }
 0x241   : > { %v7151_v41 = vpack.c.bf16 %v7415_v38, %v7414_v39 }
 0x242   : > { %v7418_v42 = vpop.permute.xlu0 %7417 }
 0x243   : > { %v7420_v43 = vunpack.i.h.bf16 %v7418_v42  ;;  %v7419_v44 = vunpack.i.l.bf16 %v7418_v42  ;;  %7153 = vmatprep.subr.msk.bf16.mxu0 %vm7940_vm4, %v7151_v41 }
 0x244   : > { %7156 = vmatpush3.bf16.xpose.msk.msra.mxu0 %vm7940_vm4, %v7151_v41 }
 0x245   : > { %v7157_v45 = vpack.c.bf16 %v7420_v43, %v7419_v44 }
 0x247   : > { %7159 = vmatprep.subr.msk.bf16.mxu1 %vm7940_vm4, %v7157_v45 }
 0x248   : > { %7162 = vmatpush3.bf16.xpose.msk.msra.mxu1 %vm7940_vm4, %v7157_v45 }
 0x24b   : > { %6774 = vmatmul.mubr.msk.f32.vlgmr.msra.gmra.mrb[4].mxu0 %vm1066_vm3, %v7914_v28 }
 0x24f   : > { %6781 = vmatmul.mubr.msk.f32.vlgmr.msra.gmra.mrb[4].mxu1 %vm1066_vm3, %v7924_v33 }
 0x31e   : > { %v6775_v46 = vpop.f32.mrb[4].mxu0 }
 0x31f   : > { %v1141_v48 = vpop.f32.mrb[5].mxu0  ;;  %v1240_v49 = vmul.f32 0.35355338, %v6775_v46 }
 0x320   : > { %v1239_v50 = vmul.f32 0.35355338, %v1141_v48 }
 0x321   : > { %v1250_v57 = vadd.f32 %v7963_v47, %v1240_v49 }
 0x322   : > { %v6782_v51 = vpop.f32.mrb[4].mxu1  ;;  %v1249_v52 = vadd.f32 %v7963_v47, %v1239_v50 }
 0x323   : > { %v1230_v53 = vpop.f32.mrb[5].mxu1  ;;  %v1242_v54 = vmul.f32 0.35355338, %v6782_v51  ;;  %v1257_v60 = vsel %vm1253_vm5, %v1250_v57, -inf }
 0x324   : > { %v1241_v55 = vmul.f32 0.35355338, %v1230_v53  ;;  %v1254_v56 = vsel %vm1253_vm5, %v1249_v52, -inf }
 0x325   : > { %1255 = vmax.xlane.f32.xlu1 %v1254_v56  ;;  %v1252_v61 = vadd.f32 %v7963_v47, %v1242_v54 }
 0x326   : > { %v1251_v58 = vadd.f32 %v7963_v47, %v1241_v55 }
 0x327   : > { %v1263_v62 = vsel %vm1253_vm5, %v1252_v61, -inf }
 0x328   : > { %v1260_v59 = vsel %vm1253_vm5, %v1251_v58, -inf }
 0x329   : > { %1261 = vmax.xlane.f32.xlu0 %v1260_v59  ;;  %1258 = vmax.xlane.f32.xlu1 %v1257_v60 }
 0x32d   : > { %1264 = vmax.xlane.f32.xlu1 %v1263_v62 }
 0x33e   : > { %7422 = vrot.lane.b32.xlu1 %v7922_v32, %s8658_s1 }
 0x33f   : > { %7427 = vrot.lane.b32.xlu0 %v7932_v36, %s8658_s1  ;;  %s6517_s1 = sshll.u32 %s8691_s28, 7 }
 0x342   : > { %7432 = vrot.lane.b32.xlu1 %v7922_v32, %s8656_s21 }
 0x343   : > { %1563 = vrot.lane.b32.xlu0 %v7926_v35, %s8644_s2 }
 0x346   : > { %7437 = vrot.lane.b32.xlu1 %v7932_v36, %s8656_s21  ;;  %s8206_s21 = scalar_lea.vmem %s8632_s12, %s7867_s22 }
 0x34a   : > { %1472 = vrot.lane.b32.xlu1 %v7916_v30, %s8644_s2 }
 0x34e   : > { %1474 = vrot.lane.b32.xlu1 %v7914_v28, %s8644_s2 }
 0x3b2   : > { %v1256_v63 = vpop.xlane.xlu1 %1255 }
 0x3b3   : > { %v1266_v0 = vsub.f32 %v1249_v52, %v1256_v63 }
 0x3b5   : > { %v1270_v5 = vmul.f32 1.442695, %v1266_v0 }
 0x3b6   : > { %v1262_v1 = vpop.xlane.xlu0 %1261  ;;  %v1259_v2 = vpop.xlane.xlu1 %1258 }
 0x3b7   : > { %v1267_v3 = vsub.f32 %v1250_v57, %v1259_v2  ;;  %v1268_v9 = vsub.f32 %v1251_v58, %v1262_v1 }
 0x3b9   : > { %v1272_v4 = vmul.f32 1.442695, %v1267_v3  ;;  %v1274_v17 = vmul.f32 1.442695, %v1268_v9 }
 0x3ba   : > { %v1265_v6 = vpop.xlane.xlu1 %1264  ;;  %v7428_v8 = vpop.permute.xlu0 %7427 }
 0x3bb   : > { %v1269_v7 = vsub.f32 %v1252_v61, %v1265_v6  ;;  %7573 = vpow2.f32 %v1272_v4  ;;  %v7430_v12 = vunpack.i.h.bf16 %v7428_v8  ;;  %v7429_v13 = vunpack.i.l.bf16 %v7428_v8 }
 0x3bc   : > { %7575 = vpow2.f32 %v1270_v5 }
 0x3bd   : > { %v1276_v10 = vmul.f32 1.442695, %v1269_v7  ;;  %v7167_v23 = vpack.c.bf16 %v7430_v12, %v7429_v13 }
 0x3be   : > { %v7423_v11 = vpop.permute.xlu1 %7422  ;;  %v1564_v61 = vpop.permute.xlu0 %1563 }
 0x3bf   : > { %v7425_v14 = vunpack.i.h.bf16 %v7423_v11  ;;  %v7424_v15 = vunpack.i.l.bf16 %v7423_v11  ;;  %7577 = vpow2.f32 %v1276_v10 }
 0x3c0   : > { %7579 = vpow2.f32 %v1274_v17 }
 0x3c1   : > { %v7163_v16 = vpack.c.bf16 %v7425_v14, %v7424_v15 }
 0x3c2   : > { %v7433_v18 = vpop.permute.xlu1 %7432 }
 0x3c3   : > { %v7435_v21 = vunpack.i.h.bf16 %v7433_v18  ;;  %v7434_v22 = vunpack.i.l.bf16 %v7433_v18  ;;  %7164 = vmatprep.subr.bf16.mxu0 %v7163_v16 }
 0x3c4   : > { %7166 = vmatpush3.bf16.msra.mxu0 %v7163_v16 }
 0x3c5   : > { %v7171_v26 = vpack.c.bf16 %v7435_v21, %v7434_v22  ;;  %7168 = vmatprep.subr.bf16.mxu0 %v7167_v23  ;;  %v7574_v27 = vpop.eup %7573 }
 0x3c6   : > { %v7438_v29 = vpop.permute.xlu1 %7437  ;;  %v1281_v31 = vsel %vm1253_vm5, %v7574_v27, 0.0  ;;  %v7576_v34 = vpop.eup %7575 }
 0x3c7   : > { %7173 = vmatprep.subr.msk.bf16.mxu1 %vm7940_vm4, %v7171_v26  ;;  %1282 = vadd.xlane.f32.xlu1 %v1281_v31  ;;  %v1278_v38 = vsel %vm1253_vm5, %v7576_v34, 0.0  ;;  %v7440_v52 = vunpack.i.h.bf16 %v7438_v29  ;;  %v7439_v53 = vunpack.i.l.bf16 %v7438_v29 }
 0x3c8   : > { %7176 = vmatpush3.bf16.xpose.msk.msra.mxu1 %vm7940_vm4, %v7171_v26 }
 0x3c9   : > { %v7578_v39 = vpop.eup %7577  ;;  %v7177_v56 = vpack.c.bf16 %v7440_v52, %v7439_v53 }
 0x3ca   : > { %v1473_v37 = vpop.permute.xlu1 %1472  ;;  %v1287_v42 = vsel %vm1253_vm5, %v7578_v39, 0.0  ;;  %v7580_v43 = vpop.eup %7579 }
 0x3cb   : > { %6801 = vmatprep.mubr.msk.f32.mxu1 %vm1066_vm3, %v1473_v37  ;;  %1279 = vadd.xlane.f32.xlu1 %v1278_v38  ;;  %v1284_v44 = vsel %vm1253_vm5, %v7580_v43, 0.0 }
 0x3ce   : > { %v1475_v41 = vpop.permute.xlu1 %1474 }
 0x3cf   : > { %6802 = vmatmul.mubr.msk.f32.vlgmr.msra.gmra.mrb[6].mxu1 %vm1066_vm3, %v1475_v41  ;;  %1288 = vadd.xlane.f32.xlu1 %v1287_v42 }
 0x3d3   : > { %1285 = vadd.xlane.f32.xlu1 %v1284_v44 }
 0x3e4   : > { %1565 = vrot.lane.b32.xlu1 %v7924_v33, %s8644_s2  ;;  %s8050_s2 = scalar_lea.vmem %s8628_s8, %s7867_s22  ;;  %s8216_s22 = scalar_lea.vmem %s8634_s14, %s6517_s1 }
 0x3e5   : > { %s8228_s1 = scalar_lea.vmem %s8630_s10, %s7905_s20 }
 0x454   : > { %v1283_v45 = vpop.xlane.xlu1 %1282 }
 0x455   : > { %7581 = vrcp.f32 %v1283_v45 }
 0x458   : > { %v1280_v46 = vpop.xlane.xlu1 %1279 }
 0x459   : > { %7583 = vrcp.f32 %v1280_v46 }
 0x45c   : > { %v1289_v48 = vpop.xlane.xlu1 %1288 }
 0x45d   : > { %7585 = vrcp.f32 %v1289_v48 }
 0x45f   : > { %v7582_v50 = vpop.eup %7581 }
 0x460   : > { %v1286_v49 = vpop.xlane.xlu1 %1285  ;;  %v1293_v55 = vmul.f32 %v7582_v50, %v7574_v27 }
 0x461   : > { %7587 = vrcp.f32 %v1286_v49 }
 0x463   : > { %v7584_v51 = vpop.eup %7583 }
 0x464   : > { %v1291_v54 = vmul.f32 %v7584_v51, %v7576_v34  ;;  %v1566_v62 = vpop.permute.xlu1 %1565 }
 0x466   : > { %6787 = vmatprep.mubr.msk.f32.mxu0 %vm1253_vm5, %v1291_v54 }
 0x467   : > { %6788 = vmatmul.mubr.msk.f32.vlgmr.msra.gmra.mrb[6].mxu0 %vm1253_vm5, %v1293_v55  ;;  %v7586_v57 = vpop.eup %7585 }
 0x468   : > { %7170 = vmatpush3.bf16.msra.mxu0 %v7167_v23  ;;  %v1297_v60 = vmul.f32 %v7586_v57, %v7578_v39 }
 0x469   : > { %7179 = vmatprep.subr.msk.bf16.mxu0 %vm7940_vm4, %v7177_v56 }
 0x46b   : > { %v7588_v58 = vpop.eup %7587 }
 0x46c   : > { %v1295_v59 = vmul.f32 %v7588_v58, %v7580_v43 }
 0x46e   : > { %6794 = vmatprep.mubr.msk.f32.mxu0 %vm1253_vm5, %v1295_v59 }
 0x46f   : > { %6795 = vmatmul.mubr.msk.f32.vlgmr.msra.gmra.mrb[8].mxu0 %vm1253_vm5, %v1297_v60 }
 0x470   : > { %6808 = vmatprep.mubr.msk.f32.mxu0 %vm1066_vm3, %v1564_v61 }
 0x471   : > { %7182 = vmatpush3.bf16.xpose.msk.msra.mxu0 %vm7940_vm4, %v7177_v56 }
 0x478   : > { %6809 = vmatmul.mubr.msk.f32.vlgmr.msra.gmra.mrb[10].mxu0 %vm1066_vm3, %v1566_v62 }
 0x4a2   : > { %v6803_v63 = vpop.f32.mrb[6].mxu1 }
 0x4a3   : > { %v1655_v0 = vmul.f32 0.35355338, %v6803_v63  ;;  %v1554_v1 = vpop.f32.mrb[7].mxu1  ;;  %v1056_v63 = vld [vmem:[%s8050_s2] sm:$0xff] }
 0x4a4   : > { %v1654_v2 = vmul.f32 0.35355338, %v1554_v1 }
 0x4a5   : > { %v1659_v3 = vadd.f32 %v7963_v47, %v1655_v0 }
 0x4a6   : > { %v1658_v4 = vadd.f32 %v7963_v47, %v1654_v2 }
 0x4a7   : > { %v1665_v5 = vsel %vm1253_vm5, %v1659_v3, -inf }
 0x4a8   : > { %1666 = vmax.xlane.f32.xlu1 %v1665_v5  ;;  %v1662_v6 = vsel %vm1253_vm5, %v1658_v4, -inf }
 0x4a9   : > { %1663 = vmax.xlane.f32.xlu0 %v1662_v6 }
 0x535   : > { %v1667_v12 = vpop.xlane.xlu1 %1666 }
 0x536   : > { %v1664_v7 = vpop.xlane.xlu0 %1663  ;;  %v1675_v16 = vsub.f32 %v1659_v3, %v1667_v12 }
 0x537   : > { %v1674_v8 = vsub.f32 %v1658_v4, %v1664_v7  ;;  %v1057_v7 = vld [vmem:[%s8050_s2 + $0x8] sm:$0xff] }
 0x538   : > { %v1680_v18 = vmul.f32 1.442695, %v1675_v16 }
 0x539   : > { %v1678_v9 = vmul.f32 1.442695, %v1674_v8 }
 0x53a   : > { %v8013_v10 = vpop.f32.mrb[6].mxu0 }
 0x53b   : > { %7589 = vpow2.f32 %v1678_v9  ;;  %v8015_v11 = vpop.f32.mrb[7].mxu0 }
 0x53c   : > { %7591 = vpow2.f32 %v1680_v18 }
 0x542   : > { %v8017_v13 = vpop.f32.mrb[8].mxu0 }
 0x543   : > { %v8019_v14 = vpop.f32.mrb[9].mxu0 }
 0x545   : > { %v7590_v15 = vpop.eup %7589 }
 0x546   : > { %v1686_v17 = vsel %vm1253_vm5, %v7590_v15, 0.0  ;;  %v7592_v37 = vpop.eup %7591 }
 0x547   : > { %1687 = vadd.xlane.f32.xlu1 %v1686_v17  ;;  %v1689_v38 = vsel %vm1253_vm5, %v7592_v37, 0.0 }
 0x54b   : > { %v6810_v21 = vpop.f32.mrb[10].mxu0 }
 0x54c   : > { %v1645_v22 = vpop.f32.mrb[11].mxu0  ;;  %v1657_v23 = vmul.f32 0.35355338, %v6810_v21 }
 0x54d   : > { %v1656_v26 = vmul.f32 0.35355338, %v1645_v22 }
 0x54e   : > { %v1661_v31 = vadd.f32 %v7963_v47, %v1657_v23 }
 0x54f   : > { %v1660_v27 = vadd.f32 %v7963_v47, %v1656_v26 }
 0x550   : > { %v1671_v34 = vsel %vm1253_vm5, %v1661_v31, -inf }
 0x551   : > { %v1668_v29 = vsel %vm1253_vm5, %v1660_v27, -inf }
 0x552   : > { %1669 = vmax.xlane.f32.xlu0 %v1668_v29 }
 0x556   : > { %1672 = vmax.xlane.f32.xlu0 %v1671_v34 }
 0x55a   : > { %1690 = vadd.xlane.f32.xlu0 %v1689_v38 }
 0x5d4   : > { %v1688_v39 = vpop.xlane.xlu1 %1687 }
 0x5d5   : > { %7593 = vrcp.f32 %v1688_v39 }
 0x5df   : > { %v7594_v41 = vpop.eup %7593  ;;  %v1670_v42 = vpop.xlane.xlu0 %1669 }
 0x5e0   : > { %v1699_v43 = vmul.f32 %v7594_v41, %v7590_v15  ;;  %v1676_v44 = vsub.f32 %v1660_v27, %v1670_v42 }
 0x5e2   : > { %6815 = vmatprep.mubr.msk.f32.mxu1 %vm1253_vm5, %v1699_v43  ;;  %v1682_v45 = vmul.f32 1.442695, %v1676_v44 }
 0x5e3   : > { %v1673_v46 = vpop.xlane.xlu0 %1672 }
 0x5e4   : > { %7595 = vpow2.f32 %v1682_v45  ;;  %v1677_v48 = vsub.f32 %v1661_v31, %v1673_v46 }
 0x5e6   : > { %v1684_v49 = vmul.f32 1.442695, %v1677_v48 }
 0x5e7   : > { %v1691_v54 = vpop.xlane.xlu0 %1690 }
 0x5e8   : > { %7597 = vpow2.f32 %v1684_v49 }
 0x5e9   : > { %7599 = vrcp.f32 %v1691_v54 }
 0x5ee   : > { %v7596_v50 = vpop.eup %7595 }
 0x5ef   : > { %v1692_v51 = vsel %vm1253_vm5, %v7596_v50, 0.0 }
 0x5f0   : > { %1693 = vadd.xlane.f32.xlu1 %v1692_v51 }
 0x5f2   : > { %v7598_v52 = vpop.eup %7597 }
 0x5f3   : > { %v1695_v53 = vsel %vm1253_vm5, %v7598_v52, 0.0  ;;  %v7600_v61 = vpop.eup %7599 }
 0x5f4   : > { %1696 = vadd.xlane.f32.xlu0 %v1695_v53  ;;  %v1701_v4 = vmul.f32 %v7600_v61, %v7592_v37 }
 0x601   : > { %7442 = vrot.lane.b32.xlu1 %v7922_v32, %s8642_s26 }
 0x605   : > { %7452 = vrot.lane.b32.xlu1 %v7922_v32, %s8640_s29 }
 0x609   : > { %7457 = vrot.lane.b32.xlu1 %v7932_v36, %s8640_s29  ;;  %s8652_s29 = smov 72  }
 0x60a   : > { %7447 = vrot.lane.b32.xlu0 %v7932_v36, %s8642_s26  ;;  %s8654_s26 = smov 48  }
 0x60d   : > { %2076 = vrot.lane.b32.xlu1 %v7914_v28, %s8646_s30 }
 0x60e   : > { %2074 = vrot.lane.b32.xlu0 %v7916_v30, %s8646_s30 }
 0x611   : > { %2167 = vrot.lane.b32.xlu1 %v7924_v33, %s8646_s30 }
 0x612   : > { %2165 = vrot.lane.b32.xlu0 %v7926_v35, %s8646_s30  ;;  %s8648_s30 = smov 104  }
 0x67d   : > { %v1694_v55 = vpop.xlane.xlu1 %1693 }
 0x67e   : > { %7601 = vrcp.f32 %v1694_v55 }
 0x681   : > { %v7443_v56 = vpop.permute.xlu1 %7442  ;;  %v1697_v57 = vpop.xlane.xlu0 %1696 }
 0x682   : > { %v7445_v58 = vunpack.i.h.bf16 %v7443_v56  ;;  %v7444_v59 = vunpack.i.l.bf16 %v7443_v56  ;;  %7603 = vrcp.f32 %v1697_v57 }
 0x684   : > { %v7183_v60 = vpack.c.bf16 %v7445_v58, %v7444_v59 }
 0x685   : > { %v7448_v62 = vpop.permute.xlu0 %7447  ;;  %v7453_v3 = vpop.permute.xlu1 %7452 }
 0x686   : > { %v7450_v0 = vunpack.i.h.bf16 %v7448_v62  ;;  %v7449_v1 = vunpack.i.l.bf16 %v7448_v62  ;;  %7184 = vmatprep.subr.bf16.mxu1 %v7183_v60  ;;  %v7455_v8 = vunpack.i.h.bf16 %v7453_v3  ;;  %v7454_v9 = vunpack.i.l.bf16 %v7453_v3 }
 0x687   : > { %7186 = vmatpush3.bf16.msra.mxu1 %v7183_v60 }
 0x688   : > { %v7602_v2 = vpop.eup %7601  ;;  %v7187_v5 = vpack.c.bf16 %v7450_v0, %v7449_v1  ;;  %6833 = vmatprep.subr.mxu1 %v1056_v63  ;;  %v7191_v16 = vpack.c.bf16 %v7455_v8, %v7454_v9 }
 0x689   : > { %v1703_v6 = vmul.f32 %v7602_v2, %v7596_v50  ;;  %v2075_v23 = vpop.permute.xlu0 %2074 }
 0x68a   : > { %6816 = vmatmul.mubr.msk.f32.vlgmr.msra.gmra.mrb[8].mxu1 %vm1253_vm5, %v1701_v4  ;;  %7188 = vmatprep.subr.bf16.mxu0 %v7187_v5 }
 0x68b   : > { %7190 = vmatpush3.bf16.msra.mxu0 %v7187_v5  ;;  %6822 = vmatprep.mubr.msk.f32.mxu0 %vm1253_vm5, %v1703_v6 }
 0x68c   : > { %v7604_v12 = vpop.eup %7603  ;;  %6835 = vmatprep.mubr.msk.f32.mxu1 %vm1066_vm3, %v8015_v11  ;;  %6834 = vmatpush3.msra.mxu1 %v1056_v63  ;;  %v7458_v11 = vpop.permute.xlu1 %7457 }
 0x68d   : > { %6825 = vmatprep.subr.mxu0 %v1057_v7  ;;  %v1705_v15 = vmul.f32 %v7604_v12, %v7598_v52  ;;  %v7460_v17 = vunpack.i.h.bf16 %v7458_v11  ;;  %v7459_v18 = vunpack.i.l.bf16 %v7458_v11  ;;  %v2166_v27 = vpop.permute.xlu0 %2165 }
 0x68e   : > { %6836 = vmatmul.mubr.msk.f32.vlgmr.msra.gmra.mrb[10].mxu1 %vm1066_vm3, %v8013_v10 }
 0x68f   : > { %6823 = vmatmul.mubr.msk.f32.vlgmr.msra.gmra.mrb[12].mxu0 %vm1253_vm5, %v1705_v15  ;;  %6838 = vmatprep.mubr.msk.f32.mxu1 %vm1066_vm3, %v8019_v14  ;;  %v7197_v10 = vpack.c.bf16 %v7460_v17, %v7459_v18 }
 0x690   : > { %6826 = vmatpush3.msra.mxu0 %v1057_v7 }
 0x691   : > { %7193 = vmatprep.subr.msk.bf16.mxu0 %vm7940_vm4, %v7191_v16 }
 0x692   : > { %6839 = vmatmul.mubr.msk.f32.gmra.mrb[12].mxu1 %vm1066_vm3, %v8017_v13  ;;  %v2077_v13 = vpop.permute.xlu1 %2076 }
 0x696   : > { %v2168_v29 = vpop.permute.xlu1 %2167 }
 0x75d   : > { %v6817_v21 = vpop.f32.mrb[8].mxu1 }
 0x75e   : > { %v1784_v22 = vpop.f32.mrb[9].mxu1 }
 0x75f   : > { %6827 = vmatprep.mubr.msk.f32.mxu0 %vm1066_vm3, %v1784_v22 }
 0x760   : > { %6828 = vmatmul.mubr.msk.f32.vlgmr.msra.gmra.mrb[14].mxu0 %vm1066_vm3, %v6817_v21 }
 0x761   : > { %7196 = vmatpush3.bf16.xpose.msk.msra.mxu0 %vm7940_vm4, %v7191_v16 }
 0x762   : > { %7199 = vmatprep.subr.msk.bf16.mxu0 %vm7940_vm4, %v7197_v10  ;;  %v6824_v14 = vpop.f32.mrb[12].mxu0 }
 0x763   : > { %v1871_v26 = vpop.f32.mrb[13].mxu0 }
 0x764   : > { %6830 = vmatprep.mubr.msk.f32.mxu0 %vm1066_vm3, %v1871_v26 }
 0x765   : > { %6831 = vmatmul.mubr.msk.f32.gmra.mrb[16].mxu0 %vm1066_vm3, %v6824_v14 }
 0x766   : > { %6845 = vmatprep.mubr.msk.f32.mxu0 %vm1066_vm3, %v2075_v23 }
 0x769   : > { %6846 = vmatmul.mubr.msk.f32.vlgmr.msra.gmra.mrb[18].mxu0 %vm1066_vm3, %v2077_v13  ;;  %v1058_v13 = vld [vmem:[%s8050_s2 + $0x10] sm:$0xff] }
 0x76a   : > { %7202 = vmatpush3.bf16.xpose.msk.msra.mxu0 %vm7940_vm4, %v7197_v10  ;;  %6852 = vmatprep.mubr.msk.f32.mxu0 %vm1066_vm3, %v2166_v27 }
 0x771   : > { %6853 = vmatmul.mubr.msk.f32.vlgmr.msra.gmra.mrb[20].mxu0 %vm1066_vm3, %v2168_v29 }
 0x833   : > { %v8081_v31 = vpop.f32.mrb[14].mxu0 }
 0x834   : > { %v8083_v34 = vpop.f32.mrb[15].mxu0 }
 0x838   : > { %v8085_v37 = vpop.f32.mrb[16].mxu0 }
 0x839   : > { %v8087_v38 = vpop.f32.mrb[17].mxu0 }
 0x83c   : > { %v6847_v39 = vpop.f32.mrb[18].mxu0 }
 0x83d   : > { %v2257_v41 = vmul.f32 0.35355338, %v6847_v39  ;;  %v2156_v42 = vpop.f32.mrb[19].mxu0 }
 0x83e   : > { %v2256_v43 = vmul.f32 0.35355338, %v2156_v42 }
 0x83f   : > { %v2261_v44 = vadd.f32 %v7963_v47, %v2257_v41 }
 0x840   : > { %v2260_v45 = vadd.f32 %v7963_v47, %v2256_v43 }
 0x841   : > { %v2267_v46 = vsel %vm1253_vm5, %v2261_v44, -inf }
 0x842   : > { %2268 = vmax.xlane.f32.xlu1 %v2267_v46  ;;  %v2264_v48 = vsel %vm1253_vm5, %v2260_v45, -inf }
 0x843   : > { %2265 = vmax.xlane.f32.xlu0 %v2264_v48 }
 0x844   : > { %v6854_v49 = vpop.f32.mrb[20].mxu0 }
 0x845   : > { %v2247_v50 = vpop.f32.mrb[21].mxu0  ;;  %v2259_v51 = vmul.f32 0.35355338, %v6854_v49 }
 0x846   : > { %v2258_v52 = vmul.f32 0.35355338, %v2247_v50 }
 0x847   : > { %v2263_v55 = vadd.f32 %v7963_v47, %v2259_v51 }
 0x848   : > { %v2262_v53 = vadd.f32 %v7963_v47, %v2258_v52 }
 0x849   : > { %v2273_v56 = vsel %vm1253_vm5, %v2263_v55, -inf }
 0x84a   : > { %v2270_v54 = vsel %vm1253_vm5, %v2262_v53, -inf }
 0x84b   : > { %2271 = vmax.xlane.f32.xlu0 %v2270_v54 }
 0x84f   : > { %2274 = vmax.xlane.f32.xlu0 %v2273_v56 }
 0x8cf   : > { %v2269_v57 = vpop.xlane.xlu1 %2268 }
 0x8d0   : > { %v2277_v58 = vsub.f32 %v2261_v44, %v2269_v57  ;;  %v2266_v59 = vpop.xlane.xlu0 %2265 }
 0x8d1   : > { %v2276_v60 = vsub.f32 %v2260_v45, %v2266_v59 }
 0x8d2   : > { %v2282_v61 = vmul.f32 1.442695, %v2277_v58 }
 0x8d3   : > { %v2280_v62 = vmul.f32 1.442695, %v2276_v60 }
 0x8d4   : > { %7605 = vpow2.f32 %v2282_v61 }
 0x8d5   : > { %7607 = vpow2.f32 %v2280_v62 }
 0x8d8   : > { %v2272_v63 = vpop.xlane.xlu0 %2271 }
 0x8d9   : > { %v2278_v0 = vsub.f32 %v2262_v53, %v2272_v63 }
 0x8db   : > { %v2284_v1 = vmul.f32 1.442695, %v2278_v0 }
 0x8dc   : > { %v2275_v2 = vpop.xlane.xlu0 %2274 }
 0x8dd   : > { %7609 = vpow2.f32 %v2284_v1  ;;  %v2279_v3 = vsub.f32 %v2263_v55, %v2275_v2 }
 0x8de   : > { %v7606_v4 = vpop.eup %7605 }
 0x8df   : > { %v7608_v5 = vpop.eup %7607  ;;  %v2286_v6 = vmul.f32 1.442695, %v2279_v3  ;;  %v2291_v7 = vsel %vm1253_vm5, %v7606_v4, 0.0 }
 0x8e0   : > { %2292 = vadd.xlane.f32.xlu0 %v2291_v7  ;;  %v2288_v8 = vsel %vm1253_vm5, %v7608_v5, 0.0 }
 0x8e1   : > { %7611 = vpow2.f32 %v2286_v6  ;;  %2289 = vadd.xlane.f32.xlu1 %v2288_v8 }
 0x8e7   : > { %v7610_v9 = vpop.eup %7609 }
 0x8e8   : > { %v2294_v12 = vsel %vm1253_vm5, %v7610_v9, 0.0 }
 0x8e9   : > { %2295 = vadd.xlane.f32.xlu1 %v2294_v12 }
 0x8eb   : > { %v7612_v15 = vpop.eup %7611 }
 0x8ec   : > { %v2297_v16 = vsel %vm1253_vm5, %v7612_v15, 0.0 }
 0x8ed   : > { %2298 = vadd.xlane.f32.xlu0 %v2297_v16 }
 0x8fa   : > { %7462 = vrot.lane.b32.xlu1 %v7922_v32, %s8654_s26 }
 0x8fe   : > { %7472 = vrot.lane.b32.xlu1 %v7922_v32, %s8652_s29 }
 0x902   : > { %2583 = vrot.lane.b32.xlu1 %v7916_v30, %s8648_s30 }
 0x903   : > { %7467 = vrot.lane.b32.xlu0 %v7932_v36, %s8654_s26  ;;  %s8167_s26 = scalar_lea.vmem %s8629_s9, %s7905_s20 }
 0x906   : > { %2585 = vrot.lane.b32.xlu1 %v7914_v28, %s8648_s30 }
 0x907   : > { %7477 = vrot.lane.b32.xlu0 %v7932_v36, %s8652_s29  ;;  %s8684_s29 = smov 80  }
 0x90a   : > { %2676 = vrot.lane.b32.xlu1 %v7924_v33, %s8648_s30 }
 0x90b   : > { %2674 = vrot.lane.b32.xlu0 %v7926_v35, %s8648_s30  ;;  %s8650_s30 = smov 40  }
 0x96d   : > { %v2293_v17 = vpop.xlane.xlu0 %2292 }
 0x96e   : > { %v2290_v11 = vpop.xlane.xlu1 %2289 }
 0x96f   : > { %7613 = vrcp.f32 %v2290_v11 }
 0x970   : > { %7615 = vrcp.f32 %v2293_v17 }
 0x976   : > { %v2296_v30 = vpop.xlane.xlu1 %2295 }
 0x977   : > { %7617 = vrcp.f32 %v2296_v30 }
 0x979   : > { %v7614_v18 = vpop.eup %7613 }
 0x97a   : > { %v7463_v21 = vpop.permute.xlu1 %7462  ;;  %v2299_v22 = vpop.xlane.xlu0 %2298  ;;  %v2301_v28 = vmul.f32 %v7614_v18, %v7608_v5 }
 0x97b   : > { %v7465_v10 = vunpack.i.h.bf16 %v7463_v21  ;;  %v7464_v14 = vunpack.i.l.bf16 %v7463_v21  ;;  %7619 = vrcp.f32 %v2299_v22  ;;  %v7616_v23 = vpop.eup %7615 }
 0x97c   : > { %6859 = vmatprep.mubr.msk.f32.mxu1 %vm1253_vm5, %v2301_v28  ;;  %v2303_v43 = vmul.f32 %v7616_v23, %v7606_v4 }
 0x97d   : > { %v7203_v33 = vpack.c.bf16 %v7465_v10, %v7464_v14 }
 0x97e   : > { %v7473_v26 = vpop.permute.xlu1 %7472  ;;  %v7468_v35 = vpop.permute.xlu0 %7467 }
 0x97f   : > { %v7475_v27 = vunpack.i.h.bf16 %v7473_v26  ;;  %v7474_v29 = vunpack.i.l.bf16 %v7473_v26  ;;  %v7470_v39 = vunpack.i.h.bf16 %v7468_v35  ;;  %v7469_v41 = vunpack.i.l.bf16 %v7468_v35  ;;  %7204 = vmatprep.subr.bf16.mxu1 %v7203_v33 }
 0x980   : > { %7206 = vmatpush3.bf16.msra.mxu1 %v7203_v33 }
 0x981   : > { %v7618_v42 = vpop.eup %7617  ;;  %v7207_v44 = vpack.c.bf16 %v7470_v39, %v7469_v41  ;;  %6869 = vmatprep.subr.mxu1 %v1058_v13  ;;  %v7211_v48 = vpack.c.bf16 %v7475_v27, %v7474_v29 }
 0x982   : > { %v7478_v45 = vpop.permute.xlu0 %7477  ;;  %v2305_v46 = vmul.f32 %v7618_v42, %v7610_v9  ;;  %v2584_v54 = vpop.permute.xlu1 %2583 }
 0x983   : > { %v7480_v49 = vunpack.i.h.bf16 %v7478_v45  ;;  %v7479_v50 = vunpack.i.l.bf16 %v7478_v45  ;;  %6860 = vmatmul.mubr.msk.f32.vlgmr.msra.gmra.mrb[14].mxu1 %vm1253_vm5, %v2303_v43  ;;  %7208 = vmatprep.subr.bf16.mxu0 %v7207_v44 }
 0x984   : > { %7210 = vmatpush3.bf16.msra.mxu0 %v7207_v44  ;;  %6866 = vmatprep.mubr.msk.f32.mxu0 %vm1253_vm5, %v2305_v46 }
 0x985   : > { %v7620_v51 = vpop.eup %7619  ;;  %v7217_v52 = vpack.c.bf16 %v7480_v49, %v7479_v50  ;;  %7213 = vmatprep.subr.msk.bf16.mxu0 %vm7940_vm4, %v7211_v48  ;;  %6870 = vmatpush3.msra.mxu1 %v1058_v13 }
 0x986   : > { %v2307_v53 = vmul.f32 %v7620_v51, %v7612_v15  ;;  %v2586_v55 = vpop.permute.xlu1 %2585  ;;  %v2675_v60 = vpop.permute.xlu0 %2674 }
 0x987   : > { %7219 = vmatprep.subr.msk.bf16.mxu1 %vm7940_vm4, %v7217_v52 }
 0x988   : > { %6867 = vmatmul.mubr.msk.f32.vlgmr.msra.gmra.mrb[22].mxu0 %vm1253_vm5, %v2307_v53 }
 0x989   : > { %6881 = vmatprep.mubr.msk.f32.mxu0 %vm1066_vm3, %v2584_v54 }
 0x98a   : > { %v2677_v61 = vpop.permute.xlu1 %2676 }
 0x98d   : > { %7216 = vmatpush3.bf16.xpose.msk.msra.mxu0 %vm7940_vm4, %v7211_v48 }
 0x994   : > { %6882 = vmatmul.mubr.msk.f32.vlgmr.msra.gmra.mrb[24].mxu0 %vm1066_vm3, %v2586_v55 }
 0xa56   : > { %v6861_v56 = vpop.f32.mrb[14].mxu1 }
 0xa57   : > { %v2386_v57 = vpop.f32.mrb[15].mxu1 }
 0xa58   : > { %6871 = vmatprep.mubr.msk.f32.mxu1 %vm1066_vm3, %v2386_v57 }
 0xa59   : > { %6872 = vmatmul.mubr.msk.f32.vlgmr.msra.gmra.mrb[10].mxu1 %vm1066_vm3, %v6861_v56 }
 0xa5a   : > { %7222 = vmatpush3.bf16.xpose.msk.msra.mxu1 %vm7940_vm4, %v7217_v52 }
 0xa5b   : > { %v6868_v58 = vpop.f32.mrb[22].mxu0 }
 0xa5c   : > { %v2473_v59 = vpop.f32.mrb[23].mxu0 }
 0xa5d   : > { %6874 = vmatprep.mubr.msk.f32.mxu1 %vm1066_vm3, %v2473_v59 }
 0xa5e   : > { %6875 = vmatmul.mubr.msk.f32.gmra.mrb[12].mxu1 %vm1066_vm3, %v6868_v58 }
 0xa5f   : > { %6888 = vmatprep.mubr.msk.f32.mxu1 %vm1066_vm3, %v2675_v60 }
 0xa62   : > { %6889 = vmatmul.mubr.msk.f32.vlgmr.msra.gmra.mrb[16].mxu1 %vm1066_vm3, %v2677_v61 }
 0xa67   : > { %v6883_v62 = vpop.f32.mrb[24].mxu0 }
 0xa68   : > { %v2766_v63 = vmul.f32 0.35355338, %v6883_v62  ;;  %v2665_v0 = vpop.f32.mrb[25].mxu0 }
 0xa69   : > { %v2765_v1 = vmul.f32 0.35355338, %v2665_v0 }
 0xa6a   : > { %v2770_v2 = vadd.f32 %v7963_v47, %v2766_v63  ;;  %v1059_v63 = vld [vmem:[%s8050_s2 + $0x18] sm:$0xff] }
 0xa6b   : > { %v2769_v3 = vadd.f32 %v7963_v47, %v2765_v1 }
 0xa6c   : > { %v2776_v4 = vsel %vm1253_vm5, %v2770_v2, -inf }
 0xa6d   : > { %2777 = vmax.xlane.f32.xlu1 %v2776_v4  ;;  %v2773_v5 = vsel %vm1253_vm5, %v2769_v3, -inf }
 0xa6e   : > { %2774 = vmax.xlane.f32.xlu0 %v2773_v5  ;;  %v6383_v5 = vld [vmem:[%s8167_s26] ss:$0 sm:$0xff] }
 0xafa   : > { %v2778_v15 = vpop.xlane.xlu1 %2777 }
 0xafb   : > { %v2775_v6 = vpop.xlane.xlu0 %2774  ;;  %v2786_v16 = vsub.f32 %v2770_v2, %v2778_v15 }
 0xafc   : > { %v2785_v7 = vsub.f32 %v2769_v3, %v2775_v6 }
 0xafd   : > { %v2791_v11 = vmul.f32 1.442695, %v2786_v16 }
 0xafe   : > { %v2789_v8 = vmul.f32 1.442695, %v2785_v7 }
 0xb00   : > { %7621 = vpow2.f32 %v2789_v8 }
 0xb01   : > { %7623 = vpow2.f32 %v2791_v11 }
 0xb0a   : > { %v7622_v9 = vpop.eup %7621 }
 0xb0b   : > { %v2797_v12 = vsel %vm1253_vm5, %v7622_v9, 0.0  ;;  %v7624_v33 = vpop.eup %7623 }
 0xb0c   : > { %2798 = vadd.xlane.f32.xlu1 %v2797_v12  ;;  %v2800_v23 = vsel %vm1253_vm5, %v7624_v33, 0.0 }
 0xb35   : > { %v6890_v17 = vpop.f32.mrb[16].mxu1 }
 0xb36   : > { %v2756_v30 = vpop.f32.mrb[17].mxu1  ;;  %v2768_v18 = vmul.f32 0.35355338, %v6890_v17 }
 0xb37   : > { %v2767_v21 = vmul.f32 0.35355338, %v2756_v30 }
 0xb38   : > { %v2772_v10 = vadd.f32 %v7963_v47, %v2768_v18 }
 0xb39   : > { %v2771_v22 = vadd.f32 %v7963_v47, %v2767_v21 }
 0xb3a   : > { %v2782_v14 = vsel %vm1253_vm5, %v2772_v10, -inf }
 0xb3b   : > { %v2779_v28 = vsel %vm1253_vm5, %v2771_v22, -inf }
 0xb3c   : > { %2780 = vmax.xlane.f32.xlu0 %v2779_v28 }
 0xb40   : > { %2783 = vmax.xlane.f32.xlu0 %v2782_v14 }
 0xb44   : > { %2801 = vadd.xlane.f32.xlu0 %v2800_v23 }
 0xb99   : > { %v2799_v26 = vpop.xlane.xlu1 %2798 }
 0xb9a   : > { %7625 = vrcp.f32 %v2799_v26 }
 0xba4   : > { %v7626_v35 = vpop.eup %7625 }
 0xba5   : > { %v2810_v13 = vmul.f32 %v7626_v35, %v7622_v9 }
 0xba7   : > { %6895 = vmatprep.mubr.msk.f32.mxu0 %vm1253_vm5, %v2810_v13 }
 0xbc9   : > { %v2781_v27 = vpop.xlane.xlu0 %2780 }
 0xbca   : > { %v2787_v29 = vsub.f32 %v2771_v22, %v2781_v27 }
 0xbcc   : > { %v2793_v39 = vmul.f32 1.442695, %v2787_v29 }
 0xbcd   : > { %v2784_v41 = vpop.xlane.xlu0 %2783 }
 0xbce   : > { %7627 = vpow2.f32 %v2793_v39  ;;  %v2788_v47 = vsub.f32 %v2772_v10, %v2784_v41 }
 0xbd0   : > { %v2795_v42 = vmul.f32 1.442695, %v2788_v47 }
 0xbd1   : > { %v2802_v48 = vpop.xlane.xlu0 %2801 }
 0xbd2   : > { %7629 = vpow2.f32 %v2795_v42 }
 0xbd3   : > { %7631 = vrcp.f32 %v2802_v48  ;;  %v3182_v48 = vld [vmem:[%s8206_s21] sm:$0xff] }
 0xbd8   : > { %v7628_v43 = vpop.eup %7627 }
 0xbd9   : > { %v2803_v44 = vsel %vm1253_vm5, %v7628_v43, 0.0 }
 0xbda   : > { %2804 = vadd.xlane.f32.xlu1 %v2803_v44 }
 0xbdc   : > { %v7630_v45 = vpop.eup %7629 }
 0xbdd   : > { %v2806_v46 = vsel %vm1253_vm5, %v7630_v45, 0.0  ;;  %v7632_v55 = vpop.eup %7631 }
 0xbde   : > { %2807 = vadd.xlane.f32.xlu0 %v2806_v46  ;;  %v2812_v59 = vmul.f32 %v7632_v55, %v7624_v33  ;;  %v3295_v55 = vld [vmem:[%s8216_s22 + $0x8] sm:$0xff] }
 0xbeb   : > { %7482 = vrot.lane.b32.xlu1 %v7922_v32, %s8650_s30 }
 0xbf4   : > { %7487 = vrot.lane.b32.xlu0 %v7932_v36, %s8650_s30  ;;  %s8252_s30 = scalar_lea.vmem %s8633_s13, %s7905_s20 }
 0xc67   : > { %v2805_v49 = vpop.xlane.xlu1 %2804 }
 0xc68   : > { %7633 = vrcp.f32 %v2805_v49  ;;  %v3183_v49 = vld [vmem:[%s8206_s21 + $0x8] sm:$0xff] }
 0xc6b   : > { %v7483_v50 = vpop.permute.xlu1 %7482  ;;  %v2808_v51 = vpop.xlane.xlu0 %2807 }
 0xc6c   : > { %v7485_v52 = vunpack.i.h.bf16 %v7483_v50  ;;  %v7484_v53 = vunpack.i.l.bf16 %v7483_v50  ;;  %7635 = vrcp.f32 %v2808_v51  ;;  %v7231_v50 = vpack.c.bf16 %v3183_v49, %v3182_v48  ;;  %v3184_v51 = vld [vmem:[%s8206_s21 + $0x10] sm:$0xff] }
 0xc6e   : > { %v7223_v54 = vpack.c.bf16 %v7485_v52, %v7484_v53  ;;  %v3185_v52 = vld [vmem:[%s8206_s21 + $0x18] sm:$0xff] }
 0xc6f   : > { %v7488_v56 = vpop.permute.xlu0 %7487  ;;  %v7235_v53 = vpack.c.bf16 %v3185_v52, %v3184_v51 }
 0xc70   : > { %v7490_v57 = vunpack.i.h.bf16 %v7488_v56  ;;  %v7489_v58 = vunpack.i.l.bf16 %v7488_v56  ;;  %7224 = vmatprep.subr.bf16.mxu0 %v7223_v54  ;;  %v3296_v56 = vld [vmem:[%s8216_s22 + $0x10] sm:$0xff] }
 0xc71   : > { %7226 = vmatpush3.bf16.msra.mxu0 %v7223_v54  ;;  %v3294_v54 = vld [vmem:[%s8216_s22] sm:$0xff] }
 0xc72   : > { %v7634_v32 = vpop.eup %7633  ;;  %v7227_v36 = vpack.c.bf16 %v7490_v57, %v7489_v58  ;;  %7232 = vmatprep.subr.bf16.mxu0 %v7231_v50  ;;  %v7239_v57 = vpack.c.bf16 %v3295_v55, %v3294_v54  ;;  %v3297_v58 = vld [vmem:[%s8216_s22 + $0x18] sm:$0xff] }
 0xc73   : > { %v2814_v60 = vmul.f32 %v7634_v32, %v7628_v43  ;;  %v7243_v32 = vpack.c.bf16 %v3297_v58, %v3296_v56 }
 0xc74   : > { %6896 = vmatmul.mubr.msk.f32.vlgmr.msra.gmra.mrb[26].mxu0 %vm1253_vm5, %v2812_v59  ;;  %7228 = vmatprep.subr.bf16.mxu1 %v7227_v36  ;;  %v3298_v59 = vld [vmem:[%s8216_s22 + $0x20] sm:$0xff] }
 0xc75   : > { %7230 = vmatpush3.bf16.msra.mxu1 %v7227_v36  ;;  %6902 = vmatprep.mubr.msk.f32.mxu1 %vm1253_vm5, %v2814_v60  ;;  %v3299_v36 = vld [vmem:[%s8216_s22 + $0x28] sm:$0xff] }
 0xc76   : > { %v7636_v61 = vpop.eup %7635  ;;  %6905 = vmatprep.subr.mxu1 %v1059_v63  ;;  %7234 = vmatpush3.bf16.msra.mxu0 %v7231_v50  ;;  %v7247_v60 = vpack.c.bf16 %v3299_v36, %v3298_v59 }
 0xc77   : > { %v2816_v62 = vmul.f32 %v7636_v61, %v7630_v45  ;;  %7236 = vmatprep.subr.bf16.mxu0 %v7235_v53 }
 0xc79   : > { %6903 = vmatmul.mubr.msk.f32.vlgmr.msra.gmra.mrb[18].mxu1 %vm1253_vm5, %v2816_v62 }
 0xc7a   : > { %6906 = vmatpush3.msra.mxu1 %v1059_v63  ;;  %7238 = vmatpush3.bf16.msra.mxu0 %v7235_v53 }
 0xc7b   : > { %7240 = vmatprep.subr.bf16.mxu1 %v7239_v57 }
 0xd47   : > { %v6897_v0 = vpop.f32.mrb[26].mxu0 }
 0xd48   : > { %v2895_v1 = vpop.f32.mrb[27].mxu0 }
 0xd49   : > { %6907 = vmatprep.mubr.msk.f32.mxu1 %vm1066_vm3, %v2895_v1 }
 0xd4a   : > { %6908 = vmatmul.mubr.msk.f32.vlgmr.msra.gmra.mrb[10].mxu1 %vm1066_vm3, %v6897_v0 }
 0xd4b   : > { %7242 = vmatpush3.bf16.msra.mxu1 %v7239_v57 }
 0xd4c   : > { %v6904_v2 = vpop.f32.mrb[18].mxu1  ;;  %7244 = vmatprep.subr.bf16.mxu1 %v7243_v32 }
 0xd4d   : > { %v2982_v3 = vpop.f32.mrb[19].mxu1 }
 0xd4e   : > { %6910 = vmatprep.mubr.msk.f32.mxu1 %vm1066_vm3, %v2982_v3 }
 0xd4f   : > { %6911 = vmatmul.mubr.msk.f32.gmra.mrb[12].mxu1 %vm1066_vm3, %v6904_v2 }
 0xd50   : > { %7246 = vmatpush3.bf16.msra.mxu1 %v7243_v32 }
 0xd51   : > { %7248 = vmatprep.subr.bf16.mxu1 %v7247_v60 }
 0xd54   : > { %7250 = vmatpush3.bf16.msra.mxu1 %v7247_v60 }
 0xe1d   : > { %v6909_v4 = vpop.f32.mrb[10].mxu1 }
 0xe1e   : > { %v7367_v6 = vadd.f32 %v6909_v4, %v8081_v31  ;;  %v3069_v7 = vpop.f32.mrb[11].mxu1 }
 0xe1f   : > { %v7368_v8 = vadd.f32 %v3069_v7, %v8083_v34 }
 0xe20   : > { %v3100_v9 = vadd.f32 %v7367_v6, %v6383_v5 }
 0xe21   : > { %v3099_v12 = vadd.f32 %v7368_v8, %v6383_v5 }
 0xe22   : > { %v6912_v15 = vpop.f32.mrb[12].mxu1  ;;  %v3104_v16 = vadd.f32 %v3100_v9, %v7890_v20 }
 0xe23   : > { %v7369_v11 = vadd.f32 %v6912_v15, %v8085_v37  ;;  %v3079_v17 = vpop.f32.mrb[13].mxu1  ;;  %v3103_v30 = vadd.f32 %v3099_v12, %v7888_v19  ;;  %v6384_v12 = vld [vmem:[%s8228_s1] ss:$0 sm:$0xff] }
 0xe24   : > { %v7370_v18 = vadd.f32 %v3079_v17, %v8087_v38  ;;  %v3112_v21 = vsel %vm958_vm2, %v3104_v16, 0.0  ;;  %v6385_v17 = vld [vmem:[%s8234_s4] ss:$0 sm:$0xff] }
 0xe25   : > { %v3102_v22 = vadd.f32 %v7369_v11, %v6383_v5  ;;  %3113 = vadd.xlane.f32.xlu0 %v3112_v21  ;;  %v3109_v31 = vsel %vm958_vm2, %v3103_v30, 0.0 }
 0xe26   : > { %v3101_v28 = vadd.f32 %v7370_v18, %v6383_v5  ;;  %3110 = vadd.xlane.f32.xlu1 %v3109_v31 }
 0xe27   : > { %v3106_v34 = vadd.f32 %v3102_v22, %v7894_v24 }
 0xe28   : > { %v3105_v10 = vadd.f32 %v3101_v28, %v7898_v25 }
 0xe29   : > { %v3118_v20 = vsel %vm958_vm2, %v3106_v34, 0.0 }
 0xe2a   : > { %3119 = vadd.xlane.f32.xlu0 %v3118_v20  ;;  %v3115_v37 = vsel %vm958_vm2, %v3105_v10, 0.0 }
 0xe2b   : > { %3116 = vadd.xlane.f32.xlu1 %v3115_v37 }
 0xeb2   : > { %v3114_v19 = vpop.xlane.xlu0 %3113 }
 0xeb3   : > { %v3123_v38 = vmul.f32 0.03125, %v3114_v19  ;;  %v3111_v14 = vpop.xlane.xlu1 %3110 }
 0xeb4   : > { %v3122_v33 = vmul.f32 0.03125, %v3111_v14  ;;  %v3300_v14 = vld [vmem:[%s8216_s22 + $0x30] sm:$0xff] }
 0xeb5   : > { %v8182_v23 = vsub.f32 %v3104_v16, %v3123_v38 }
 0xeb6   : > { %v8184_v26 = vsub.f32 %v3103_v30, %v3122_v33  ;;  %v3301_v33 = vld [vmem:[%s8216_s22 + $0x38] sm:$0xff] }
 0xeb7   : > { %v3120_v35 = vpop.xlane.xlu0 %3119  ;;  %v3131_v24 = vmul.f32 %v8182_v23, %v8182_v23 }
 0xeb8   : > { %v3125_v13 = vmul.f32 0.03125, %v3120_v35  ;;  %v3117_v25 = vpop.xlane.xlu1 %3116  ;;  %v3130_v27 = vmul.f32 %v8184_v26, %v8184_v26 }
 0xeb9   : > { %v3124_v29 = vmul.f32 0.03125, %v3117_v25  ;;  %v3137_v39 = vsel %vm958_vm2, %v3131_v24, 0.0 }
 0xeba   : > { %v8191_v41 = vsub.f32 %v3106_v34, %v3125_v13  ;;  %3138 = vadd.xlane.f32.xlu0 %v3137_v39  ;;  %v3134_v47 = vsel %vm958_vm2, %v3130_v27, 0.0 }
 0xebb   : > { %v8194_v42 = vsub.f32 %v3105_v10, %v3124_v29  ;;  %3135 = vadd.xlane.f32.xlu1 %v3134_v47 }
 0xebc   : > { %v3133_v43 = vmul.f32 %v8191_v41, %v8191_v41 }
 0xebd   : > { %v3132_v44 = vmul.f32 %v8194_v42, %v8194_v42 }
 0xebe   : > { %v3143_v45 = vsel %vm958_vm2, %v3133_v43, 0.0 }
 0xebf   : > { %3144 = vadd.xlane.f32.xlu0 %v3143_v45  ;;  %v3140_v46 = vsel %vm958_vm2, %v3132_v44, 0.0  ;;  %v6391_v45 = vld [vmem:[%s8263_s25] ss:$0 sm:$0xff] }
 0xec0   : > { %3141 = vadd.xlane.f32.xlu1 %v3140_v46 }
 0xf47   : > { %v3139_v61 = vpop.xlane.xlu0 %3138 }
 0xf48   : > { %v3147_v62 = vmul.f32 0.03125, %v3139_v61  ;;  %v3136_v63 = vpop.xlane.xlu1 %3135 }
 0xf49   : > { %v3146_v0 = vmul.f32 0.03125, %v3136_v63 }
 0xf4a   : > { %v3151_v1 = vadd.f32 1e-05, %v3147_v62 }
 0xf4b   : > { %v3150_v2 = vadd.f32 1e-05, %v3146_v0 }
 0xf4c   : > { %7637 = vrsqrt.f32 %v3151_v1  ;;  %v3145_v3 = vpop.xlane.xlu0 %3144 }
 0xf4d   : > { %7639 = vrsqrt.f32 %v3150_v2  ;;  %v3149_v4 = vmul.f32 0.03125, %v3145_v3  ;;  %v3142_v5 = vpop.xlane.xlu1 %3141 }
 0xf4e   : > { %v3148_v6 = vmul.f32 0.03125, %v3142_v5 }
 0xf4f   : > { %v3153_v7 = vadd.f32 1e-05, %v3149_v4 }
 0xf50   : > { %v3152_v8 = vadd.f32 1e-05, %v3148_v6 }
 0xf51   : > { %7641 = vrsqrt.f32 %v3153_v7 }
 0xf52   : > { %7643 = vrsqrt.f32 %v3152_v8 }
 0xf56   : > { %v7638_v9 = vpop.eup %7637 }
 0xf57   : > { %v7640_v15 = vpop.eup %7639  ;;  %v3159_v16 = vmul.f32 %v7638_v9, %v8182_v23  ;;  %v7251_v23 = vpack.c.bf16 %v3301_v33, %v3300_v14 }
 0xf58   : > { %v3158_v11 = vmul.f32 %v7640_v15, %v8184_v26  ;;  %v6386_v26 = vld [vmem:[%s8252_s30] ss:$0 sm:$0xff] }
 0xf59   : > { %v3169_v30 = vmul.f32 %v6384_v12, %v3159_v16  ;;  %7252 = vmatprep.subr.bf16.mxu1 %v7251_v23 }
 0xf5a   : > { %v3168_v18 = vmul.f32 %v6384_v12, %v3158_v11  ;;  %7254 = vmatpush3.bf16.msra.mxu1 %v7251_v23 }
 0xf5b   : > { %v7642_v21 = vpop.eup %7641  ;;  %v3179_v34 = vadd.f32 %v6385_v17, %v3169_v30 }
 0xf5c   : > { %v7644_v22 = vpop.eup %7643  ;;  %v3178_v31 = vadd.f32 %v6385_v17, %v3168_v18  ;;  %v3161_v28 = vmul.f32 %v7642_v21, %v8191_v41  ;;  %v6398_v21 = vld [vmem:[%s7873_s24 + $0x20] sm:$0xff] }
 0xf5d   : > { %v3160_v10 = vmul.f32 %v7644_v22, %v8194_v42  ;;  %v6399_v22 = vld [vmem:[%s7873_s24 + $0x28] sm:$0xff] }
 0xf5e   : > { %6921 = vmatprep.mubr.msk.f32.mxu0 %vm958_vm2, %v3178_v31  ;;  %v3171_v20 = vmul.f32 %v6384_v12, %v3161_v28  ;;  %v6400_v28 = vld [vmem:[%s7873_s24 + $0x30] sm:$0xff] }
 0xf5f   : > { %6922 = vmatmul.mubr.msk.f32.vlgmr.msra.gmra.mrb[28].mxu0 %vm958_vm2, %v3179_v34  ;;  %v3170_v37 = vmul.f32 %v6384_v12, %v3160_v10 }
 0xf60   : > { %v3181_v38 = vadd.f32 %v6385_v17, %v3171_v20 }
 0xf61   : > { %v3180_v19 = vadd.f32 %v6385_v17, %v3170_v37 }
 0xf63   : > { %6924 = vmatprep.mubr.msk.f32.mxu0 %vm958_vm2, %v3180_v19 }
 0xf64   : > { %6925 = vmatmul.mubr.msk.f32.gmra.mrb[30].mxu0 %vm958_vm2, %v3181_v38 }
0x1032   : > { %v6923_v35 = vpop.f32.mrb[28].mxu0 }
0x1033   : > { %v3277_v24 = vadd.f32 %v6923_v35, %v6386_v26  ;;  %v3271_v13 = vpop.f32.mrb[29].mxu0 }
0x1034   : > { %v3272_v25 = vadd.f32 %v6386_v26, %v3271_v13 }
0x1035   : > { %v3291_v29 = vmax.f32 %v3277_v24, 0.0 }
0x1036   : > { %v3290_v27 = vmax.f32 %v3272_v25, 0.0 }
0x1037   : > { %v6926_v39 = vpop.f32.mrb[30].mxu0 }
0x1038   : > { %v3287_v41 = vadd.f32 %v6926_v39, %v6386_v26  ;;  %v3281_v47 = vpop.f32.mrb[31].mxu0  ;;  %6943 = vmatprep.mubr.msk.f32.mxu1 %vm3309_vm6, %v3290_v27 }
0x1039   : > { %v3282_v42 = vadd.f32 %v6386_v26, %v3281_v47  ;;  %6944 = vmatmul.mubr.msk.f32.vlgmr.msra.gmra.mrb[20].mxu1 %vm3309_vm6, %v3291_v29  ;;  %v6396_v29 = vld [vmem:[%s8282_s0] ss:$0 sm:$0xff] }
0x103a   : > { %v3293_v44 = vmax.f32 %v3287_v41, 0.0 }
0x103b   : > { %v3292_v43 = vmax.f32 %v3282_v42, 0.0  ;;  %v6397_v42 = vld [vmem:[%s8288_s7] ss:$0 sm:$0xff] }
0x103d   : > { %6946 = vmatprep.mubr.msk.f32.mxu1 %vm3309_vm6, %v3292_v43 }
0x103e   : > { %6947 = vmatmul.mubr.msk.f32.gmra.mrb[22].mxu1 %vm3309_vm6, %v3293_v44 }
0x110c   : > { %v6945_v46 = vpop.f32.mrb[20].mxu1 }
0x110d   : > { %v3394_v48 = vadd.f32 %v6945_v46, %v6391_v45  ;;  %v3388_v49 = vpop.f32.mrb[21].mxu1 }
0x110e   : > { %v3389_v50 = vadd.f32 %v6391_v45, %v3388_v49 }
0x110f   : > { %v3408_v51 = vadd.f32 %v3394_v48, %v3179_v34  ;;  %v6401_v34 = vld [vmem:[%s7873_s24 + $0x38] sm:$0xff]  ;;  %s8683_s24 = smov 56  }
0x1110   : > { %v3407_v52 = vadd.f32 %v3389_v50, %v3178_v31  ;;  %v7255_v31 = vpack.c.bf16 %v6399_v22, %v6398_v21  ;;  %v7259_v10 = vpack.c.bf16 %v6401_v34, %v6400_v28 }
0x1111   : > { %v6948_v53 = vpop.f32.mrb[22].mxu1  ;;  %v3416_v54 = vsel %vm958_vm2, %v3408_v51, 0.0 }
0x1112   : > { %v3404_v55 = vadd.f32 %v6948_v53, %v6391_v45  ;;  %3417 = vadd.xlane.f32.xlu0 %v3416_v54  ;;  %v3398_v56 = vpop.f32.mrb[23].mxu1  ;;  %v3413_v57 = vsel %vm958_vm2, %v3407_v52, 0.0  ;;  %7256 = vmatprep.subr.bf16.mxu0 %v7255_v31 }
0x1113   : > { %v3399_v58 = vadd.f32 %v6391_v45, %v3398_v56  ;;  %3414 = vadd.xlane.f32.xlu1 %v3413_v57  ;;  %7258 = vmatpush3.bf16.msra.mxu0 %v7255_v31  ;;  %v6403_v56 = vld [vmem:[%s7911_s23 + $0x1] ss:$0 sm:$0xff]  ;;  %s8681_s23 = smov 88  }
0x1114   : > { %v3410_v32 = vadd.f32 %v3404_v55, %v3181_v38  ;;  %7260 = vmatprep.subr.bf16.mxu0 %v7259_v10 }
0x1115   : > { %v3409_v59 = vadd.f32 %v3399_v58, %v3180_v19 }
0x1116   : > { %v3422_v36 = vsel %vm958_vm2, %v3410_v32, 0.0 }
0x1117   : > { %3423 = vadd.xlane.f32.xlu0 %v3422_v36  ;;  %v3419_v60 = vsel %vm958_vm2, %v3409_v59, 0.0  ;;  %7262 = vmatpush3.bf16.msra.mxu0 %v7259_v10 }
0x1118   : > { %3420 = vadd.xlane.f32.xlu1 %v3419_v60 }
0x119f   : > { %v3418_v61 = vpop.xlane.xlu0 %3417 }
0x11a0   : > { %v3426_v62 = vmul.f32 0.03125, %v3418_v61  ;;  %v3415_v63 = vpop.xlane.xlu1 %3414 }
0x11a1   : > { %v3425_v0 = vmul.f32 0.03125, %v3415_v63 }
0x11a2   : > { %v3430_v1 = vsub.f32 %v3408_v51, %v3426_v62 }
0x11a3   : > { %v3429_v2 = vsub.f32 %v3407_v52, %v3425_v0 }
0x11a4   : > { %v3424_v3 = vpop.xlane.xlu0 %3423  ;;  %v3434_v4 = vmul.f32 %v3430_v1, %v3430_v1 }
0x11a5   : > { %v3428_v5 = vmul.f32 0.03125, %v3424_v3  ;;  %v3421_v6 = vpop.xlane.xlu1 %3420  ;;  %v3433_v7 = vmul.f32 %v3429_v2, %v3429_v2 }
0x11a6   : > { %v3427_v8 = vmul.f32 0.03125, %v3421_v6  ;;  %v3440_v9 = vsel %vm958_vm2, %v3434_v4, 0.0 }
0x11a7   : > { %v3432_v12 = vsub.f32 %v3410_v32, %v3428_v5  ;;  %3441 = vadd.xlane.f32.xlu0 %v3440_v9  ;;  %v3437_v15 = vsel %vm958_vm2, %v3433_v7, 0.0 }
0x11a8   : > { %v3431_v16 = vsub.f32 %v3409_v59, %v3427_v8  ;;  %3438 = vadd.xlane.f32.xlu1 %v3437_v15 }
0x11a9   : > { %v3436_v11 = vmul.f32 %v3432_v12, %v3432_v12 }
0x11aa   : > { %v3435_v17 = vmul.f32 %v3431_v16, %v3431_v16 }
0x11ab   : > { %v3446_v30 = vsel %vm958_vm2, %v3436_v11, 0.0  ;;  %v8346_v11 = vld [vmem:[%s7960_s19] ss:$0 sm:$0xff]  ;;  %s8682_s19 = smov 120  }
0x11ac   : > { %3447 = vadd.xlane.f32.xlu0 %v3446_v30  ;;  %v3443_v18 = vsel %vm958_vm2, %v3435_v17, 0.0 }
0x11ad   : > { %3444 = vadd.xlane.f32.xlu1 %v3443_v18 }
0x1234   : > { %v3442_v20 = vpop.xlane.xlu0 %3441 }
0x1235   : > { %v3450_v37 = vmul.f32 0.03125, %v3442_v20  ;;  %v3439_v19 = vpop.xlane.xlu1 %3438 }
0x1236   : > { %v3449_v38 = vmul.f32 0.03125, %v3439_v19 }
0x1237   : > { %v3454_v14 = vadd.f32 1e-05, %v3450_v37 }
0x1238   : > { %v3453_v33 = vadd.f32 1e-05, %v3449_v38 }
0x1239   : > { %7645 = vrsqrt.f32 %v3454_v14  ;;  %v3448_v23 = vpop.xlane.xlu0 %3447 }
0x123a   : > { %7647 = vrsqrt.f32 %v3453_v33  ;;  %v3452_v26 = vmul.f32 0.03125, %v3448_v23  ;;  %v3445_v35 = vpop.xlane.xlu1 %3444 }
0x123b   : > { %v3451_v24 = vmul.f32 0.03125, %v3445_v35 }
0x123c   : > { %v3456_v13 = vadd.f32 1e-05, %v3452_v26 }
0x123d   : > { %v3455_v25 = vadd.f32 1e-05, %v3451_v24 }
0x123e   : > { %7649 = vrsqrt.f32 %v3456_v13 }
0x123f   : > { %7651 = vrsqrt.f32 %v3455_v25 }
0x1243   : > { %v7646_v27 = vpop.eup %7645 }
0x1244   : > { %v7648_v39 = vpop.eup %7647  ;;  %v3462_v41 = vmul.f32 %v7646_v27, %v3430_v1 }
0x1245   : > { %v3461_v47 = vmul.f32 %v7648_v39, %v3429_v2 }
0x1246   : > { %v3472_v43 = vmul.f32 %v6396_v29, %v3462_v41 }
0x1247   : > { %v3471_v44 = vmul.f32 %v6396_v29, %v3461_v47 }
0x1248   : > { %v7650_v45 = vpop.eup %7649  ;;  %v8294_v50 = vadd.f32 %v6397_v42, %v3472_v43 }
0x1249   : > { %v7652_v46 = vpop.eup %7651  ;;  %v8292_v48 = vadd.f32 %v6397_v42, %v3471_v44  ;;  %v3464_v49 = vmul.f32 %v7650_v45, %v3432_v12 }
0x124a   : > { %v3463_v51 = vmul.f32 %v7652_v46, %v3431_v16 }
0x124b   : > { %6957 = vmatprep.mubr.msk.f32.mxu0 %vm958_vm2, %v8292_v48  ;;  %v3474_v52 = vmul.f32 %v6396_v29, %v3464_v49 }
0x124c   : > { %6958 = vmatmul.mubr.msk.f32.vlgmr.msra.gmra.mrb[32].mxu0 %vm958_vm2, %v8294_v50  ;;  %v3473_v53 = vmul.f32 %v6396_v29, %v3463_v51 }
0x124d   : > { %v8302_v55 = vadd.f32 %v6397_v42, %v3474_v52 }
0x124e   : > { %v8300_v54 = vadd.f32 %v6397_v42, %v3473_v53 }
0x1250   : > { %6960 = vmatprep.mubr.msk.f32.mxu0 %vm958_vm2, %v8300_v54 }
0x1251   : > { %6961 = vmatmul.mubr.msk.f32.gmra.mrb[34].mxu0 %vm958_vm2, %v8302_v55 }
0x131f   : > { %v6959_v57 = vpop.f32.mrb[32].mxu0 }
0x1320   : > { %v8309_v58 = vadd.f32 %v6959_v57, %v6403_v56  ;;  %v3576_v32 = vpop.f32.mrb[33].mxu0 }
0x1321   : > { %v8311_v59 = vadd.f32 %v6403_v56, %v3576_v32 }
0x1323   : > { %6967 = vmatprep.mubr.msk.f32.mxu0 %vm1066_vm3, %v8311_v59  ;;  %v8317_v36 = vpack.i.bf16 %v8309_v58, %v8311_v59 }
0x1324   : > { %v6962_v60 = vpop.f32.mrb[34].mxu0 }
0x1325   : > { %v8319_v61 = vadd.f32 %v6962_v60, %v6403_v56  ;;  %7492 = vrot.lane.b32.xlu1 %v8317_v36, %s8679_s5  ;;  %v3586_v62 = vpop.f32.mrb[35].mxu0 }
0x1326   : > { %v8323_v63 = vadd.f32 %v6403_v56, %v3586_v62 }
0x1328   : > { %6974 = vmatprep.mubr.msk.f32.mxu1 %vm1066_vm3, %v8323_v63  ;;  %v8329_v0 = vpack.i.bf16 %v8319_v61, %v8323_v63 }
0x132a   : > { %7497 = vrot.lane.b32.xlu0 %v8329_v0, %s8679_s5  ;;  %s8685_s5 = smov 112  }
0x1397   : > { %v7493_v1 = vpop.permute.xlu1 %7492 }
0x1398   : > { %v7495_v2 = vunpack.i.h.bf16 %v7493_v1  ;;  %v7494_v3 = vunpack.i.l.bf16 %v7493_v1 }
0x139a   : > { %v7263_v4 = vpack.c.bf16 %v7495_v2, %v7494_v3 }
0x139c   : > { %v7498_v5 = vpop.permute.xlu0 %7497  ;;  %7265 = vmatprep.subr.msk.bf16.mxu0 %vm7940_vm4, %v7263_v4 }
0x139d   : > { %v7500_v6 = vunpack.i.h.bf16 %v7498_v5  ;;  %v7499_v7 = vunpack.i.l.bf16 %v7498_v5  ;;  %7268 = vmatpush3.bf16.xpose.msk.msra.mxu0 %vm7940_vm4, %v7263_v4 }
0x139f   : > { %v7269_v8 = vpack.c.bf16 %v7500_v6, %v7499_v7 }
0x13a1   : > { %7271 = vmatprep.subr.msk.bf16.mxu1 %vm7940_vm4, %v7269_v8 }
0x13a2   : > { %7274 = vmatpush3.bf16.xpose.msk.msra.mxu1 %vm7940_vm4, %v7269_v8 }
0x13a4   : > { %6968 = vmatmul.mubr.msk.f32.vlgmr.msra.gmra.mrb[36].mxu0 %vm1066_vm3, %v8309_v58 }
0x13a9   : > { %6975 = vmatmul.mubr.msk.f32.vlgmr.msra.gmra.mrb[24].mxu1 %vm1066_vm3, %v8319_v61 }
0x1477   : > { %v6969_v9 = vpop.f32.mrb[36].mxu0 }
0x1478   : > { %v3779_v12 = vmul.f32 0.35355338, %v6969_v9  ;;  %v3680_v15 = vpop.f32.mrb[37].mxu0 }
0x1479   : > { %v3778_v16 = vmul.f32 0.35355338, %v3680_v15 }
0x147a   : > { %v3783_v17 = vadd.f32 %v8346_v11, %v3779_v12 }
0x147b   : > { %v3782_v30 = vadd.f32 %v8346_v11, %v3778_v16 }
0x147c   : > { %v6976_v18 = vpop.f32.mrb[24].mxu1  ;;  %v3789_v21 = vsel %vm1253_vm5, %v3783_v17, -inf }
0x147d   : > { %v3781_v22 = vmul.f32 0.35355338, %v6976_v18  ;;  %v3769_v31 = vpop.f32.mrb[25].mxu1  ;;  %3790 = vmax.xlane.f32.xlu0 %v3789_v21  ;;  %v3786_v28 = vsel %vm1253_vm5, %v3782_v30, -inf }
0x147e   : > { %v3780_v34 = vmul.f32 0.35355338, %v3769_v31  ;;  %3787 = vmax.xlane.f32.xlu1 %v3786_v28 }
0x147f   : > { %v3785_v10 = vadd.f32 %v8346_v11, %v3781_v22 }
0x1480   : > { %v3784_v20 = vadd.f32 %v8346_v11, %v3780_v34 }
0x1481   : > { %v3795_v37 = vsel %vm1253_vm5, %v3785_v10, -inf }
0x1482   : > { %3796 = vmax.xlane.f32.xlu0 %v3795_v37  ;;  %v3792_v19 = vsel %vm1253_vm5, %v3784_v20, -inf }
0x1483   : > { %3793 = vmax.xlane.f32.xlu1 %v3792_v19 }
0x150a   : > { %v3791_v38 = vpop.xlane.xlu0 %3790 }
0x150b   : > { %v3799_v14 = vsub.f32 %v3783_v17, %v3791_v38  ;;  %v3788_v33 = vpop.xlane.xlu1 %3787 }
0x150c   : > { %v3798_v23 = vsub.f32 %v3782_v30, %v3788_v33 }
0x150d   : > { %v3804_v26 = vmul.f32 1.442695, %v3799_v14 }
0x150e   : > { %v3802_v35 = vmul.f32 1.442695, %v3798_v23 }
0x150f   : > { %7653 = vpow2.f32 %v3804_v26  ;;  %v3797_v24 = vpop.xlane.xlu0 %3796 }
0x1510   : > { %7655 = vpow2.f32 %v3802_v35  ;;  %v3801_v13 = vsub.f32 %v3785_v10, %v3797_v24  ;;  %v3794_v43 = vpop.xlane.xlu1 %3793 }
0x1511   : > { %v3800_v44 = vsub.f32 %v3784_v20, %v3794_v43 }
0x1512   : > { %v3808_v25 = vmul.f32 1.442695, %v3801_v13 }
0x1513   : > { %v3806_v45 = vmul.f32 1.442695, %v3800_v44 }
0x1514   : > { %7657 = vpow2.f32 %v3808_v25 }
0x1515   : > { %7659 = vpow2.f32 %v3806_v45 }
0x1519   : > { %v7654_v27 = vpop.eup %7653 }
0x151a   : > { %v7656_v29 = vpop.eup %7655  ;;  %v3813_v39 = vsel %vm1253_vm5, %v7654_v27, 0.0 }
0x151b   : > { %3814 = vadd.xlane.f32.xlu0 %v3813_v39  ;;  %v3810_v41 = vsel %vm1253_vm5, %v7656_v29, 0.0 }
0x151c   : > { %3811 = vadd.xlane.f32.xlu1 %v3810_v41 }
0x151e   : > { %v7658_v47 = vpop.eup %7657 }
0x151f   : > { %v3819_v42 = vsel %vm1253_vm5, %v7658_v47, 0.0  ;;  %v7660_v46 = vpop.eup %7659 }
0x1520   : > { %3820 = vadd.xlane.f32.xlu0 %v3819_v42  ;;  %v3816_v49 = vsel %vm1253_vm5, %v7660_v46, 0.0 }
0x152d   : > { %7502 = vrot.lane.b32.xlu1 %v8317_v36, %s8680_s6 }
0x1531   : > { %7512 = vrot.lane.b32.xlu1 %v8329_v0, %s8681_s23 }
0x1536   : > { %7507 = vrot.lane.b32.xlu0 %v8329_v0, %s8680_s6  ;;  %s8686_s6 = smov 48  }
0x153a   : > { %4097 = vrot.lane.b32.xlu0 %v8319_v61, %s8682_s19 }
0x153e   : > { %4004 = vrot.lane.b32.xlu0 %v8311_v59, %s8682_s19 }
0x1555   : > { %3817 = vadd.xlane.f32.xlu1 %v3816_v49 }
0x1566   : > { %4095 = vrot.lane.b32.xlu1 %v8323_v63, %s8682_s19 }
0x156a   : > { %7517 = vrot.lane.b32.xlu1 %v8317_v36, %s8681_s23  ;;  %s8687_s23 = smov 72  }
0x156e   : > { %4006 = vrot.lane.b32.xlu1 %v8309_v58, %s8682_s19  ;;  %s8688_s19 = smov 104  }
0x15a8   : > { %v3815_v51 = vpop.xlane.xlu0 %3814 }
0x15a9   : > { %7661 = vrcp.f32 %v3815_v51  ;;  %v3812_v52 = vpop.xlane.xlu1 %3811 }
0x15aa   : > { %7663 = vrcp.f32 %v3812_v52 }
0x15ad   : > { %v3821_v53 = vpop.xlane.xlu0 %3820  ;;  %v7503_v56 = vpop.permute.xlu1 %7502 }
0x15ae   : > { %v7505_v57 = vunpack.i.h.bf16 %v7503_v56  ;;  %v7504_v32 = vunpack.i.l.bf16 %v7503_v56  ;;  %7665 = vrcp.f32 %v3821_v53 }
0x15b0   : > { %v7275_v60 = vpack.c.bf16 %v7505_v57, %v7504_v32 }
0x15b1   : > { %v7508_v62 = vpop.permute.xlu0 %7507  ;;  %v7513_v1 = vpop.permute.xlu1 %7512 }
0x15b2   : > { %v7510_v2 = vunpack.i.h.bf16 %v7508_v62  ;;  %v7509_v3 = vunpack.i.l.bf16 %v7508_v62  ;;  %7276 = vmatprep.subr.bf16.mxu0 %v7275_v60  ;;  %v7515_v7 = vunpack.i.h.bf16 %v7513_v1  ;;  %v7514_v8 = vunpack.i.l.bf16 %v7513_v1 }
0x15b3   : > { %v7662_v4 = vpop.eup %7661  ;;  %7278 = vmatpush3.bf16.msra.mxu0 %v7275_v60 }
0x15b4   : > { %v7664_v5 = vpop.eup %7663  ;;  %v7279_v6 = vpack.c.bf16 %v7510_v2, %v7509_v3  ;;  %v3825_v15 = vmul.f32 %v7662_v4, %v7654_v27  ;;  %v7289_v16 = vpack.c.bf16 %v7515_v7, %v7514_v8 }
0x15b5   : > { %v4098_v9 = vpop.permute.xlu0 %4097  ;;  %v3823_v12 = vmul.f32 %v7664_v5, %v7656_v29 }
0x15b6   : > { %7280 = vmatprep.subr.bf16.mxu0 %v7279_v6 }
0x15b7   : > { %6981 = vmatprep.mubr.msk.f32.mxu0 %vm1253_vm5, %v3823_v12 }
0x15b8   : > { %6982 = vmatmul.mubr.msk.f32.vlgmr.msra.gmra.mrb[38].mxu0 %vm1253_vm5, %v3825_v15  ;;  %v7666_v28 = vpop.eup %7665 }
0x15b9   : > { %7282 = vmatpush3.bf16.msra.mxu0 %v7279_v6  ;;  %v4005_v17 = vpop.permute.xlu0 %4004  ;;  %v3829_v37 = vmul.f32 %v7666_v28, %v7658_v47 }
0x15ba   : > { %7291 = vmatprep.subr.msk.bf16.mxu0 %vm7940_vm4, %v7289_v16  ;;  %6995 = vmatprep.mubr.msk.f32.mxu1 %vm1066_vm3, %v4005_v17 }
0x15e2   : > { %v3818_v30 = vpop.xlane.xlu1 %3817 }
0x15e3   : > { %7667 = vrcp.f32 %v3818_v30 }
0x15e6   : > { %v4096_v18 = vpop.permute.xlu1 %4095 }
0x15ea   : > { %v7518_v21 = vpop.permute.xlu1 %7517 }
0x15eb   : > { %v7520_v22 = vunpack.i.h.bf16 %v7518_v21  ;;  %v7519_v31 = vunpack.i.l.bf16 %v7518_v21 }
0x15ed   : > { %v7668_v34 = vpop.eup %7667  ;;  %v7283_v10 = vpack.c.bf16 %v7520_v22, %v7519_v31 }
0x15ee   : > { %v3827_v20 = vmul.f32 %v7668_v34, %v7660_v46  ;;  %v4007_v19 = vpop.permute.xlu1 %4006 }
0x15ef   : > { %7285 = vmatprep.subr.msk.bf16.mxu1 %vm7940_vm4, %v7283_v10 }
0x15f0   : > { %6988 = vmatprep.mubr.msk.f32.mxu0 %vm1253_vm5, %v3827_v20  ;;  %7288 = vmatpush3.bf16.xpose.msk.msra.mxu1 %vm7940_vm4, %v7283_v10 }
0x15f1   : > { %6989 = vmatmul.mubr.msk.f32.vlgmr.msra.gmra.mrb[40].mxu0 %vm1253_vm5, %v3829_v37 }
0x15f2   : > { %7294 = vmatpush3.bf16.xpose.msk.msra.mxu0 %vm7940_vm4, %v7289_v16  ;;  %7002 = vmatprep.mubr.msk.f32.mxu0 %vm1066_vm3, %v4096_v18 }
0x15f7   : > { %6996 = vmatmul.mubr.msk.f32.vlgmr.msra.gmra.mrb[26].mxu1 %vm1066_vm3, %v4007_v19 }
0x15f9   : > { %7003 = vmatmul.mubr.msk.f32.vlgmr.msra.gmra.mrb[42].mxu0 %vm1066_vm3, %v4098_v9 }
0x168b   : > { %v8392_v38 = vpop.f32.mrb[38].mxu0 }
0x168c   : > { %v8394_v14 = vpop.f32.mrb[39].mxu0 }
0x16c4   : > { %v8396_v33 = vpop.f32.mrb[40].mxu0 }
0x16c5   : > { %v8398_v23 = vpop.f32.mrb[41].mxu0 }
0x16ca   : > { %v6997_v26 = vpop.f32.mrb[26].mxu1 }
0x16cb   : > { %v4086_v35 = vpop.f32.mrb[27].mxu1  ;;  %v4187_v12 = vmul.f32 0.35355338, %v6997_v26 }
0x16cc   : > { %v7004_v24 = vpop.f32.mrb[42].mxu0  ;;  %v4186_v42 = vmul.f32 0.35355338, %v4086_v35 }
0x16cd   : > { %v4189_v13 = vmul.f32 0.35355338, %v7004_v24  ;;  %v4177_v25 = vpop.f32.mrb[43].mxu0  ;;  %v4191_v15 = vadd.f32 %v8346_v11, %v4187_v12 }
0x16ce   : > { %v4188_v27 = vmul.f32 0.35355338, %v4177_v25  ;;  %v4190_v43 = vadd.f32 %v8346_v11, %v4186_v42 }
0x16cf   : > { %v4193_v29 = vadd.f32 %v8346_v11, %v4189_v13  ;;  %v4197_v16 = vsel %vm1253_vm5, %v4191_v15, -inf }
0x16d0   : > { %v4192_v39 = vadd.f32 %v8346_v11, %v4188_v27  ;;  %v4194_v44 = vsel %vm1253_vm5, %v4190_v43, -inf }
0x16d1   : > { %v4203_v41 = vsel %vm1253_vm5, %v4193_v29, -inf }
0x16d2   : > { %4204 = vmax.xlane.f32.xlu1 %v4203_v41  ;;  %v4200_v47 = vsel %vm1253_vm5, %v4192_v39, -inf }
0x16d3   : > { %4201 = vmax.xlane.f32.xlu0 %v4200_v47 }
0x16e3   : > { %7522 = vrot.lane.b32.xlu1 %v8329_v0, %s8683_s24 }
0x16e7   : > { %7532 = vrot.lane.b32.xlu1 %v8329_v0, %s8684_s29 }
0x16eb   : > { %4606 = vrot.lane.b32.xlu1 %v8311_v59, %s8685_s5 }
0x16ef   : > { %4697 = vrot.lane.b32.xlu1 %v8323_v63, %s8685_s5 }
0x1713   : > { %4195 = vmax.xlane.f32.xlu1 %v4194_v44 }
0x175f   : > { %v4205_v45 = vpop.xlane.xlu1 %4204 }
0x1760   : > { %v4209_v46 = vsub.f32 %v4193_v29, %v4205_v45  ;;  %v4202_v49 = vpop.xlane.xlu0 %4201 }
0x1761   : > { %v4208_v51 = vsub.f32 %v4192_v39, %v4202_v49 }
0x1762   : > { %v4216_v52 = vmul.f32 1.442695, %v4209_v46 }
0x1763   : > { %v4214_v53 = vmul.f32 1.442695, %v4208_v51  ;;  %v7523_v56 = vpop.permute.xlu1 %7522 }
0x1764   : > { %7669 = vpow2.f32 %v4216_v52  ;;  %v7525_v57 = vunpack.i.h.bf16 %v7523_v56  ;;  %v7524_v32 = vunpack.i.l.bf16 %v7523_v56 }
0x1765   : > { %7671 = vpow2.f32 %v4214_v53 }
0x1766   : > { %v7299_v60 = vpack.c.bf16 %v7525_v57, %v7524_v32 }
0x1767   : > { %v7533_v4 = vpop.permute.xlu1 %7532 }
0x1768   : > { %7300 = vmatprep.subr.bf16.mxu0 %v7299_v60  ;;  %v7535_v37 = vunpack.i.h.bf16 %v7533_v4  ;;  %v7534_v19 = vunpack.i.l.bf16 %v7533_v4 }
0x1769   : > { %7302 = vmatpush3.bf16.msra.mxu0 %v7299_v60 }
0x176a   : > { %v7309_v24 = vpack.c.bf16 %v7535_v37, %v7534_v19 }
0x176b   : > { %v4607_v5 = vpop.permute.xlu1 %4606 }
0x176e   : > { %v7670_v62 = vpop.eup %7669 }
0x176f   : > { %v4227_v1 = vsel %vm1253_vm5, %v7670_v62, 0.0  ;;  %v7672_v2 = vpop.eup %7671  ;;  %v4698_v6 = vpop.permute.xlu1 %4697 }
0x1770   : > { %4228 = vadd.xlane.f32.xlu0 %v4227_v1  ;;  %v4224_v3 = vsel %vm1253_vm5, %v7672_v2, 0.0 }
0x1774   : > { %4225 = vadd.xlane.f32.xlu0 %v4224_v3 }
0x178a   : > { %7527 = vrot.lane.b32.xlu0 %v8317_v36, %s8684_s29 }
0x178e   : > { %4608 = vrot.lane.b32.xlu0 %v8309_v58, %s8685_s5 }
0x1792   : > { %4699 = vrot.lane.b32.xlu0 %v8319_v61, %s8685_s5 }
0x17a0   : > { %v4196_v7 = vpop.xlane.xlu1 %4195 }
0x17a1   : > { %v4206_v8 = vsub.f32 %v4190_v43, %v4196_v7 }
0x17a3   : > { %v4210_v9 = vmul.f32 1.442695, %v4206_v8 }
0x17a5   : > { %7673 = vpow2.f32 %v4210_v9 }
0x17af   : > { %v7674_v17 = vpop.eup %7673 }
0x17b0   : > { %v4218_v30 = vsel %vm1253_vm5, %v7674_v17, 0.0 }
0x17b1   : > { %4198 = vmax.xlane.f32.xlu0 %v4197_v16 }
0x17b5   : > { %4219 = vadd.xlane.f32.xlu0 %v4218_v30 }
0x17cb   : > { %7537 = vrot.lane.b32.xlu0 %v8317_v36, %s8683_s24  ;;  %s8689_s24 = smov 40  }
0x17fd   : > { %v4229_v18 = vpop.xlane.xlu0 %4228 }
0x17fe   : > { %7675 = vrcp.f32 %v4229_v18  ;;  %v6409_v18 = vld [vmem:[%s8050_s2 + $0x28] sm:$0xff] }
0x1801   : > { %v4226_v21 = vpop.xlane.xlu0 %4225 }
0x1802   : > { %7677 = vrcp.f32 %v4226_v21  ;;  %v6408_v21 = vld [vmem:[%s8050_s2 + $0x20] sm:$0xff] }
0x1805   : > { %v7528_v22 = vpop.permute.xlu0 %7527 }
0x1806   : > { %v7530_v31 = vunpack.i.h.bf16 %v7528_v22  ;;  %v7529_v28 = vunpack.i.l.bf16 %v7528_v22 }
0x1808   : > { %v7303_v34 = vpack.c.bf16 %v7530_v31, %v7529_v28  ;;  %v7676_v10 = vpop.eup %7675 }
0x1809   : > { %v4237_v35 = vmul.f32 %v7676_v10, %v7670_v62  ;;  %v4609_v13 = vpop.permute.xlu0 %4608 }
0x180a   : > { %7305 = vmatprep.subr.msk.bf16.mxu0 %vm7940_vm4, %v7303_v34 }
0x180c   : > { %v7678_v20 = vpop.eup %7677 }
0x180d   : > { %v4235_v26 = vmul.f32 %v7678_v20, %v7672_v2  ;;  %v4700_v25 = vpop.permute.xlu0 %4699 }
0x180f   : > { %7016 = vmatprep.mubr.msk.f32.mxu0 %vm1253_vm5, %v4235_v26 }
0x1810   : > { %7017 = vmatmul.mubr.msk.f32.vlgmr.msra.gmra.mrb[44].mxu0 %vm1253_vm5, %v4237_v35 }
0x1811   : > { %7308 = vmatpush3.bf16.xpose.msk.msra.mxu0 %vm7940_vm4, %v7303_v34  ;;  %7039 = vmatprep.mubr.msk.f32.mxu0 %vm1066_vm3, %v4607_v5 }
0x1812   : > { %7311 = vmatprep.subr.msk.bf16.mxu0 %vm7940_vm4, %v7309_v24 }
0x1818   : > { %7040 = vmatmul.mubr.msk.f32.vlgmr.msra.gmra.mrb[46].mxu0 %vm1066_vm3, %v4609_v13 }
0x1819   : > { %7314 = vmatpush3.bf16.xpose.msk.msra.mxu0 %vm7940_vm4, %v7309_v24  ;;  %7046 = vmatprep.mubr.msk.f32.mxu0 %vm1066_vm3, %v4698_v6 }
0x1820   : > { %7047 = vmatmul.mubr.msk.f32.vlgmr.msra.gmra.mrb[48].mxu0 %vm1066_vm3, %v4700_v25 }
0x183e   : > { %v4199_v27 = vpop.xlane.xlu0 %4198 }
0x183f   : > { %v4207_v29 = vsub.f32 %v4191_v15, %v4199_v27 }
0x1841   : > { %v4212_v39 = vmul.f32 1.442695, %v4207_v29 }
0x1842   : > { %v4220_v41 = vpop.xlane.xlu0 %4219 }
0x1843   : > { %7679 = vpow2.f32 %v4212_v39 }
0x1844   : > { %7681 = vrcp.f32 %v4220_v41 }
0x1846   : > { %v7538_v47 = vpop.permute.xlu0 %7537 }
0x1847   : > { %v7540_v42 = vunpack.i.h.bf16 %v7538_v47  ;;  %v7539_v43 = vunpack.i.l.bf16 %v7538_v47 }
0x1849   : > { %v7295_v44 = vpack.c.bf16 %v7540_v42, %v7539_v43 }
0x184b   : > { %7296 = vmatprep.subr.bf16.mxu1 %v7295_v44 }
0x184c   : > { %7298 = vmatpush3.bf16.msra.mxu1 %v7295_v44 }
0x184d   : > { %v7680_v45 = vpop.eup %7679  ;;  %7019 = vmatprep.subr.mxu1 %v6409_v18 }
0x184e   : > { %v7682_v46 = vpop.eup %7681  ;;  %v4221_v49 = vsel %vm1253_vm5, %v7680_v45, 0.0 }
0x184f   : > { %4222 = vadd.xlane.f32.xlu1 %v4221_v49  ;;  %v4231_v51 = vmul.f32 %v7682_v46, %v7674_v17 }
0x1851   : > { %7009 = vmatprep.mubr.msk.f32.mxu1 %vm1253_vm5, %v4231_v51 }
0x18dc   : > { %v4223_v52 = vpop.xlane.xlu1 %4222 }
0x18dd   : > { %7683 = vrcp.f32 %v4223_v52 }
0x18e3   : > { %v8443_v53 = vpop.f32.mrb[44].mxu0 }
0x18e4   : > { %v8445_v56 = vpop.f32.mrb[45].mxu0 }
0x18e7   : > { %v7684_v57 = vpop.eup %7683 }
0x18e8   : > { %v4233_v32 = vmul.f32 %v7684_v57, %v7680_v45 }
0x18ea   : > { %7010 = vmatmul.mubr.msk.f32.vlgmr.msra.gmra.mrb[28].mxu1 %vm1253_vm5, %v4233_v32  ;;  %v6410_v32 = vld [vmem:[%s8050_s2 + $0x30] sm:$0xff] }
0x18eb   : > { %v7041_v60 = vpop.f32.mrb[46].mxu0  ;;  %7020 = vmatpush3.msra.mxu1 %v6409_v18 }
0x18ec   : > { %v4789_v62 = vmul.f32 0.35355338, %v7041_v60  ;;  %v4688_v1 = vpop.f32.mrb[47].mxu0  ;;  %7027 = vmatprep.subr.mxu1 %v6408_v21 }
0x18ed   : > { %v4788_v2 = vmul.f32 0.35355338, %v4688_v1 }
0x18ee   : > { %v4793_v3 = vadd.f32 %v8346_v11, %v4789_v62 }
0x18ef   : > { %v4792_v4 = vadd.f32 %v8346_v11, %v4788_v2 }
0x18f0   : > { %v4799_v5 = vsel %vm1253_vm5, %v4793_v3, -inf }
0x18f1   : > { %4800 = vmax.xlane.f32.xlu1 %v4799_v5  ;;  %v4796_v8 = vsel %vm1253_vm5, %v4792_v4, -inf }
0x18f3   : > { %v7048_v6 = vpop.f32.mrb[48].mxu0 }
0x18f4   : > { %v4779_v7 = vpop.f32.mrb[49].mxu0  ;;  %v4791_v9 = vmul.f32 0.35355338, %v7048_v6 }
0x18f5   : > { %v4790_v12 = vmul.f32 0.35355338, %v4779_v7  ;;  %4797 = vmax.xlane.f32.xlu1 %v4796_v8 }
0x18f6   : > { %v4795_v16 = vadd.f32 %v8346_v11, %v4791_v9 }
0x18f7   : > { %v4794_v15 = vadd.f32 %v8346_v11, %v4790_v12 }
0x18f8   : > { %v4805_v30 = vsel %vm1253_vm5, %v4795_v16, -inf }
0x18f9   : > { %v4802_v17 = vsel %vm1253_vm5, %v4794_v15, -inf }
0x18fa   : > { %4803 = vmax.xlane.f32.xlu1 %v4802_v17 }
0x18fe   : > { %4806 = vmax.xlane.f32.xlu1 %v4805_v30 }
0x197e   : > { %v4801_v22 = vpop.xlane.xlu1 %4800 }
0x197f   : > { %v4809_v31 = vsub.f32 %v4793_v3, %v4801_v22 }
0x1981   : > { %v4814_v28 = vmul.f32 1.442695, %v4809_v31 }
0x1982   : > { %v4798_v34 = vpop.xlane.xlu1 %4797 }
0x1983   : > { %7685 = vpow2.f32 %v4814_v28  ;;  %v4808_v10 = vsub.f32 %v4792_v4, %v4798_v34 }
0x1985   : > { %v4812_v20 = vmul.f32 1.442695, %v4808_v10 }
0x1987   : > { %7687 = vpow2.f32 %v4812_v20  ;;  %v4804_v37 = vpop.xlane.xlu1 %4803 }
0x1988   : > { %v4810_v19 = vsub.f32 %v4794_v15, %v4804_v37 }
0x198a   : > { %v4816_v26 = vmul.f32 1.442695, %v4810_v19 }
0x198b   : > { %v4807_v35 = vpop.xlane.xlu1 %4806 }
0x198c   : > { %7689 = vpow2.f32 %v4816_v26  ;;  %v4811_v24 = vsub.f32 %v4795_v16, %v4807_v35 }
0x198d   : > { %v7686_v13 = vpop.eup %7685 }
0x198e   : > { %v4818_v25 = vmul.f32 1.442695, %v4811_v24  ;;  %v4823_v27 = vsel %vm1253_vm5, %v7686_v13, 0.0 }
0x198f   : > { %4824 = vadd.xlane.f32.xlu1 %v4823_v27 }
0x1990   : > { %7691 = vpow2.f32 %v4818_v25 }
0x1991   : > { %v7688_v29 = vpop.eup %7687 }
0x1992   : > { %v4820_v39 = vsel %vm1253_vm5, %v7688_v29, 0.0 }
0x1993   : > { %4821 = vadd.xlane.f32.xlu1 %v4820_v39 }
0x1996   : > { %v7690_v41 = vpop.eup %7689 }
0x1997   : > { %v4826_v47 = vsel %vm1253_vm5, %v7690_v41, 0.0 }
0x1998   : > { %4827 = vadd.xlane.f32.xlu0 %v4826_v47 }
0x199a   : > { %v7692_v42 = vpop.eup %7691 }
0x199b   : > { %v4829_v43 = vsel %vm1253_vm5, %v7692_v42, 0.0 }
0x199c   : > { %4830 = vadd.xlane.f32.xlu1 %v4829_v43 }
0x19ad   : > { %7542 = vrot.lane.b32.xlu1 %v8317_v36, %s8686_s6 }
0x19ae   : > { %7557 = vrot.lane.b32.xlu0 %v8329_v0, %s8687_s23 }
0x19b1   : > { %7547 = vrot.lane.b32.xlu1 %v8329_v0, %s8686_s6 }
0x19b5   : > { %7552 = vrot.lane.b32.xlu1 %v8317_v36, %s8687_s23 }
0x19b9   : > { %5115 = vrot.lane.b32.xlu1 %v8311_v59, %s8688_s19 }
0x19bd   : > { %5117 = vrot.lane.b32.xlu1 %v8309_v58, %s8688_s19  ;;  %v7011_v44 = vpop.f32.mrb[28].mxu1 }
0x19be   : > { %v4316_v45 = vpop.f32.mrb[29].mxu1 }
0x19bf   : > { %7021 = vmatprep.mubr.msk.f32.mxu1 %vm1066_vm3, %v4316_v45 }
0x19c0   : > { %7022 = vmatmul.mubr.msk.f32.vlgmr.msra.gmra.mrb[30].mxu1 %vm1066_vm3, %v7011_v44 }
0x19c1   : > { %5206 = vrot.lane.b32.xlu1 %v8323_v63, %s8688_s19  ;;  %7024 = vmatprep.mubr.msk.f32.mxu1 %vm1066_vm3, %v8445_v56 }
0x19c2   : > { %7028 = vmatpush3.msra.mxu1 %v6408_v21 }
0x19c4   : > { %7025 = vmatmul.mubr.msk.f32.gmra.mrb[32].mxu1 %vm1066_vm3, %v8443_v53 }
0x19c5   : > { %5208 = vrot.lane.b32.xlu1 %v8319_v61, %s8688_s19  ;;  %7029 = vmatprep.mubr.msk.f32.mxu1 %vm1066_vm3, %v8394_v14 }
0x19c8   : > { %7030 = vmatmul.mubr.msk.f32.vlgmr.msra.gmra.mrb[30].mxu1 %vm1066_vm3, %v8392_v38 }
0x19c9   : > { %7032 = vmatprep.mubr.msk.f32.mxu1 %vm1066_vm3, %v8398_v23 }
0x19cc   : > { %7033 = vmatmul.mubr.msk.f32.gmra.mrb[32].mxu1 %vm1066_vm3, %v8396_v33 }
0x1a1c   : > { %v4825_v58 = vpop.xlane.xlu1 %4824 }
0x1a20   : > { %v4822_v59 = vpop.xlane.xlu1 %4821 }
0x1a21   : > { %7693 = vrcp.f32 %v4822_v59 }
0x1a25   : > { %v4828_v63 = vpop.xlane.xlu0 %4827 }
0x1a26   : > { %7695 = vrcp.f32 %v4828_v63 }
0x1a27   : > { %7697 = vrcp.f32 %v4825_v58 }
0x1a29   : > { %v4831_v61 = vpop.xlane.xlu1 %4830  ;;  %v7558_v23 = vpop.permute.xlu0 %7557 }
0x1a2a   : > { %7699 = vrcp.f32 %v4831_v61  ;;  %v7560_v60 = vunpack.i.h.bf16 %v7558_v23  ;;  %v7559_v62 = vunpack.i.l.bf16 %v7558_v23 }
0x1a2b   : > { %v7694_v46 = vpop.eup %7693 }
0x1a2c   : > { %v4833_v14 = vmul.f32 %v7694_v46, %v7688_v29  ;;  %v7329_v7 = vpack.c.bf16 %v7560_v60, %v7559_v62 }
0x1a2d   : > { %v7543_v49 = vpop.permute.xlu1 %7542 }
0x1a2e   : > { %v7545_v51 = vunpack.i.h.bf16 %v7543_v49  ;;  %v7544_v38 = vunpack.i.l.bf16 %v7543_v49  ;;  %7053 = vmatprep.mubr.msk.f32.mxu1 %vm1253_vm5, %v4833_v14 }
0x1a30   : > { %v7696_v52 = vpop.eup %7695  ;;  %v7315_v53 = vpack.c.bf16 %v7545_v51, %v7544_v38 }
0x1a31   : > { %v7698_v33 = vpop.eup %7697  ;;  %v7548_v56 = vpop.permute.xlu1 %7547  ;;  %v4837_v57 = vmul.f32 %v7696_v52, %v7690_v41 }
0x1a32   : > { %v7550_v1 = vunpack.i.h.bf16 %v7548_v56  ;;  %v7549_v2 = vunpack.i.l.bf16 %v7548_v56  ;;  %7316 = vmatprep.subr.bf16.mxu1 %v7315_v53  ;;  %v4835_v3 = vmul.f32 %v7698_v33, %v7686_v13 }
0x1a33   : > { %7318 = vmatpush3.bf16.msra.mxu1 %v7315_v53  ;;  %7060 = vmatprep.mubr.msk.f32.mxu0 %vm1253_vm5, %v4837_v57 }
0x1a34   : > { %v7319_v4 = vpack.c.bf16 %v7550_v1, %v7549_v2  ;;  %7063 = vmatprep.subr.mxu1 %v6410_v32  ;;  %v7700_v5 = vpop.eup %7699 }
0x1a35   : > { %v7553_v6 = vpop.permute.xlu1 %7552  ;;  %v4839_v12 = vmul.f32 %v7700_v5, %v7692_v42 }
0x1a36   : > { %v7555_v8 = vunpack.i.h.bf16 %v7553_v6  ;;  %v7554_v9 = vunpack.i.l.bf16 %v7553_v6  ;;  %7054 = vmatmul.mubr.msk.f32.vlgmr.msra.gmra.mrb[34].mxu1 %vm1253_vm5, %v4835_v3  ;;  %7320 = vmatprep.subr.bf16.mxu0 %v7319_v4 }
0x1a37   : > { %7322 = vmatpush3.bf16.msra.mxu0 %v7319_v4  ;;  %7064 = vmatpush3.msra.mxu1 %v6410_v32 }
0x1a38   : > { %v7323_v15 = vpack.c.bf16 %v7555_v8, %v7554_v9  ;;  %7331 = vmatprep.subr.msk.bf16.mxu1 %vm7940_vm4, %v7329_v7 }
0x1a39   : > { %v5116_v16 = vpop.permute.xlu1 %5115 }
0x1a3a   : > { %7061 = vmatmul.mubr.msk.f32.vlgmr.msra.gmra.mrb[50].mxu0 %vm1253_vm5, %v4839_v12  ;;  %7325 = vmatprep.subr.msk.bf16.mxu0 %vm7940_vm4, %v7323_v15 }
0x1a3b   : > { %7075 = vmatprep.mubr.msk.f32.mxu0 %vm1066_vm3, %v5116_v16 }
0x1a3d   : > { %v5118_v17 = vpop.permute.xlu1 %5117 }
0x1a40   : > { %7328 = vmatpush3.bf16.xpose.msk.msra.mxu0 %vm7940_vm4, %v7323_v15 }
0x1a41   : > { %v5207_v21 = vpop.permute.xlu1 %5206 }
0x1a45   : > { %v5209_v28 = vpop.permute.xlu1 %5208 }
0x1a47   : > { %7076 = vmatmul.mubr.msk.f32.vlgmr.msra.gmra.mrb[52].mxu0 %vm1066_vm3, %v5118_v17 }
0x1b09   : > { %v7055_v30 = vpop.f32.mrb[34].mxu1 }
0x1b0a   : > { %v4918_v18 = vpop.f32.mrb[35].mxu1 }
0x1b0b   : > { %7065 = vmatprep.mubr.msk.f32.mxu1 %vm1066_vm3, %v4918_v18 }
0x1b0c   : > { %7066 = vmatmul.mubr.msk.f32.vlgmr.msra.gmra.mrb[30].mxu1 %vm1066_vm3, %v7055_v30 }
0x1b0d   : > { %7334 = vmatpush3.bf16.xpose.msk.msra.mxu1 %vm7940_vm4, %v7329_v7  ;;  %v7062_v22 = vpop.f32.mrb[50].mxu0 }
0x1b0e   : > { %v5005_v31 = vpop.f32.mrb[51].mxu0 }
0x1b0f   : > { %7068 = vmatprep.mubr.msk.f32.mxu1 %vm1066_vm3, %v5005_v31 }
0x1b10   : > { %7069 = vmatmul.mubr.msk.f32.gmra.mrb[32].mxu1 %vm1066_vm3, %v7062_v22 }
0x1b11   : > { %7082 = vmatprep.mubr.msk.f32.mxu1 %vm1066_vm3, %v5207_v21  ;;  %v6411_v21 = vld [vmem:[%s8050_s2 + $0x38] sm:$0xff] }
0x1b14   : > { %7083 = vmatmul.mubr.msk.f32.vlgmr.msra.gmra.mrb[36].mxu1 %vm1066_vm3, %v5209_v28 }
0x1b1a   : > { %v7077_v34 = vpop.f32.mrb[52].mxu0 }
0x1b1b   : > { %v5298_v10 = vmul.f32 0.35355338, %v7077_v34  ;;  %v5197_v20 = vpop.f32.mrb[53].mxu0 }
0x1b1c   : > { %v5297_v37 = vmul.f32 0.35355338, %v5197_v20 }
0x1b1d   : > { %v5302_v19 = vadd.f32 %v8346_v11, %v5298_v10  ;;  %v6477_v10 = vld [vmem:[%s8167_s26 + $0x1] ss:$0 sm:$0xff] }
0x1b1e   : > { %v5301_v40 = vadd.f32 %v8346_v11, %v5297_v37 }
0x1b1f   : > { %v5308_v26 = vsel %vm1253_vm5, %v5302_v19, -inf }
0x1b20   : > { %5309 = vmax.xlane.f32.xlu0 %v5308_v26  ;;  %v5305_v35 = vsel %vm1253_vm5, %v5301_v40, -inf }
0x1b21   : > { %5306 = vmax.xlane.f32.xlu1 %v5305_v35 }
0x1bad   : > { %v5310_v24 = vpop.xlane.xlu0 %5309 }
0x1bae   : > { %v5307_v13 = vpop.xlane.xlu1 %5306  ;;  %v5318_v25 = vsub.f32 %v5302_v19, %v5310_v24 }
0x1baf   : > { %v5317_v27 = vsub.f32 %v5301_v40, %v5307_v13 }
0x1bb0   : > { %v5323_v29 = vmul.f32 1.442695, %v5318_v25 }
0x1bb1   : > { %v5321_v39 = vmul.f32 1.442695, %v5317_v27 }
0x1bb2   : > { %7701 = vpow2.f32 %v5323_v29 }
0x1bb3   : > { %7703 = vpow2.f32 %v5321_v39 }
0x1bbc   : > { %v7702_v59 = vpop.eup %7701 }
0x1bbd   : > { %v7704_v61 = vpop.eup %7703  ;;  %v5332_v46 = vsel %vm1253_vm5, %v7702_v59, 0.0 }
0x1bbe   : > { %v5329_v14 = vsel %vm1253_vm5, %v7704_v61, 0.0 }
0x1be7   : > { %v7084_v41 = vpop.f32.mrb[36].mxu1 }
0x1be8   : > { %v5300_v47 = vmul.f32 0.35355338, %v7084_v41  ;;  %v5288_v42 = vpop.f32.mrb[37].mxu1 }
0x1be9   : > { %v5299_v43 = vmul.f32 0.35355338, %v5288_v42 }
0x1bea   : > { %v5304_v44 = vadd.f32 %v8346_v11, %v5300_v47 }
0x1beb   : > { %v5303_v45 = vadd.f32 %v8346_v11, %v5299_v43 }
0x1bec   : > { %v5314_v58 = vsel %vm1253_vm5, %v5304_v44, -inf }
0x1bed   : > { %5315 = vmax.xlane.f32.xlu1 %v5314_v58  ;;  %v5311_v63 = vsel %vm1253_vm5, %v5303_v45, -inf }
0x1bee   : > { %5312 = vmax.xlane.f32.xlu0 %v5311_v63 }
0x1bf1   : > { %5333 = vadd.xlane.f32.xlu1 %v5332_v46 }
0x1bf2   : > { %5330 = vadd.xlane.f32.xlu0 %v5329_v14 }
0x1c7a   : > { %v5316_v49 = vpop.xlane.xlu1 %5315 }
0x1c7b   : > { %v5320_v51 = vsub.f32 %v5304_v44, %v5316_v49  ;;  %v5313_v38 = vpop.xlane.xlu0 %5312 }
0x1c7c   : > { %v5319_v23 = vsub.f32 %v5303_v45, %v5313_v38 }
0x1c7d   : > { %v5327_v52 = vmul.f32 1.442695, %v5320_v51 }
0x1c7e   : > { %v5325_v11 = vmul.f32 1.442695, %v5319_v23  ;;  %v5334_v1 = vpop.xlane.xlu1 %5333 }
0x1c7f   : > { %7705 = vpow2.f32 %v5327_v52  ;;  %v5331_v53 = vpop.xlane.xlu0 %5330 }
0x1c80   : > { %7707 = vpow2.f32 %v5325_v11 }
0x1c81   : > { %7709 = vrcp.f32 %v5331_v53 }
0x1c82   : > { %7711 = vrcp.f32 %v5334_v1 }
0x1c89   : > { %v7706_v33 = vpop.eup %7705 }
0x1c8a   : > { %v7708_v56 = vpop.eup %7707  ;;  %v5338_v57 = vsel %vm1253_vm5, %v7706_v33, 0.0 }
0x1c8b   : > { %5339 = vadd.xlane.f32.xlu1 %v5338_v57  ;;  %v5335_v32 = vsel %vm1253_vm5, %v7708_v56, 0.0  ;;  %v7710_v60 = vpop.eup %7709  ;;  %v6483_v57 = vld [vmem:[%s8206_s21 + $0x28] sm:$0xff] }
0x1c8c   : > { %5336 = vadd.xlane.f32.xlu0 %v5335_v32  ;;  %v5342_v62 = vmul.f32 %v7710_v60, %v7704_v61  ;;  %v7712_v16 = vpop.eup %7711  ;;  %v6484_v60 = vld [vmem:[%s8206_s21 + $0x30] sm:$0xff] }
0x1c8d   : > { %v5344_v17 = vmul.f32 %v7712_v16, %v7702_v59 }
0x1c8e   : > { %7089 = vmatprep.mubr.msk.f32.mxu0 %vm1253_vm5, %v5342_v62  ;;  %v6485_v62 = vld [vmem:[%s8206_s21 + $0x38] sm:$0xff] }
0x1c8f   : > { %v7347_v1 = vpack.c.bf16 %v6485_v62, %v6484_v60 }
0x1c9c   : > { %7567 = vrot.lane.b32.xlu1 %v8329_v0, %s8689_s24 }
0x1ca2   : > { %7562 = vrot.lane.b32.xlu0 %v8317_v36, %s8689_s24 }
0x1d18   : > { %v5340_v2 = vpop.xlane.xlu1 %5339 }
0x1d19   : > { %7713 = vrcp.f32 %v5340_v2  ;;  %v5337_v3 = vpop.xlane.xlu0 %5336  ;;  %v6492_v2 = vld [vmem:[%s8216_s22 + $0x40] sm:$0xff] }
0x1d1a   : > { %7715 = vrcp.f32 %v5337_v3  ;;  %v6493_v3 = vld [vmem:[%s8216_s22 + $0x48] sm:$0xff] }
0x1d1c   : > { %v7568_v4 = vpop.permute.xlu1 %7567 }
0x1d1d   : > { %v7570_v5 = vunpack.i.h.bf16 %v7568_v4  ;;  %v7569_v6 = vunpack.i.l.bf16 %v7568_v4  ;;  %v7563_v7 = vpop.permute.xlu0 %7562  ;;  %v6494_v4 = vld [vmem:[%s8216_s22 + $0x50] sm:$0xff] }
0x1d1e   : > { %v7565_v8 = vunpack.i.h.bf16 %v7563_v7  ;;  %v7564_v9 = vunpack.i.l.bf16 %v7563_v7 }
0x1d1f   : > { %v7339_v12 = vpack.c.bf16 %v7570_v5, %v7569_v6  ;;  %v7351_v5 = vpack.c.bf16 %v6493_v3, %v6492_v2  ;;  %v6495_v6 = vld [vmem:[%s8216_s22 + $0x58] sm:$0xff] }
0x1d20   : > { %v7335_v15 = vpack.c.bf16 %v7565_v8, %v7564_v9  ;;  %v7355_v7 = vpack.c.bf16 %v6495_v6, %v6494_v4  ;;  %v6496_v8 = vld [vmem:[%s8216_s22 + $0x60] sm:$0xff]  ;;  %v6497_v9 = vld [vmem:[%s8216_s22 + $0x68] sm:$0xff] }
0x1d21   : > { %7340 = vmatprep.subr.bf16.mxu1 %v7339_v12 }
0x1d22   : > { %7336 = vmatprep.subr.bf16.mxu0 %v7335_v15  ;;  %7342 = vmatpush3.bf16.msra.mxu1 %v7339_v12  ;;  %v7359_v12 = vpack.c.bf16 %v6497_v9, %v6496_v8 }
0x1d23   : > { %v7714_v36 = vpop.eup %7713  ;;  %7338 = vmatpush3.bf16.msra.mxu0 %v7335_v15  ;;  %7099 = vmatprep.subr.mxu1 %v6411_v21 }
0x1d24   : > { %v7716_v0 = vpop.eup %7715  ;;  %v5348_v18 = vmul.f32 %v7714_v36, %v7706_v33 }
0x1d25   : > { %v5346_v30 = vmul.f32 %v7716_v0, %v7708_v56  ;;  %v6482_v56 = vld [vmem:[%s8206_s21 + $0x20] sm:$0xff] }
0x1d26   : > { %7090 = vmatmul.mubr.msk.f32.vlgmr.msra.gmra.mrb[54].mxu0 %vm1253_vm5, %v5344_v17  ;;  %v7343_v32 = vpack.c.bf16 %v6483_v57, %v6482_v56 }
0x1d27   : > { %7096 = vmatprep.mubr.msk.f32.mxu1 %vm1253_vm5, %v5346_v30 }
0x1d28   : > { %7097 = vmatmul.mubr.msk.f32.vlgmr.msra.gmra.mrb[38].mxu1 %vm1253_vm5, %v5348_v18  ;;  %7344 = vmatprep.subr.bf16.mxu0 %v7343_v32 }
0x1d29   : > { %7100 = vmatpush3.msra.mxu1 %v6411_v21  ;;  %7346 = vmatpush3.bf16.msra.mxu0 %v7343_v32 }
0x1d2a   : > { %7348 = vmatprep.subr.bf16.mxu0 %v7347_v1  ;;  %7352 = vmatprep.subr.bf16.mxu1 %v7351_v5 }
0x1d2d   : > { %7350 = vmatpush3.bf16.msra.mxu0 %v7347_v1 }
0x1df9   : > { %v7091_v22 = vpop.f32.mrb[54].mxu0 }
0x1dfa   : > { %v5427_v31 = vpop.f32.mrb[55].mxu0 }
0x1dfb   : > { %v7098_v28 = vpop.f32.mrb[38].mxu1  ;;  %7101 = vmatprep.mubr.msk.f32.mxu1 %vm1066_vm3, %v5427_v31 }
0x1dfc   : > { %v5514_v34 = vpop.f32.mrb[39].mxu1  ;;  %7102 = vmatmul.mubr.msk.f32.vlgmr.msra.gmra.mrb[30].mxu1 %vm1066_vm3, %v7091_v22 }
0x1dfd   : > { %7104 = vmatprep.mubr.msk.f32.mxu1 %vm1066_vm3, %v5514_v34  ;;  %7354 = vmatpush3.bf16.msra.mxu1 %v7351_v5 }
0x1dfe   : > { %7356 = vmatprep.subr.bf16.mxu1 %v7355_v7 }
0x1e00   : > { %7105 = vmatmul.mubr.msk.f32.gmra.mrb[32].mxu1 %vm1066_vm3, %v7098_v28 }
0x1e01   : > { %7358 = vmatpush3.bf16.msra.mxu1 %v7355_v7 }
0x1e02   : > { %7360 = vmatprep.subr.bf16.mxu1 %v7359_v12 }
0x1e05   : > { %7362 = vmatpush3.bf16.msra.mxu1 %v7359_v12  ;;  %v7753_v12 = vmov 0  }
0x1e06   : > { %7572 = vset.pattern.permute.xlu1 %v7753_v12  ;;  %7571 = vset.pattern.permute.xlu0 %v7753_v12 }
0x1ecf   : > { %v7103_v20 = vpop.f32.mrb[30].mxu1 }
0x1ed0   : > { %v5633_v37 = vadd.f32 %v7103_v20, %v6477_v10  ;;  %v5601_v19 = vpop.f32.mrb[31].mxu1  ;;  %v6480_v20 = vld [vmem:[%s8228_s1 + $0x1] ss:$0 sm:$0xff] }
0x1ed1   : > { %v5632_v40 = vadd.f32 %v6477_v10, %v5601_v19 }
0x1ed2   : > { %v5637_v26 = vadd.f32 %v5633_v37, %v8294_v50 }
0x1ed3   : > { %v5636_v35 = vadd.f32 %v5632_v40, %v8292_v48  ;;  %v7106_v24 = vpop.f32.mrb[32].mxu1 }
0x1ed4   : > { %v5635_v13 = vadd.f32 %v7106_v24, %v6477_v10  ;;  %v5611_v25 = vpop.f32.mrb[33].mxu1  ;;  %v5647_v27 = vsel %vm958_vm2, %v5637_v26, 0.0 }
0x1ed5   : > { %v5634_v29 = vadd.f32 %v6477_v10, %v5611_v25  ;;  %5648 = vadd.xlane.f32.xlu0 %v5647_v27  ;;  %v5644_v39 = vsel %vm958_vm2, %v5636_v35, 0.0 }
0x1ed6   : > { %v5639_v41 = vadd.f32 %v5635_v13, %v8302_v55  ;;  %5645 = vadd.xlane.f32.xlu1 %v5644_v39 }
0x1ed7   : > { %v5638_v47 = vadd.f32 %v5634_v29, %v8300_v54 }
0x1ed8   : > { %v5653_v42 = vsel %vm958_vm2, %v5639_v41, 0.0 }
0x1ed9   : > { %v5650_v50 = vsel %vm958_vm2, %v5638_v47, 0.0 }
0x1eda   : > { %5654 = vadd.xlane.f32.xlu1 %v5653_v42  ;;  %5651 = vadd.xlane.f32.xlu0 %v5650_v50 }
0x1f62   : > { %v5649_v48 = vpop.xlane.xlu0 %5648 }
0x1f63   : > { %v5657_v43 = vmul.f32 0.03125, %v5649_v48  ;;  %v5646_v44 = vpop.xlane.xlu1 %5645 }
0x1f64   : > { %v5656_v45 = vmul.f32 0.03125, %v5646_v44  ;;  %v6499_v44 = vld [vmem:[%s8216_s22 + $0x78] sm:$0xff] }
0x1f65   : > { %v8547_v58 = vsub.f32 %v5637_v26, %v5657_v43  ;;  %v6481_v26 = vld [vmem:[%s8234_s4 + $0x1] ss:$0 sm:$0xff]  ;;  %v6498_v43 = vld [vmem:[%s8216_s22 + $0x70] sm:$0xff]  ;;  %s6513_s4 = sshll.u32 %s8691_s28, 4  ;;  %s823_s22 = scalar_lea.vmem %s8638_s18, %s7905_s20 }
0x1f66   : > { %v8549_v59 = vsub.f32 %v5636_v35, %v5656_v45  ;;  %v7363_v45 = vpack.c.bf16 %v6499_v44, %v6498_v43  ;;  %s767_s26 = scalar_lea.vmem %s8623_s3, %s6513_s4 }
0x1f67   : > { %v5655_v63 = vpop.xlane.xlu1 %5654  ;;  %v5652_v61 = vpop.xlane.xlu0 %5651  ;;  %v5665_v55 = vmul.f32 %v8547_v58, %v8547_v58 }
0x1f68   : > { %v5659_v54 = vmul.f32 0.03125, %v5655_v63  ;;  %v5658_v46 = vmul.f32 0.03125, %v5652_v61  ;;  %v5664_v14 = vmul.f32 %v8549_v59, %v8549_v59  ;;  %7364 = vmatprep.subr.bf16.mxu1 %v7363_v45 }
0x1f69   : > { %v5671_v49 = vsel %vm958_vm2, %v5665_v55, 0.0  ;;  %7366 = vmatpush3.bf16.msra.mxu1 %v7363_v45 }
0x1f6a   : > { %v8556_v51 = vsub.f32 %v5639_v41, %v5659_v54  ;;  %v8558_v38 = vsub.f32 %v5638_v47, %v5658_v46  ;;  %5672 = vadd.xlane.f32.xlu1 %v5671_v49  ;;  %v5668_v23 = vsel %vm958_vm2, %v5664_v14, 0.0 }
0x1f6b   : > { %5669 = vadd.xlane.f32.xlu0 %v5668_v23 }
0x1f6c   : > { %v5667_v52 = vmul.f32 %v8556_v51, %v8556_v51  ;;  %v5666_v11 = vmul.f32 %v8558_v38, %v8558_v38 }
0x1f6e   : > { %v5677_v53 = vsel %vm958_vm2, %v5667_v52, 0.0  ;;  %v5674_v33 = vsel %vm958_vm2, %v5666_v11, 0.0  ;;  %v6501_v11 = vld [vmem:[%s8263_s25 + $0x1] ss:$0 sm:$0xff] }
0x1f6f   : > { %5678 = vadd.xlane.f32.xlu1 %v5677_v53  ;;  %5675 = vadd.xlane.f32.xlu0 %v5674_v33 }
0x1ff7   : > { %v5673_v15 = vpop.xlane.xlu1 %5672 }
0x1ff8   : > { %v5681_v16 = vmul.f32 0.03125, %v5673_v15  ;;  %v5670_v36 = vpop.xlane.xlu0 %5669 }
0x1ff9   : > { %v5680_v0 = vmul.f32 0.03125, %v5670_v36 }
0x1ffa   : > { %v5685_v17 = vadd.f32 1e-05, %v5681_v16 }
0x1ffb   : > { %v5684_v30 = vadd.f32 1e-05, %v5680_v0 }
0x1ffc   : > { %7717 = vrsqrt.f32 %v5685_v17  ;;  %v5679_v18 = vpop.xlane.xlu1 %5678  ;;  %v5676_v21 = vpop.xlane.xlu0 %5675 }
0x1ffd   : > { %7719 = vrsqrt.f32 %v5684_v30  ;;  %v5683_v22 = vmul.f32 0.03125, %v5679_v18  ;;  %v5682_v31 = vmul.f32 0.03125, %v5676_v21 }
0x1fff   : > { %v5687_v28 = vadd.f32 1e-05, %v5683_v22  ;;  %v5686_v34 = vadd.f32 1e-05, %v5682_v31 }
0x2001   : > { %7721 = vrsqrt.f32 %v5687_v28 }
0x2002   : > { %7723 = vrsqrt.f32 %v5686_v34 }
0x2006   : > { %v7718_v10 = vpop.eup %7717 }
0x2007   : > { %v7720_v37 = vpop.eup %7719  ;;  %v5693_v19 = vmul.f32 %v7718_v10, %v8547_v58  ;;  %v6487_v58 = vld [vmem:[%s8252_s30 + $0x1] ss:$0 sm:$0xff] }
0x2008   : > { %v5692_v40 = vmul.f32 %v7720_v37, %v8549_v59 }
0x2009   : > { %v5703_v35 = vmul.f32 %v6480_v20, %v5693_v19 }
0x200a   : > { %v5702_v24 = vmul.f32 %v6480_v20, %v5692_v40 }
0x200b   : > { %v7722_v13 = vpop.eup %7721  ;;  %v5713_v39 = vadd.f32 %v6481_v26, %v5703_v35 }
0x200c   : > { %v7724_v25 = vpop.eup %7723  ;;  %v5712_v27 = vadd.f32 %v6481_v26, %v5702_v24  ;;  %v5695_v29 = vmul.f32 %v7722_v13, %v8556_v51  ;;  %v832_v13 = vld [vmem:[%s767_s26 + $0x8] sm:$0xff] }
0x200d   : > { %v5694_v41 = vmul.f32 %v7724_v25, %v8558_v38  ;;  %v831_v25 = vld [vmem:[%s767_s26] sm:$0xff] }
0x200e   : > { %7115 = vmatprep.mubr.msk.f32.mxu0 %vm958_vm2, %v5712_v27  ;;  %v5705_v47 = vmul.f32 %v6480_v20, %v5695_v29 }
0x200f   : > { %7116 = vmatmul.mubr.msk.f32.vlgmr.msra.gmra.mrb[56].mxu0 %vm958_vm2, %v5713_v39  ;;  %v5704_v42 = vmul.f32 %v6480_v20, %v5694_v41 }
0x2010   : > { %v5715_v50 = vadd.f32 %v6481_v26, %v5705_v47 }
0x2011   : > { %v5714_v48 = vadd.f32 %v6481_v26, %v5704_v42 }
0x2013   : > { %7118 = vmatprep.mubr.msk.f32.mxu0 %vm958_vm2, %v5714_v48 }
0x2014   : > { %7119 = vmatmul.mubr.msk.f32.gmra.mrb[58].mxu0 %vm958_vm2, %v5715_v50 }
0x20e2   : > { %v7117_v59 = vpop.f32.mrb[56].mxu0 }
0x20e3   : > { %v5813_v63 = vadd.f32 %v7117_v59, %v6487_v58  ;;  %v5807_v61 = vpop.f32.mrb[57].mxu0 }
0x20e4   : > { %v5808_v55 = vadd.f32 %v6487_v58, %v5807_v61 }
0x20e5   : > { %v5827_v46 = vmax.f32 %v5813_v63, 0.0  ;;  %v6508_v63 = vld [vmem:[%s8282_s0 + $0x1] ss:$0 sm:$0xff] }
0x20e6   : > { %v5826_v54 = vmax.f32 %v5808_v55, 0.0 }
0x20e7   : > { %v7120_v14 = vpop.f32.mrb[58].mxu0 }
0x20e8   : > { %v5823_v49 = vadd.f32 %v7120_v14, %v6487_v58  ;;  %v5817_v51 = vpop.f32.mrb[59].mxu0  ;;  %7137 = vmatprep.mubr.msk.f32.mxu1 %vm3309_vm6, %v5826_v54  ;;  %v6509_v54 = vld [vmem:[%s8288_s7 + $0x1] ss:$0 sm:$0xff] }
0x20e9   : > { %v5818_v38 = vadd.f32 %v6487_v58, %v5817_v51  ;;  %7138 = vmatmul.mubr.msk.f32.vlgmr.msra.gmra.mrb[40].mxu1 %vm3309_vm6, %v5827_v46 }
0x20ea   : > { %v5829_v52 = vmax.f32 %v5823_v49, 0.0 }
0x20eb   : > { %v5828_v23 = vmax.f32 %v5818_v38, 0.0 }
0x20ed   : > { %7140 = vmatprep.mubr.msk.f32.mxu1 %vm3309_vm6, %v5828_v23 }
0x20ee   : > { %7141 = vmatmul.mubr.msk.f32.gmra.mrb[42].mxu1 %vm3309_vm6, %v5829_v52 }
0x21bc   : > { %v7139_v53 = vpop.f32.mrb[40].mxu1 }
0x21bd   : > { %v5931_v33 = vadd.f32 %v7139_v53, %v6501_v11  ;;  %v5925_v56 = vpop.f32.mrb[41].mxu1 }
0x21be   : > { %v5926_v57 = vadd.f32 %v6501_v11, %v5925_v56 }
0x21bf   : > { %v5945_v32 = vadd.f32 %v5931_v33, %v5713_v39 }
0x21c0   : > { %v5944_v60 = vadd.f32 %v5926_v57, %v5712_v27 }
0x21c1   : > { %v7142_v62 = vpop.f32.mrb[42].mxu1  ;;  %v5955_v1 = vsel %vm958_vm2, %v5945_v32, 0.0 }
0x21c2   : > { %v5941_v2 = vadd.f32 %v7142_v62, %v6501_v11  ;;  %v5935_v3 = vpop.f32.mrb[43].mxu1  ;;  %5956 = vadd.xlane.f32.xlu1 %v5955_v1  ;;  %v5952_v4 = vsel %vm958_vm2, %v5944_v60, 0.0 }
0x21c3   : > { %v5936_v5 = vadd.f32 %v6501_v11, %v5935_v3  ;;  %5953 = vadd.xlane.f32.xlu0 %v5952_v4 }
0x21c4   : > { %v5947_v6 = vadd.f32 %v5941_v2, %v5715_v50 }
0x21c5   : > { %v5946_v7 = vadd.f32 %v5936_v5, %v5714_v48 }
0x21c6   : > { %v5961_v8 = vsel %vm958_vm2, %v5947_v6, 0.0 }
0x21c7   : > { %5962 = vadd.xlane.f32.xlu1 %v5961_v8  ;;  %v5958_v9 = vsel %vm958_vm2, %v5946_v7, 0.0 }
0x21c8   : > { %5959 = vadd.xlane.f32.xlu0 %v5958_v9 }
0x224f   : > { %v5957_v15 = vpop.xlane.xlu1 %5956 }
0x2250   : > { %v5965_v16 = vmul.f32 0.03125, %v5957_v15  ;;  %v5954_v36 = vpop.xlane.xlu0 %5953 }
0x2251   : > { %v5964_v0 = vmul.f32 0.03125, %v5954_v36 }
0x2252   : > { %v5969_v17 = vsub.f32 %v5945_v32, %v5965_v16 }
0x2253   : > { %v5968_v30 = vsub.f32 %v5944_v60, %v5964_v0 }
0x2254   : > { %v5963_v18 = vpop.xlane.xlu1 %5962  ;;  %v5973_v21 = vmul.f32 %v5969_v17, %v5969_v17 }
0x2255   : > { %v5967_v22 = vmul.f32 0.03125, %v5963_v18  ;;  %v5960_v31 = vpop.xlane.xlu0 %5959  ;;  %v5972_v28 = vmul.f32 %v5968_v30, %v5968_v30 }
0x2256   : > { %v5966_v34 = vmul.f32 0.03125, %v5960_v31  ;;  %v5979_v10 = vsel %vm958_vm2, %v5973_v21, 0.0 }
0x2257   : > { %v5971_v20 = vsub.f32 %v5947_v6, %v5967_v22  ;;  %5980 = vadd.xlane.f32.xlu1 %v5979_v10  ;;  %v5976_v37 = vsel %vm958_vm2, %v5972_v28, 0.0 }
0x2258   : > { %v5970_v19 = vsub.f32 %v5946_v7, %v5966_v34  ;;  %5977 = vadd.xlane.f32.xlu0 %v5976_v37 }
0x2259   : > { %v5975_v40 = vmul.f32 %v5971_v20, %v5971_v20 }
0x225a   : > { %v5974_v26 = vmul.f32 %v5970_v19, %v5970_v19 }
0x225b   : > { %v5985_v35 = vsel %vm958_vm2, %v5975_v40, 0.0 }
0x225c   : > { %5986 = vadd.xlane.f32.xlu1 %v5985_v35  ;;  %v5982_v24 = vsel %vm958_vm2, %v5974_v26, 0.0 }
0x225d   : > { %5983 = vadd.xlane.f32.xlu0 %v5982_v24 }
0x226d   : > { %6031 = vperm.xlu1 %7572, %v832_v13  }
0x2273   : > { %6026 = vperm.xlu0 %7571, %v831_v25  }
0x22e4   : > { %v5981_v27 = vpop.xlane.xlu1 %5980 }
0x22e5   : > { %v5989_v29 = vmul.f32 0.03125, %v5981_v27  ;;  %v5978_v39 = vpop.xlane.xlu0 %5977 }
0x22e6   : > { %v5988_v41 = vmul.f32 0.03125, %v5978_v39 }
0x22e7   : > { %v5993_v47 = vadd.f32 1e-05, %v5989_v29 }
0x22e8   : > { %v5992_v42 = vadd.f32 1e-05, %v5988_v41 }
0x22e9   : > { %7725 = vrsqrt.f32 %v5993_v47  ;;  %v5987_v50 = vpop.xlane.xlu1 %5986 }
0x22ea   : > { %7727 = vrsqrt.f32 %v5992_v42  ;;  %v5991_v48 = vmul.f32 0.03125, %v5987_v50  ;;  %v5984_v43 = vpop.xlane.xlu0 %5983 }
0x22eb   : > { %v5990_v44 = vmul.f32 0.03125, %v5984_v43 }
0x22ec   : > { %v5995_v45 = vadd.f32 1e-05, %v5991_v48 }
0x22ed   : > { %v5994_v58 = vadd.f32 1e-05, %v5990_v44  ;;  %v6032_v49 = vpop.permute.xlu1 %6031 }
0x22ee   : > { %7729 = vrsqrt.f32 %v5995_v45 }
0x22ef   : > { %7731 = vrsqrt.f32 %v5994_v58 }
0x22f2   : > { %v6027_v52 = vpop.permute.xlu0 %6026 }
0x22f3   : > { %v7726_v59 = vpop.eup %7725 }
0x22f4   : > { %v7728_v61 = vpop.eup %7727  ;;  %v6001_v55 = vmul.f32 %v7726_v59, %v5969_v17 }
0x22f5   : > { %v6000_v46 = vmul.f32 %v7728_v61, %v5968_v30 }
0x22f6   : > { %v6011_v14 = vmul.f32 %v6508_v63, %v6001_v55 }
0x22f7   : > { %v6010_v51 = vmul.f32 %v6508_v63, %v6000_v46 }
0x22f8   : > { %v7730_v38 = vpop.eup %7729  ;;  %v6021_v23 = vadd.f32 %v6509_v54, %v6011_v14 }
0x22f9   : > { %v7732_v11 = vpop.eup %7731  ;;  %v6003_v53 = vmul.f32 %v7730_v38, %v5971_v20  ;;  %v6020_v33 = vadd.f32 %v6509_v54, %v6010_v51 }
0x22fa   : > { %v6035_v56 = vmul.f32 %v6032_v49, %v6021_v23  ;;  %v6002_v57 = vmul.f32 %v7732_v11, %v5970_v19 }
0x22fb   : > { %v6013_v32 = vmul.f32 %v6508_v63, %v6003_v53  ;;  %v6034_v60 = vmul.f32 %v6027_v52, %v6020_v33 }
0x22fc   : > { %v6039_v62 = vsel %vm958_vm2, %v6035_v56, 0.0  ;;  %v6012_v1 = vmul.f32 %v6508_v63, %v6002_v57 }
0x22fd   : > { %v6023_v2 = vadd.f32 %v6509_v54, %v6013_v32  ;;  %v6038_v3 = vsel %vm958_vm2, %v6034_v60, 0.0 }
0x22fe   : > { %v6022_v4 = vadd.f32 %v6509_v54, %v6012_v1  ;;  %v6040_v5 = vadd.f32 %v6039_v62, %v6038_v3 }
0x22ff   : > { %v6037_v6 = vmul.f32 %v6032_v49, %v6023_v2 }
0x2300   : > { %v6036_v7 = vmul.f32 %v6027_v52, %v6022_v4  ;;  %v6041_v8 = vrot.slane %v6040_v5, 4 }
0x2301   : > { %v6048_v9 = vsel %vm958_vm2, %v6037_v6, 0.0 }
0x2302   : > { %v6042_v12 = vadd.f32 %v6041_v8, %v6040_v5  ;;  %v6047_v15 = vsel %vm958_vm2, %v6036_v7, 0.0 }
0x2303   : > { %v6049_v16 = vadd.f32 %v6048_v9, %v6047_v15 }
0x2304   : > { %v6043_v36 = vrot.slane %v6042_v12, 2 }
0x2305   : > { %v6050_v0 = vrot.slane %v6049_v16, 4 }
0x2306   : > { %v6044_v17 = vadd.f32 %v6043_v36, %v6042_v12 }
0x2307   : > { %v6051_v30 = vadd.f32 %v6050_v0, %v6049_v16 }
0x2308   : > { %v6045_v21 = vrot.slane %v6044_v17, 1 }
0x2309   : > { %v6052_v18 = vrot.slane %v6051_v30, 2 }
0x230a   : > { %v6046_v28 = vadd.f32 %v6045_v21, %v6044_v17 }
0x230b   : > { %v6053_v22 = vadd.f32 %v6052_v18, %v6051_v30 }
0x230d   : > { %v6054_v31 = vrot.slane %v6053_v22, 1 }
0x230f   : > { %v6055_v34 = vadd.f32 %v6054_v31, %v6053_v22 }
0x2311   : > { %v6059_v10 = vsel %vm6058_vm7, %v6055_v34, %v6046_v28 }
0x2312   : > { %6062 = vst.msk [vmem:[%s823_s22] sm:$0x3] %vm6061_vm8, %v6059_v10 }
0x2313 PF: > { %s28_s27 = sadd.s32 1, %s7740_s27  }
0x2314   : > { %p25_p4 = scmp.ge.s32.totalorder %s28_s27, 5  }
0x2316   :  { %27 = sbr.rel (!%p25_p4) target bundleno = 8 (0x8), region = 176 }

</bundles_post_ra>
